<compile_context>
chip_gen: v5e
topology: v5e:2x2
jax: 0.10.0
libtpu: 0.0.40
codegen_flags: <defaults>
</compile_context>

<pallas_src>
import functools

import numpy as np
import jax
import jax.numpy as jnp
from jax import lax
from jax.experimental import pallas as pl
from jax.experimental.pallas import tpu as pltpu

# ------------------------- hyperparameters (consistent with the module) ------------
LSTM_DEPTH = 2
STRIDE = 2
GRID_SIZE = 16          # global referenced by the PyTorch module
IMAGE_DEPTH = 1         # global referenced by the PyTorch module
LAYERS = 4
NEG_SLOPE = 0.01        # nn.LeakyReLU default

F1, F2, F3, F4 = 4, 8, 8, 8            # layer_{1..4}_cnn_filters
K1 = K2 = K3 = K4 = 3                  # layer_{1..4}_kernel_size
HID = 32                               # middle_hidden_layer_size
W_MID = GRID_SIZE // (2 ** (LAYERS - 1))           # middle_layer_image_width = 2
MID = F4 * W_MID * W_MID                           # middle_layer_size = 32
BATCH = 2

# ConvTranspose3d stack config: (Cin, Cout, k, (sD,sH,sW), pad, (opD,opH,opW))
# NOTE: pad of layer 0 is int(K4/3) exactly as written in the module (== 1 for K4=3).
_CONV_CFG = [
    (F4, F3, K4, (STRIDE, STRIDE, STRIDE), K4 // 3, (1, 1, 1)),
    (F3, F2, K3, (STRIDE, STRIDE, STRIDE), K3 // 2, (1, 1, 1)),
    (F2, F1, K2, (STRIDE, STRIDE, 1),      K2 // 2, (1, 1, 0)),
    (F1, IMAGE_DEPTH, K1, (1, 1, 1),       K1 // 2, (0, 0, 0)),
]


def _tconv_out(n, s, p, k, op):
    return (n - 1) * s - 2 * p + k + op


_CONV_IN_DHW = []
_CONV_OUT_DHW = []
_d = (W_MID, W_MID, 1)
for _ci, _co, _k, _s, _p, _op in _CONV_CFG:
    _CONV_IN_DHW.append(_d)
    _d = tuple(_tconv_out(n, s, _p, _k, o) for n, s, o in zip(_d, _s, _op))
    _CONV_OUT_DHW.append(_d)
FINAL_DHW = _CONV_OUT_DHW[-1]          # (16, 16, 4)

# Per conv layer: input cols (h*w*ci), output cols (ho*wo*co), 128-padded lane width,
# input rows (D*B), output rows (Do*B).
_HWCI, _NOUT, _NPAD, _RIN, _ROUT = [], [], [], [], []
for _li, (_ci, _co, _k, _s, _p, _op) in enumerate(_CONV_CFG):
    _D, _H, _W = _CONV_IN_DHW[_li]
    _Do, _Ho, _Wo = _CONV_OUT_DHW[_li]
    _HWCI.append(_H * _W * _ci)
    _no = _Ho * _Wo * _co
    _NOUT.append(_no)
    _NPAD.append(-(-_no // 128) * 128)
    _RIN.append(_D * BATCH)
    _ROUT.append(_Do * BATCH)


# ------------------------- static layout of the packed weight slab -----------------
def _build_layout():
    offs = {}
    cur = 0

    def add(name, rows, cols):
        nonlocal cur
        assert cols <= 128
        offs[name] = (cur, rows, cols)
        cur += -(-rows // 8) * 8          # 8-sublane aligned regions -> clean slices

    add("wf", 4, HID)
    add("bf", 1, HID)
    add("wc", MID, HID)
    add("bc", 1, HID)
    for l in range(LSTM_DEPTH):
        add(f"wih{l}", HID, 4 * HID)
        add(f"whh{l}", HID, 4 * HID)
        add(f"b{l}", 1, 4 * HID)
    add("wo", HID, 2 * _HWCI[0])
    add("bo", 1, 2 * _HWCI[0])
    for li in range(LAYERS):
        k = _CONV_CFG[li][2]
        add(f"s{li}", k * _ROUT[li], _RIN[li])
    return offs, cur


_OFFS, _SLAB_ROWS = _build_layout()


# ------------------------- raw parameters (PyTorch-like layout) --------------------
def init_params(key):
    def nrm(k, shape, scale=0.1):
        return scale * jax.random.normal(k, shape, jnp.float32)

    ks = iter(jax.random.split(key, 32))
    p = {}
    p["wf"] = nrm(next(ks), (4, HID));   p["bf"] = nrm(next(ks), (1, HID))
    p["wc"] = nrm(next(ks), (MID, HID)); p["bc"] = nrm(next(ks), (1, HID))
    p["wo"] = nrm(next(ks), (HID, MID)); p["bo"] = nrm(next(ks), (1, MID))
    # LSTM per-layer gate weights stacked as (gate, in, HID); gate order i,f,g,o
    p["wih0"] = nrm(next(ks), (4, HID, HID)); p["whh0"] = nrm(next(ks), (4, HID, HID))
    p["b0"] = nrm(next(ks), (4, 1, HID))      # = b_ih + b_hh combined
    p["wih1"] = nrm(next(ks), (4, HID, HID)); p["whh1"] = nrm(next(ks), (4, HID, HID))
    p["b1"] = nrm(next(ks), (4, 1, HID))
    # learned initial recurrent state (torch.rand -> uniform)
    p["h0"] = jax.random.uniform(next(ks), (LSTM_DEPTH, 1, HID), jnp.float32)
    p["c0"] = jax.random.uniform(next(ks), (LSTM_DEPTH, 1, HID), jnp.float32)
    # ConvTranspose3d weights, PyTorch layout (Cin, Cout, kD, kH, kW)
    p["w_t0"] = nrm(next(ks), (F4, F3, K4, K4, K4)); p["b_t0"] = nrm(next(ks), (F3,))
    p["w_t1"] = nrm(next(ks), (F3, F2, K3, K3, K3)); p["b_t1"] = nrm(next(ks), (F2,))
    p["w_t2"] = nrm(next(ks), (F2, F1, K2, K2, K2)); p["b_t2"] = nrm(next(ks), (F1,))
    p["w_t3"] = nrm(next(ks), (F1, IMAGE_DEPTH, K1, K1, K1))
    p["b_t3"] = nrm(next(ks), (IMAGE_DEPTH,))
    return p


# ------------------------- one-time prepare (hoisted weight preprocessing) ---------
def _scatter_matrix(n_in, n_out, stride, pad, ktap):
    """S[o, i] = 1 iff o == i*stride - pad + ktap (transposed-conv scatter)."""
    S = np.zeros((n_out, n_in), np.float32)
    for i in range(n_in):
        o = i * stride - pad + ktap
        if 0 <= o < n_out:
            S[o, i] = 1.0
    return S


def prepare_params(params, batch):
    """Pack all small operators into one lane-dense (N, 128) slab, factorize every
    ConvTranspose3d into a per-kd-merged GEMM operator (Mcat) plus tiny depth-scatter
    GEMMs (stored in the slab), and build the learned initial state."""
    assert batch == BATCH
    slab = np.zeros((_SLAB_ROWS, 128), np.float32)

    def put(name, arr):
        off, r, c = _OFFS[name]
        slab[off:off + r, 0:c] = np.asarray(arr, np.float32).reshape(r, c)

    put("wf", params["wf"])
    put("bf", params["bf"])
    put("wc", params["wc"])
    put("bc", params["bc"])

    # LSTM gate fusion: (4, HID, HID) -> (HID, 4*HID), (4, 1, HID) -> (1, 4*HID)
    for l in range(LSTM_DEPTH):
        wih = np.asarray(params[f"wih{l}"], np.float32)
        whh = np.asarray(params[f"whh{l}"], np.float32)
        b = np.asarray(params[f"b{l}"], np.float32)
        put(f"wih{l}", np.concatenate([wih[g] for g in range(4)], axis=1))
        put(f"whh{l}", np.concatenate([whh[g] for g in range(4)], axis=1))
        put(f"b{l}", np.concatenate([b[g] for g in range(4)], axis=1))

    # layer_recurrent_out: permute MID columns to (d, h, w, ci) blocks so the kernel
    # emits the conv input directly (rows (d, b), cols (h, w, ci)).
    wo = np.asarray(params["wo"], np.float32)
    bo = np.asarray(params["bo"], np.float32)
    D0, H0, W0 = _CONV_IN_DHW[0]
    ci0 = _CONV_CFG[0][0]
    idx = np.empty(D0 * H0 * W0 * ci0, np.int64)
    for d in range(D0):
        for h in range(H0):
            for w in range(W0):
                for ci in range(ci0):
                    col = d * (H0 * W0 * ci0) + (h * W0 + w) * ci0 + ci
                    idx[col] = ((ci * D0 + d) * H0 + h) * W0 + w
    put("wo", wo[:, idx])
    put("bo", bo[:, idx])

    # Factorize every ConvTranspose3d:
    #   out[(od,b),(oh,ow,co)] = bias[co] + sum_kd SB_kd @ (X @ M_kd)
    # with M_kd blocks padded & concatenated along lanes (one wide dot per layer).
    ms = {}
    cbs = np.zeros((LAYERS, 256), np.float32)
    for li, (ci, co, k, s, pad, op) in enumerate(_CONV_CFG):
        D, H, W = _CONV_IN_DHW[li]
        Do, Ho, Wo = _CONV_OUT_DHW[li]
        nout, npad, rout = _NOUT[li], _NPAD[li], _ROUT[li]
        wgt = np.asarray(params[f"w_t{li}"], np.float32)    # (ci, co, k, k, k)
        bias = np.asarray(params[f"b_t{li}"], np.float32)   # (co,)
        mcat = np.zeros((_HWCI[li], k * npad), np.float32)
        s_blk = np.zeros((k * rout, _RIN[li]), np.float32)
        for kd in range(k):
            M = np.zeros((H * W * ci, Ho * Wo * co), np.float32)
            for kh in range(k):
                SH = _scatter_matrix(H, Ho, s[1], pad, kh)
                for kw in range(k):
                    SW = _scatter_matrix(W, Wo, s[2], pad, kw)
                    M += np.einsum("ah,bw,ic->hwiabc", SH, SW,
                                   wgt[:, :, kd, kh, kw]).reshape(M.shape)
            mcat[:, kd * npad:kd * npad + nout] = M
            SD = _scatter_matrix(D, Do, s[0], pad, kd)
            SB = np.kron(SD, np.eye(batch, dtype=np.float32))      # rows (do, b)
            if li == LAYERS - 1:
                # last layer: permute output rows to (b, do) so the NCDHW conversion
                # outside the kernel is a pure reshape.
                perm = np.empty(rout, np.int64)
                for b in range(batch):
                    for od in range(Do):
                        perm[b * Do + od] = od * batch + b
                SB = SB[perm]
            s_blk[kd * rout:(kd + 1) * rout, :] = SB
        put(f"s{li}", s_blk)
        cbs[li, :nout] = np.tile(bias, Ho * Wo)
        ms[f"m{li}"] = jnp.asarray(mcat)

    state_init = np.concatenate([
        np.tile(np.asarray(params["h0"], np.float32), (1, batch, 1))[None],
        np.tile(np.asarray(params["c0"], np.float32), (1, batch, 1))[None],
    ], axis=0)                                   # (2, LSTM_DEPTH, B, HID)

    prep = {"slab": jnp.asarray(slab),
            "cbs": jnp.asarray(cbs),
            "state_init": jnp.asarray(state_init)}
    prep.update(ms)
    return prep


# ------------------------- the fused per-step Pallas kernel (time grid) ------------
def fused_step_kernel(cnn_ref, force_ref, state_in_ref, slab_ref, cbs_ref,
                      m0_ref, m1_ref, m2_ref, m3_ref,
                      out_ref, state_ref, state_scr, ximg_scr):
    f32 = jnp.float32

    def rd(name):
        off, r, c = _OFFS[name]
        return slab_ref[off:off + r, 0:c]

    def dot(a, b):
        return jnp.dot(a, b, preferred_element_type=f32)

    def leaky(v):
        return jnp.where(v >= 0, v, NEG_SLOPE * v)

    def sigmoid(v):
        return 1.0 / (1.0 + jnp.exp(-v))

    t = pl.program_id(0)

    # LSTM state is carried across the time grid in VMEM scratch.
    @pl.when(t == 0)
    def _():
        state_scr[...] = state_in_ref[...]

    # ---- dense head: force / cnn linears + LeakyReLU, then add -------------------
    x = (leaky(dot(force_ref[0], rd("wf")) + rd("bf"))
         + leaky(dot(cnn_ref[0], rd("wc")) + rd("bc")))             # (B, HID)

    # ---- 2-layer LSTM cell (seq len 1), fused 4*HID-wide gate matmuls ------------
    def cell(xin, h_prev, c_prev, wih, whh, b):
        g = dot(xin, wih) + dot(h_prev, whh) + b                    # (B, 4*HID)
        i_g = sigmoid(g[:, 0 * HID:1 * HID])
        f_g = sigmoid(g[:, 1 * HID:2 * HID])
        g_g = jnp.tanh(g[:, 2 * HID:3 * HID])
        o_g = sigmoid(g[:, 3 * HID:4 * HID])
        c_new = f_g * c_prev + i_g * g_g
        return o_g * jnp.tanh(c_new), c_new

    h0, c0 = cell(x, state_scr[0, 0], state_scr[1, 0],
                  rd("wih0"), rd("whh0"), rd("b0"))
    h1, c1 = cell(h0, state_scr[0, 1], state_scr[1, 1],
                  rd("wih1"), rd("whh1"), rd("b1"))
    state_scr[0, 0] = h0
    state_scr[0, 1] = h1
    state_scr[1, 0] = c0
    state_scr[1, 1] = c1
    state_ref[...] = state_scr[...]

    # ---- layer_recurrent_out emitted directly in (d, b)-row conv layout ----------
    hw0 = _HWCI[0]
    z = leaky(dot(h1, rd("wo")) + rd("bo"))                         # (B, 2*hw0)
    ximg_scr[0:BATCH, :] = z[:, 0:hw0]                              # depth-0 rows
    ximg_scr[BATCH:2 * BATCH, :] = z[:, hw0:2 * hw0]                # depth-1 rows
    x_img = ximg_scr[...]                                           # (D0*B, hw0)

    # ---- factorized ConvTranspose3d stack: one wide dot + k tiny scatter dots ----
    def tconv(xin, m_ref, li):
        k = _CONV_CFG[li][2]
        npad, rout = _NPAD[li], _ROUT[li]
        off_s, _, rin = _OFFS[f"s{li}"]
        zc = dot(xin, m_ref[...])                                   # (rin, k*npad)
        cb = cbs_ref[li:li + 1, 0:npad]                             # (1, npad)
        acc = jnp.broadcast_to(cb, (rout, npad))                    # explicit bias bcast
        for kd in range(k):
            sb = slab_ref[off_s + kd * rout:off_s + (kd + 1) * rout, 0:rin]
            acc = acc + dot(sb, zc[:, kd * npad:(kd + 1) * npad])
        return acc

    a0 = leaky(tconv(x_img, m0_ref, 0)[:, 0:_NOUT[0]])              # (8, 64)
    a1 = leaky(tconv(a0, m1_ref, 1))                                # (16, 256)
    a2 = leaky(tconv(a1, m2_ref, 2))                                # (32, 256)
    acc3 = tconv(a2, m3_ref, 3)                                     # (32, 128)
    logits = acc3[:, 0:_NOUT[3]]                                    # (32, 64), rows (b, do)

    # one lane-dense (32, 128) output block: lanes 0:64 logits, 64:128 sigmoid
    out_ref[0, :, 0:_NOUT[3]] = logits
    out_ref[0, :, _NOUT[3]:2 * _NOUT[3]] = sigmoid(logits)


def _const_index_map(ndim):
    def imap(t):
        return (0,) * ndim
    return imap


def _const_spec(shape):
    return pl.BlockSpec(shape, _const_index_map(len(shape)))


def _fused_sequence_call(prep, cnn_seq, force_seq, state_in):
    T, B, _ = cnn_seq.shape
    assert B == BATCH, "batch size is baked into the prepared operators"
    out_rows = _ROUT[LAYERS - 1]
    in_specs = [
        pl.BlockSpec((1, B, MID), lambda t: (t, 0, 0)),
        pl.BlockSpec((1, B, 4), lambda t: (t, 0, 0)),
        _const_spec(state_in.shape),
        _const_spec(prep["slab"].shape),
        _const_spec(prep["cbs"].shape),
        _const_spec(prep["m0"].shape),
        _const_spec(prep["m1"].shape),
        _const_spec(prep["m2"].shape),
        _const_spec(prep["m3"].shape),
    ]
    out_specs = (
        pl.BlockSpec((1, out_rows, 128), lambda t: (t, 0, 0)),
        _const_spec((2, LSTM_DEPTH, B, HID)),
    )
    out_shape = (
        jax.ShapeDtypeStruct((T, out_rows, 128), jnp.float32),
        jax.ShapeDtypeStruct((2, LSTM_DEPTH, B, HID), jnp.float32),
    )
    return pl.pallas_call(
        fused_step_kernel,
        grid=(T,),
        in_specs=in_specs,
        out_specs=out_specs,
        out_shape=out_shape,
        scratch_shapes=[
            pltpu.VMEM((2, LSTM_DEPTH, B, HID), jnp.float32),
            pltpu.VMEM((_RIN[0], _HWCI[0]), jnp.float32),
        ],
        compiler_params=pltpu.CompilerParams(dimension_semantics=("arbitrary",)),
    )(cnn_seq, force_seq, state_in, prep["slab"], prep["cbs"],
      prep["m0"], prep["m1"], prep["m2"], prep["m3"])


# ------------------------- module-equivalent single step ---------------------------
def recurrent_model_forward(prep, cnn_flat, force_0, force_1, last_state=None):
    """Single forward step.  last_state=None == first_iteration=True (learned init)."""
    B = force_0.shape[0]
    Do, Ho, Wo = FINAL_DHW
    cnn_seq = cnn_flat[None]
    force_seq = jnp.concatenate([force_0, force_1], axis=1)[None]
    state_in = prep["state_init"] if last_state is None else jnp.stack(last_state)
    out_img, state_out = _fused_sequence_call(prep, cnn_seq, force_seq, state_in)
    n = _NOUT[LAYERS - 1]
    logits = out_img[0, :, :n].reshape(B, Do, Ho, Wo)[:, None]          # NCDHW
    sig = out_img[0, :, n:2 * n].reshape(B, Do, Ho, Wo)[:, None]
    return logits, sig, (state_out[0], state_out[1])


# ------------------------- amortized multi-step path (one launch per sequence) -----
def recurrent_model_forward_sequence(prep, cnn_seq, force0_seq, force1_seq,
                                     last_state=None):
    T, B = force0_seq.shape[:2]
    Do, Ho, Wo = FINAL_DHW
    force_seq = jnp.concatenate([force0_seq, force1_seq], axis=-1)
    state_in = prep["state_init"] if last_state is None else jnp.stack(last_state)
    out_img, state_out = _fused_sequence_call(prep, cnn_seq, force_seq, state_in)
    n = _NOUT[LAYERS - 1]
    logits = out_img[:, :, :n].reshape(T, B, Do, Ho, Wo)[:, :, None]
    sig = out_img[:, :, n:2 * n].reshape(T, B, Do, Ho, Wo)[:, :, None]
    return logits, sig, (state_out[0], state_out[1])


# ------------------------- pure-JAX (XLA) reference of the PyTorch module ----------
def reference_forward(params, cnn_flat, force_0, force_1, state):
    hi = lax.Precision.HIGHEST

    def dot(a, b):
        return jnp.dot(a, b, precision=hi)

    def leaky(v):
        return jnp.where(v >= 0, v, NEG_SLOPE * v)

    def sigm(v):
        return 1.0 / (1.0 + jnp.exp(-v))

    B = force_0.shape[0]
    h_prev, c_prev = state
    f_out = leaky(dot(jnp.concatenate([force_0, force_1], 1), params["wf"]) + params["bf"])
    c_out = leaky(dot(cnn_flat, params["wc"]) + params["bc"])
    x = f_out + c_out
    hs, cs, inp = [], [], x
    for l in range(LSTM_DEPTH):
        wih, whh, b = params[f"wih{l}"], params[f"whh{l}"], params[f"b{l}"]
        g_i = dot(inp, wih[0]) + dot(h_prev[l], whh[0]) + b[0]
        g_f = dot(inp, wih[1]) + dot(h_prev[l], whh[1]) + b[1]
        g_g = dot(inp, wih[2]) + dot(h_prev[l], whh[2]) + b[2]
        g_o = dot(inp, wih[3]) + dot(h_prev[l], whh[3]) + b[3]
        c_new = sigm(g_f) * c_prev[l] + sigm(g_i) * jnp.tanh(g_g)
        h_new = sigm(g_o) * jnp.tanh(c_new)
        hs.append(h_new); cs.append(c_new); inp = h_new
    h_out, c_out_state = jnp.stack(hs), jnp.stack(cs)

    img = leaky(dot(inp, params["wo"]) + params["bo"])             # (B, MID)
    act = img.reshape(B, F4, W_MID, W_MID, 1)                      # NCDHW
    dn = ("NCDHW", "OIDHW", "NCDHW")
    for li, (ci, co, k, s, pad, op) in enumerate(_CONV_CFG):
        w = params[f"w_t{li}"]                                     # (ci, co, k, k, k)
        kern = jnp.transpose(jnp.flip(w, axis=(2, 3, 4)), (1, 0, 2, 3, 4))
        padding = [(k - 1 - pad, k - 1 - pad + op[a]) for a in range(3)]
        y = lax.conv_general_dilated(act, kern, window_strides=(1, 1, 1),
                                     padding=padding, lhs_dilation=s,
                                     rhs_dilation=(1, 1, 1), dimension_numbers=dn,
                                     precision=hi)
        y = y + params[f"b_t{li}"].reshape(1, co, 1, 1, 1)
        act = leaky(y) if li < LAYERS - 1 else y
    logits = act
    return logits, sigm(logits), (h_out, c_out_state)


# ------------------------- main -----------------------------------------------------
if __name__ == "__main__":
    key = jax.random.PRNGKey(0)
    kp, k1, k2, k3 = jax.random.split(key, 4)
    params = init_params(kp)
    prep = prepare_params(params, BATCH)

    out_input_cnn_flat = jax.random.normal(k1, (BATCH, MID), jnp.float32)
    force_0 = jax.random.normal(k2, (BATCH, 2), jnp.float32)
    force_1 = jax.random.normal(k3, (BATCH, 2), jnp.float32)

    # --- single step (the module's forward, first_iteration=True) ---
    fwd = jax.jit(recurrent_model_forward)
    logits, sigmoid_out, (h_out, c_out) = fwd(prep, out_input_cnn_flat, force_0, force_1)
    jax.block_until_ready((logits, sigmoid_out, h_out, c_out))

    assert logits.shape == (BATCH, IMAGE_DEPTH, GRID_SIZE, GRID_SIZE, 4)
    assert sigmoid_out.shape == logits.shape
    assert h_out.shape == (LSTM_DEPTH, BATCH, HID)
    assert c_out.shape == (LSTM_DEPTH, BATCH, HID)
    assert bool(jnp.all(jnp.isfinite(logits)))
    assert bool(jnp.all((sigmoid_out >= 0) & (sigmoid_out <= 1)))

    init_state = (jnp.broadcast_to(params["h0"], (LSTM_DEPTH, BATCH, HID)),
                  jnp.broadcast_to(params["c0"], (LSTM_DEPTH, BATCH, HID)))
    ref = jax.jit(functools.partial(reference_forward, params))
    logits_r, sig_r, (h_r, c_r) = ref(out_input_cnn_flat, force_0, force_1, init_state)
    jax.block_until_ready((logits_r, sig_r, h_r, c_r))
    assert bool(jnp.allclose(logits, logits_r, rtol=5e-3, atol=5e-3))
    assert bool(jnp.allclose(sigmoid_out, sig_r, rtol=5e-3, atol=5e-3))
    assert bool(jnp.allclose(h_out, h_r, rtol=5e-3, atol=5e-3))
    assert bool(jnp.allclose(c_out, c_r, rtol=5e-3, atol=5e-3))

    # --- amortized path: 8 recurrent steps in ONE pallas_call (weights VMEM-resident) ---
    T = 8
    ks = jax.random.split(jax.random.PRNGKey(1), 3)
    cnn_seq = jax.random.normal(ks[0], (T, BATCH, MID), jnp.float32)
    f0_seq = jax.random.normal(ks[1], (T, BATCH, 2), jnp.float32)
    f1_seq = jax.random.normal(ks[2], (T, BATCH, 2), jnp.float32)
    fwd_seq = jax.jit(recurrent_model_forward_sequence)
    logits_seq, sig_seq, (h_seq, c_seq) = fwd_seq(prep, cnn_seq, f0_seq, f1_seq)
    jax.block_until_ready((logits_seq, sig_seq, h_seq, c_seq))
    assert logits_seq.shape == (T, BATCH, IMAGE_DEPTH, GRID_SIZE, GRID_SIZE, 4)

    state = init_state
    ok = True
    for t in range(T):
        lr_t, sr_t, state = ref(cnn_seq[t], f0_seq[t], f1_seq[t], state)
        ok &= bool(jnp.allclose(logits_seq[t], lr_t, rtol=1e-2, atol=1e-2))
        ok &= bool(jnp.allclose(sig_seq[t], sr_t, rtol=1e-2, atol=1e-2))
    ok &= bool(jnp.allclose(h_seq, state[0], rtol=1e-2, atol=1e-2))
    ok &= bool(jnp.allclose(c_seq, state[1], rtol=1e-2, atol=1e-2))
    assert ok

    print("KERNEL_OK")
</pallas_src>

<mosaic_0001>
module attributes {stable_mosaic.version = 11 : i64} {
  func.func @fused_step_kernel(%arg0: i32, %arg1: memref<1x2x32xf32, #tpu.memory_space<vmem>>, %arg2: memref<1x2x4xf32, #tpu.memory_space<vmem>>, %arg3: memref<2x2x2x32xf32, #tpu.memory_space<vmem>>, %arg4: memref<504x128xf32, #tpu.memory_space<vmem>>, %arg5: memref<4x256xf32, #tpu.memory_space<vmem>>, %arg6: memref<16x384xf32, #tpu.memory_space<vmem>>, %arg7: memref<64x768xf32, #tpu.memory_space<vmem>>, %arg8: memref<256x768xf32, #tpu.memory_space<vmem>>, %arg9: memref<256x384xf32, #tpu.memory_space<vmem>>, %arg10: memref<1x32x128xf32, #tpu.memory_space<vmem>>, %arg11: memref<2x2x2x32xf32, #tpu.memory_space<vmem>>, %arg12: memref<2x2x2x32xf32, #tpu.memory_space<vmem>>, %arg13: memref<4x16xf32, #tpu.memory_space<vmem>>) attributes {dimension_semantics = [#tpu.dimension_semantics<arbitrary>], iteration_bounds = array<i64: 1>, scalar_prefetch = 0 : i64, scratch_operands = 2 : i64, tpu.core_type = #tpu.core_type<tc>, window_params = [{transform_indices = @transform_0, window_bounds = array<i64: 1, 2, 32>}, {transform_indices = @transform_1, window_bounds = array<i64: 1, 2, 4>}, {pipeline_mode = #tpu.pipeline_mode<synchronous>, transform_indices = @transform_2, window_bounds = array<i64: 2, 2, 2, 32>}, {pipeline_mode = #tpu.pipeline_mode<synchronous>, transform_indices = @transform_3, window_bounds = array<i64: 504, 128>}, {pipeline_mode = #tpu.pipeline_mode<synchronous>, transform_indices = @transform_4, window_bounds = array<i64: 4, 256>}, {pipeline_mode = #tpu.pipeline_mode<synchronous>, transform_indices = @transform_5, window_bounds = array<i64: 16, 384>}, {pipeline_mode = #tpu.pipeline_mode<synchronous>, transform_indices = @transform_6, window_bounds = array<i64: 64, 768>}, {pipeline_mode = #tpu.pipeline_mode<synchronous>, transform_indices = @transform_7, window_bounds = array<i64: 256, 768>}, {pipeline_mode = #tpu.pipeline_mode<synchronous>, transform_indices = @transform_8, window_bounds = array<i64: 256, 384>}, {transform_indices = @transform_9, window_bounds = array<i64: 1, 32, 128>}, {pipeline_mode = #tpu.pipeline_mode<synchronous>, transform_indices = @transform_10, window_bounds = array<i64: 2, 2, 2, 32>}]} {
    %c0_i32 = arith.constant 0 : i32
    %0 = arith.cmpi eq, %arg0, %c0_i32 : i32
    %1 = arith.extui %0 : i1 to i32
    %c0_i32_0 = arith.constant 0 : i32
    %2 = arith.cmpi ne, %1, %c0_i32_0 : i32
    scf.if %2 {
      %c0_150 = arith.constant 0 : index
      %c0_151 = arith.constant 0 : index
      %c0_152 = arith.constant 0 : index
      %c0_153 = arith.constant 0 : index
      %241 = vector.load %arg3[%c0_150, %c0_151, %c0_152, %c0_153] : memref<2x2x2x32xf32, #tpu.memory_space<vmem>>, vector<2x2x2x32xf32>
      %c0_154 = arith.constant 0 : index
      %c0_155 = arith.constant 0 : index
      %c0_156 = arith.constant 0 : index
      %c0_157 = arith.constant 0 : index
      %242 = vector.load %arg12[%c0_154, %c0_155, %c0_156, %c0_157] : memref<2x2x2x32xf32, #tpu.memory_space<vmem>>, vector<2x2x2x32xf32>
      tpu.vector_store %arg12[%c0_154, %c0_155, %c0_156, %c0_157], %241 {strides = array<i32>} : memref<2x2x2x32xf32, #tpu.memory_space<vmem>>, vector<2x2x2x32xf32>,
    } else {
    }
    %c0 = arith.constant 0 : index
    %c0_1 = arith.constant 0 : index
    %c0_2 = arith.constant 0 : index
    %3 = vector.load %arg2[%c0, %c0_1, %c0_2] : memref<1x2x4xf32, #tpu.memory_space<vmem>>, vector<1x2x4xf32>
    %4 = vector.shape_cast %3 : vector<1x2x4xf32> to vector<2x4xf32>
    %c0_3 = arith.constant 0 : index
    %c0_4 = arith.constant 0 : index
    %5 = vector.load %arg4[%c0_3, %c0_4] : memref<504x128xf32, #tpu.memory_space<vmem>>, vector<4x32xf32>
    %cst = arith.constant dense<0.000000e+00> : vector<2x32xf32>
    %6 = tpu.matmul %4, %5, %cst {dimension_numbers = #tpu.dot_dimension_numbers<[1], [0], [0], [1], [0, 0, 1, 1], [], []>} : vector<2x4xf32>, vector<4x32xf32>, vector<2x32xf32> -> vector<2x32xf32>
    %c8 = arith.constant 8 : index
    %c0_5 = arith.constant 0 : index
    %7 = vector.load %arg4[%c8, %c0_5] : memref<504x128xf32, #tpu.memory_space<vmem>>, vector<1x32xf32>
    %8 = vector.broadcast %7 : vector<1x32xf32> to vector<2x32xf32>
    %9 = arith.addf %6, %8 : vector<2x32xf32>
    %cst_6 = arith.constant 0.000000e+00 : f32
    %10 = vector.broadcast %cst_6 : f32 to vector<2x32xf32>
    %11 = arith.cmpf oge, %9, %10 : vector<2x32xf32>
    %cst_7 = arith.constant 0.00999999977 : f32
    %12 = vector.broadcast %cst_7 : f32 to vector<2x32xf32>
    %13 = arith.mulf %12, %9 : vector<2x32xf32>
    %14 = arith.select %11, %9, %13 : vector<2x32xi1>, vector<2x32xf32>
    %c0_8 = arith.constant 0 : index
    %c0_9 = arith.constant 0 : index
    %c0_10 = arith.constant 0 : index
    %15 = vector.load %arg1[%c0_8, %c0_9, %c0_10] : memref<1x2x32xf32, #tpu.memory_space<vmem>>, vector<1x2x32xf32>
    %16 = vector.shape_cast %15 : vector<1x2x32xf32> to vector<2x32xf32>
    %c16 = arith.constant 16 : index
    %c0_11 = arith.constant 0 : index
    %17 = vector.load %arg4[%c16, %c0_11] : memref<504x128xf32, #tpu.memory_space<vmem>>, vector<32x32xf32>
    %cst_12 = arith.constant dense<0.000000e+00> : vector<2x32xf32>
    %18 = tpu.matmul %16, %17, %cst_12 {dimension_numbers = #tpu.dot_dimension_numbers<[1], [0], [0], [1], [0, 0, 1, 1], [], []>} : vector<2x32xf32>, vector<32x32xf32>, vector<2x32xf32> -> vector<2x32xf32>
    %c48 = arith.constant 48 : index
    %c0_13 = arith.constant 0 : index
    %19 = vector.load %arg4[%c48, %c0_13] : memref<504x128xf32, #tpu.memory_space<vmem>>, vector<1x32xf32>
    %20 = vector.broadcast %19 : vector<1x32xf32> to vector<2x32xf32>
    %21 = arith.addf %18, %20 : vector<2x32xf32>
    %cst_14 = arith.constant 0.000000e+00 : f32
    %22 = vector.broadcast %cst_14 : f32 to vector<2x32xf32>
    %23 = arith.cmpf oge, %21, %22 : vector<2x32xf32>
    %cst_15 = arith.constant 0.00999999977 : f32
    %24 = vector.broadcast %cst_15 : f32 to vector<2x32xf32>
    %25 = arith.mulf %24, %21 : vector<2x32xf32>
    %26 = arith.select %23, %21, %25 : vector<2x32xi1>, vector<2x32xf32>
    %27 = arith.addf %14, %26 : vector<2x32xf32>
    %c0_16 = arith.constant 0 : index
    %c0_17 = arith.constant 0 : index
    %c0_18 = arith.constant 0 : index
    %c0_19 = arith.constant 0 : index
    %28 = vector.load %arg12[%c0_16, %c0_17, %c0_18, %c0_19] : memref<2x2x2x32xf32, #tpu.memory_space<vmem>>, vector<1x1x2x32xf32>
    %29 = vector.shape_cast %28 : vector<1x1x2x32xf32> to vector<2x32xf32>
    %c1 = arith.constant 1 : index
    %c0_20 = arith.constant 0 : index
    %c0_21 = arith.constant 0 : index
    %c0_22 = arith.constant 0 : index
    %30 = vector.load %arg12[%c1, %c0_20, %c0_21, %c0_22] : memref<2x2x2x32xf32, #tpu.memory_space<vmem>>, vector<1x1x2x32xf32>
    %31 = vector.shape_cast %30 : vector<1x1x2x32xf32> to vector<2x32xf32>
    %c56 = arith.constant 56 : index
    %c0_23 = arith.constant 0 : index
    %32 = vector.load %arg4[%c56, %c0_23] : memref<504x128xf32, #tpu.memory_space<vmem>>, vector<32x128xf32>
    %c88 = arith.constant 88 : index
    %c0_24 = arith.constant 0 : index
    %33 = vector.load %arg4[%c88, %c0_24] : memref<504x128xf32, #tpu.memory_space<vmem>>, vector<32x128xf32>
    %c120 = arith.constant 120 : index
    %c0_25 = arith.constant 0 : index
    %34 = vector.load %arg4[%c120, %c0_25] : memref<504x128xf32, #tpu.memory_space<vmem>>, vector<1x128xf32>
    %cst_26 = arith.constant dense<0.000000e+00> : vector<2x128xf32>
    %35 = tpu.matmul %27, %32, %cst_26 {dimension_numbers = #tpu.dot_dimension_numbers<[1], [0], [0], [1], [0, 0, 1, 1], [], []>} : vector<2x32xf32>, vector<32x128xf32>, vector<2x128xf32> -> vector<2x128xf32>
    %cst_27 = arith.constant dense<0.000000e+00> : vector<2x128xf32>
    %36 = tpu.matmul %29, %33, %cst_27 {dimension_numbers = #tpu.dot_dimension_numbers<[1], [0], [0], [1], [0, 0, 1, 1], [], []>} : vector<2x32xf32>, vector<32x128xf32>, vector<2x128xf32> -> vector<2x128xf32>
    %37 = arith.addf %35, %36 : vector<2x128xf32>
    %38 = vector.broadcast %34 : vector<1x128xf32> to vector<2x128xf32>
    %39 = arith.addf %37, %38 : vector<2x128xf32>
    %40 = vector.extract_strided_slice %39 {offsets = [0, 0], sizes = [2, 32], strides = [1, 1]} : vector<2x128xf32> to vector<2x32xf32>
    %cst_28 = arith.constant 0.000000e+00 : f32
    %41 = vector.broadcast %cst_28 : f32 to vector<2x32xf32>
    %42 = arith.subf %41, %40 : vector<2x32xf32>
    %43 = math.exp %42 : vector<2x32xf32>
    %cst_29 = arith.constant 1.000000e+00 : f32
    %44 = vector.broadcast %cst_29 : f32 to vector<2x32xf32>
    %45 = arith.addf %44, %43 : vector<2x32xf32>
    %cst_30 = arith.constant 1.000000e+00 : f32
    %46 = vector.broadcast %cst_30 : f32 to vector<2x32xf32>
    %47 = arith.divf %46, %45 : vector<2x32xf32>
    %48 = vector.extract_strided_slice %39 {offsets = [0, 32], sizes = [2, 32], strides = [1, 1]} : vector<2x128xf32> to vector<2x32xf32>
    %cst_31 = arith.constant 0.000000e+00 : f32
    %49 = vector.broadcast %cst_31 : f32 to vector<2x32xf32>
    %50 = arith.subf %49, %48 : vector<2x32xf32>
    %51 = math.exp %50 : vector<2x32xf32>
    %cst_32 = arith.constant 1.000000e+00 : f32
    %52 = vector.broadcast %cst_32 : f32 to vector<2x32xf32>
    %53 = arith.addf %52, %51 : vector<2x32xf32>
    %cst_33 = arith.constant 1.000000e+00 : f32
    %54 = vector.broadcast %cst_33 : f32 to vector<2x32xf32>
    %55 = arith.divf %54, %53 : vector<2x32xf32>
    %56 = vector.extract_strided_slice %39 {offsets = [0, 64], sizes = [2, 32], strides = [1, 1]} : vector<2x128xf32> to vector<2x32xf32>
    %57 = math.tanh %56 : vector<2x32xf32>
    %58 = vector.extract_strided_slice %39 {offsets = [0, 96], sizes = [2, 32], strides = [1, 1]} : vector<2x128xf32> to vector<2x32xf32>
    %cst_34 = arith.constant 0.000000e+00 : f32
    %59 = vector.broadcast %cst_34 : f32 to vector<2x32xf32>
    %60 = arith.subf %59, %58 : vector<2x32xf32>
    %61 = math.exp %60 : vector<2x32xf32>
    %cst_35 = arith.constant 1.000000e+00 : f32
    %62 = vector.broadcast %cst_35 : f32 to vector<2x32xf32>
    %63 = arith.addf %62, %61 : vector<2x32xf32>
    %cst_36 = arith.constant 1.000000e+00 : f32
    %64 = vector.broadcast %cst_36 : f32 to vector<2x32xf32>
    %65 = arith.divf %64, %63 : vector<2x32xf32>
    %66 = arith.mulf %55, %31 : vector<2x32xf32>
    %67 = arith.mulf %47, %57 : vector<2x32xf32>
    %68 = arith.addf %66, %67 : vector<2x32xf32>
    %69 = math.tanh %68 : vector<2x32xf32>
    %70 = arith.mulf %65, %69 : vector<2x32xf32>
    %c0_37 = arith.constant 0 : index
    %c1_38 = arith.constant 1 : index
    %c0_39 = arith.constant 0 : index
    %c0_40 = arith.constant 0 : index
    %71 = vector.load %arg12[%c0_37, %c1_38, %c0_39, %c0_40] : memref<2x2x2x32xf32, #tpu.memory_space<vmem>>, vector<1x1x2x32xf32>
    %72 = vector.shape_cast %71 : vector<1x1x2x32xf32> to vector<2x32xf32>
    %c1_41 = arith.constant 1 : index
    %c1_42 = arith.constant 1 : index
    %c0_43 = arith.constant 0 : index
    %c0_44 = arith.constant 0 : index
    %73 = vector.load %arg12[%c1_41, %c1_42, %c0_43, %c0_44] : memref<2x2x2x32xf32, #tpu.memory_space<vmem>>, vector<1x1x2x32xf32>
    %74 = vector.shape_cast %73 : vector<1x1x2x32xf32> to vector<2x32xf32>
    %c128 = arith.constant 128 : index
    %c0_45 = arith.constant 0 : index
    %75 = vector.load %arg4[%c128, %c0_45] : memref<504x128xf32, #tpu.memory_space<vmem>>, vector<32x128xf32>
    %c160 = arith.constant 160 : index
    %c0_46 = arith.constant 0 : index
    %76 = vector.load %arg4[%c160, %c0_46] : memref<504x128xf32, #tpu.memory_space<vmem>>, vector<32x128xf32>
    %c192 = arith.constant 192 : index
    %c0_47 = arith.constant 0 : index
    %77 = vector.load %arg4[%c192, %c0_47] : memref<504x128xf32, #tpu.memory_space<vmem>>, vector<1x128xf32>
    %cst_48 = arith.constant dense<0.000000e+00> : vector<2x128xf32>
    %78 = tpu.matmul %70, %75, %cst_48 {dimension_numbers = #tpu.dot_dimension_numbers<[1], [0], [0], [1], [0, 0, 1, 1], [], []>} : vector<2x32xf32>, vector<32x128xf32>, vector<2x128xf32> -> vector<2x128xf32>
    %cst_49 = arith.constant dense<0.000000e+00> : vector<2x128xf32>
    %79 = tpu.matmul %72, %76, %cst_49 {dimension_numbers = #tpu.dot_dimension_numbers<[1], [0], [0], [1], [0, 0, 1, 1], [], []>} : vector<2x32xf32>, vector<32x128xf32>, vector<2x128xf32> -> vector<2x128xf32>
    %80 = arith.addf %78, %79 : vector<2x128xf32>
    %81 = vector.broadcast %77 : vector<1x128xf32> to vector<2x128xf32>
    %82 = arith.addf %80, %81 : vector<2x128xf32>
    %83 = vector.extract_strided_slice %82 {offsets = [0, 0], sizes = [2, 32], strides = [1, 1]} : vector<2x128xf32> to vector<2x32xf32>
    %cst_50 = arith.constant 0.000000e+00 : f32
    %84 = vector.broadcast %cst_50 : f32 to vector<2x32xf32>
    %85 = arith.subf %84, %83 : vector<2x32xf32>
    %86 = math.exp %85 : vector<2x32xf32>
    %cst_51 = arith.constant 1.000000e+00 : f32
    %87 = vector.broadcast %cst_51 : f32 to vector<2x32xf32>
    %88 = arith.addf %87, %86 : vector<2x32xf32>
    %cst_52 = arith.constant 1.000000e+00 : f32
    %89 = vector.broadcast %cst_52 : f32 to vector<2x32xf32>
    %90 = arith.divf %89, %88 : vector<2x32xf32>
    %91 = vector.extract_strided_slice %82 {offsets = [0, 32], sizes = [2, 32], strides = [1, 1]} : vector<2x128xf32> to vector<2x32xf32>
    %cst_53 = arith.constant 0.000000e+00 : f32
    %92 = vector.broadcast %cst_53 : f32 to vector<2x32xf32>
    %93 = arith.subf %92, %91 : vector<2x32xf32>
    %94 = math.exp %93 : vector<2x32xf32>
    %cst_54 = arith.constant 1.000000e+00 : f32
    %95 = vector.broadcast %cst_54 : f32 to vector<2x32xf32>
    %96 = arith.addf %95, %94 : vector<2x32xf32>
    %cst_55 = arith.constant 1.000000e+00 : f32
    %97 = vector.broadcast %cst_55 : f32 to vector<2x32xf32>
    %98 = arith.divf %97, %96 : vector<2x32xf32>
    %99 = vector.extract_strided_slice %82 {offsets = [0, 64], sizes = [2, 32], strides = [1, 1]} : vector<2x128xf32> to vector<2x32xf32>
    %100 = math.tanh %99 : vector<2x32xf32>
    %101 = vector.extract_strided_slice %82 {offsets = [0, 96], sizes = [2, 32], strides = [1, 1]} : vector<2x128xf32> to vector<2x32xf32>
    %cst_56 = arith.constant 0.000000e+00 : f32
    %102 = vector.broadcast %cst_56 : f32 to vector<2x32xf32>
    %103 = arith.subf %102, %101 : vector<2x32xf32>
    %104 = math.exp %103 : vector<2x32xf32>
    %cst_57 = arith.constant 1.000000e+00 : f32
    %105 = vector.broadcast %cst_57 : f32 to vector<2x32xf32>
    %106 = arith.addf %105, %104 : vector<2x32xf32>
    %cst_58 = arith.constant 1.000000e+00 : f32
    %107 = vector.broadcast %cst_58 : f32 to vector<2x32xf32>
    %108 = arith.divf %107, %106 : vector<2x32xf32>
    %109 = arith.mulf %98, %74 : vector<2x32xf32>
    %110 = arith.mulf %90, %100 : vector<2x32xf32>
    %111 = arith.addf %109, %110 : vector<2x32xf32>
    %112 = math.tanh %111 : vector<2x32xf32>
    %113 = arith.mulf %108, %112 : vector<2x32xf32>
    %c0_59 = arith.constant 0 : index
    %c0_60 = arith.constant 0 : index
    %c0_61 = arith.constant 0 : index
    %c0_62 = arith.constant 0 : index
    %114 = vector.load %arg12[%c0_59, %c0_60, %c0_61, %c0_62] : memref<2x2x2x32xf32, #tpu.memory_space<vmem>>, vector<1x1x2x32xf32>
    %115 = vector.shape_cast %114 : vector<1x1x2x32xf32> to vector<2x32xf32>
    %116 = vector.shape_cast %70 : vector<2x32xf32> to vector<1x1x2x32xf32>
    tpu.vector_store %arg12[%c0_59, %c0_60, %c0_61, %c0_62], %116 {strides = array<i32>} : memref<2x2x2x32xf32, #tpu.memory_space<vmem>>, vector<1x1x2x32xf32>,
    %c0_63 = arith.constant 0 : index
    %c1_64 = arith.constant 1 : index
    %c0_65 = arith.constant 0 : index
    %c0_66 = arith.constant 0 : index
    %117 = vector.load %arg12[%c0_63, %c1_64, %c0_65, %c0_66] : memref<2x2x2x32xf32, #tpu.memory_space<vmem>>, vector<1x1x2x32xf32>
    %118 = vector.shape_cast %117 : vector<1x1x2x32xf32> to vector<2x32xf32>
    %119 = vector.shape_cast %113 : vector<2x32xf32> to vector<1x1x2x32xf32>
    tpu.vector_store %arg12[%c0_63, %c1_64, %c0_65, %c0_66], %119 {strides = array<i32>} : memref<2x2x2x32xf32, #tpu.memory_space<vmem>>, vector<1x1x2x32xf32>,
    %c1_67 = arith.constant 1 : index
    %c0_68 = arith.constant 0 : index
    %c0_69 = arith.constant 0 : index
    %c0_70 = arith.constant 0 : index
    %120 = vector.load %arg12[%c1_67, %c0_68, %c0_69, %c0_70] : memref<2x2x2x32xf32, #tpu.memory_space<vmem>>, vector<1x1x2x32xf32>
    %121 = vector.shape_cast %120 : vector<1x1x2x32xf32> to vector<2x32xf32>
    %122 = vector.shape_cast %68 : vector<2x32xf32> to vector<1x1x2x32xf32>
    tpu.vector_store %arg12[%c1_67, %c0_68, %c0_69, %c0_70], %122 {strides = array<i32>} : memref<2x2x2x32xf32, #tpu.memory_space<vmem>>, vector<1x1x2x32xf32>,
    %c1_71 = arith.constant 1 : index
    %c1_72 = arith.constant 1 : index
    %c0_73 = arith.constant 0 : index
    %c0_74 = arith.constant 0 : index
    %123 = vector.load %arg12[%c1_71, %c1_72, %c0_73, %c0_74] : memref<2x2x2x32xf32, #tpu.memory_space<vmem>>, vector<1x1x2x32xf32>
    %124 = vector.shape_cast %123 : vector<1x1x2x32xf32> to vector<2x32xf32>
    %125 = vector.shape_cast %111 : vector<2x32xf32> to vector<1x1x2x32xf32>
    tpu.vector_store %arg12[%c1_71, %c1_72, %c0_73, %c0_74], %125 {strides = array<i32>} : memref<2x2x2x32xf32, #tpu.memory_space<vmem>>, vector<1x1x2x32xf32>,
    %c0_75 = arith.constant 0 : index
    %c0_76 = arith.constant 0 : index
    %c0_77 = arith.constant 0 : index
    %c0_78 = arith.constant 0 : index
    %126 = vector.load %arg12[%c0_75, %c0_76, %c0_77, %c0_78] : memref<2x2x2x32xf32, #tpu.memory_space<vmem>>, vector<2x2x2x32xf32>
    %c0_79 = arith.constant 0 : index
    %c0_80 = arith.constant 0 : index
    %c0_81 = arith.constant 0 : index
    %c0_82 = arith.constant 0 : index
    %127 = vector.load %arg11[%c0_79, %c0_80, %c0_81, %c0_82] : memref<2x2x2x32xf32, #tpu.memory_space<vmem>>, vector<2x2x2x32xf32>
    tpu.vector_store %arg11[%c0_79, %c0_80, %c0_81, %c0_82], %126 {strides = array<i32>} : memref<2x2x2x32xf32, #tpu.memory_space<vmem>>, vector<2x2x2x32xf32>,
    %c200 = arith.constant 200 : index
    %c0_83 = arith.constant 0 : index
    %128 = vector.load %arg4[%c200, %c0_83] : memref<504x128xf32, #tpu.memory_space<vmem>>, vector<32x32xf32>
    %cst_84 = arith.constant dense<0.000000e+00> : vector<2x32xf32>
    %129 = tpu.matmul %113, %128, %cst_84 {dimension_numbers = #tpu.dot_dimension_numbers<[1], [0], [0], [1], [0, 0, 1, 1], [], []>} : vector<2x32xf32>, vector<32x32xf32>, vector<2x32xf32> -> vector<2x32xf32>
    %c232 = arith.constant 232 : index
    %c0_85 = arith.constant 0 : index
    %130 = vector.load %arg4[%c232, %c0_85] : memref<504x128xf32, #tpu.memory_space<vmem>>, vector<1x32xf32>
    %131 = vector.broadcast %130 : vector<1x32xf32> to vector<2x32xf32>
    %132 = arith.addf %129, %131 : vector<2x32xf32>
    %cst_86 = arith.constant 0.000000e+00 : f32
    %133 = vector.broadcast %cst_86 : f32 to vector<2x32xf32>
    %134 = arith.cmpf oge, %132, %133 : vector<2x32xf32>
    %cst_87 = arith.constant 0.00999999977 : f32
    %135 = vector.broadcast %cst_87 : f32 to vector<2x32xf32>
    %136 = arith.mulf %135, %132 : vector<2x32xf32>
    %137 = arith.select %134, %132, %136 : vector<2x32xi1>, vector<2x32xf32>
    %138 = vector.extract_strided_slice %137 {offsets = [0, 0], sizes = [2, 16], strides = [1, 1]} : vector<2x32xf32> to vector<2x16xf32>
    %c0_88 = arith.constant 0 : index
    %c0_89 = arith.constant 0 : index
    %139 = vector.load %arg13[%c0_88, %c0_89] : memref<4x16xf32, #tpu.memory_space<vmem>>, vector<2x16xf32>
    tpu.vector_store %arg13[%c0_88, %c0_89], %138 {strides = array<i32>} : memref<4x16xf32, #tpu.memory_space<vmem>>, vector<2x16xf32>,
    %140 = vector.extract_strided_slice %137 {offsets = [0, 16], sizes = [2, 16], strides = [1, 1]} : vector<2x32xf32> to vector<2x16xf32>
    %c2 = arith.constant 2 : index
    %c0_90 = arith.constant 0 : index
    %141 = vector.load %arg13[%c2, %c0_90] : memref<4x16xf32, #tpu.memory_space<vmem>>, vector<2x16xf32>
    tpu.vector_store %arg13[%c2, %c0_90], %140 {strides = array<i32>} : memref<4x16xf32, #tpu.memory_space<vmem>>, vector<2x16xf32>,
    %c0_91 = arith.constant 0 : index
    %c0_92 = arith.constant 0 : index
    %142 = vector.load %arg13[%c0_91, %c0_92] : memref<4x16xf32, #tpu.memory_space<vmem>>, vector<4x16xf32>
    %c0_93 = arith.constant 0 : index
    %c0_94 = arith.constant 0 : index
    %143 = vector.load %arg6[%c0_93, %c0_94] : memref<16x384xf32, #tpu.memory_space<vmem>>, vector<16x384xf32>
    %cst_95 = arith.constant dense<0.000000e+00> : vector<4x384xf32>
    %144 = tpu.matmul %142, %143, %cst_95 {dimension_numbers = #tpu.dot_dimension_numbers<[1], [0], [0], [1], [0, 0, 1, 1], [], []>} : vector<4x16xf32>, vector<16x384xf32>, vector<4x384xf32> -> vector<4x384xf32>
    %c0_96 = arith.constant 0 : index
    %c0_97 = arith.constant 0 : index
    %145 = vector.load %arg5[%c0_96, %c0_97] : memref<4x256xf32, #tpu.memory_space<vmem>>, vector<1x128xf32>
    %146 = vector.shape_cast %145 : vector<1x128xf32> to vector<1x128xf32>
    %147 = vector.broadcast %146 : vector<1x128xf32> to vector<8x128xf32>
    %c240 = arith.constant 240 : index
    %c0_98 = arith.constant 0 : index
    %148 = vector.load %arg4[%c240, %c0_98] : memref<504x128xf32, #tpu.memory_space<vmem>>, vector<8x4xf32>
    %149 = vector.extract_strided_slice %144 {offsets = [0, 0], sizes = [4, 128], strides = [1, 1]} : vector<4x384xf32> to vector<4x128xf32>
    %cst_99 = arith.constant dense<0.000000e+00> : vector<8x128xf32>
    %150 = tpu.matmul %148, %149, %cst_99 {dimension_numbers = #tpu.dot_dimension_numbers<[1], [0], [0], [1], [0, 0, 1, 1], [], []>} : vector<8x4xf32>, vector<4x128xf32>, vector<8x128xf32> -> vector<8x128xf32>
    %151 = arith.addf %147, %150 : vector<8x128xf32>
    %c248 = arith.constant 248 : index
    %c0_100 = arith.constant 0 : index
    %152 = vector.load %arg4[%c248, %c0_100] : memref<504x128xf32, #tpu.memory_space<vmem>>, vector<8x4xf32>
    %153 = vector.extract_strided_slice %144 {offsets = [0, 128], sizes = [4, 128], strides = [1, 1]} : vector<4x384xf32> to vector<4x128xf32>
    %cst_101 = arith.constant dense<0.000000e+00> : vector<8x128xf32>
    %154 = tpu.matmul %152, %153, %cst_101 {dimension_numbers = #tpu.dot_dimension_numbers<[1], [0], [0], [1], [0, 0, 1, 1], [], []>} : vector<8x4xf32>, vector<4x128xf32>, vector<8x128xf32> -> vector<8x128xf32>
    %155 = arith.addf %151, %154 : vector<8x128xf32>
    %c256 = arith.constant 256 : index
    %c0_102 = arith.constant 0 : index
    %156 = vector.load %arg4[%c256, %c0_102] : memref<504x128xf32, #tpu.memory_space<vmem>>, vector<8x4xf32>
    %157 = vector.extract_strided_slice %144 {offsets = [0, 256], sizes = [4, 128], strides = [1, 1]} : vector<4x384xf32> to vector<4x128xf32>
    %cst_103 = arith.constant dense<0.000000e+00> : vector<8x128xf32>
    %158 = tpu.matmul %156, %157, %cst_103 {dimension_numbers = #tpu.dot_dimension_numbers<[1], [0], [0], [1], [0, 0, 1, 1], [], []>} : vector<8x4xf32>, vector<4x128xf32>, vector<8x128xf32> -> vector<8x128xf32>
    %159 = arith.addf %155, %158 : vector<8x128xf32>
    %160 = vector.extract_strided_slice %159 {offsets = [0, 0], sizes = [8, 64], strides = [1, 1]} : vector<8x128xf32> to vector<8x64xf32>
    %cst_104 = arith.constant 0.000000e+00 : f32
    %161 = vector.broadcast %cst_104 : f32 to vector<8x64xf32>
    %162 = arith.cmpf oge, %160, %161 : vector<8x64xf32>
    %cst_105 = arith.constant 0.00999999977 : f32
    %163 = vector.broadcast %cst_105 : f32 to vector<8x64xf32>
    %164 = arith.mulf %163, %160 : vector<8x64xf32>
    %165 = arith.select %162, %160, %164 : vector<8x64xi1>, vector<8x64xf32>
    %c0_106 = arith.constant 0 : index
    %c0_107 = arith.constant 0 : index
    %166 = vector.load %arg7[%c0_106, %c0_107] : memref<64x768xf32, #tpu.memory_space<vmem>>, vector<64x768xf32>
    %cst_108 = arith.constant dense<0.000000e+00> : vector<8x768xf32>
    %167 = tpu.matmul %165, %166, %cst_108 {dimension_numbers = #tpu.dot_dimension_numbers<[1], [0], [0], [1], [0, 0, 1, 1], [], []>} : vector<8x64xf32>, vector<64x768xf32>, vector<8x768xf32> -> vector<8x768xf32>
    %c1_109 = arith.constant 1 : index
    %c0_110 = arith.constant 0 : index
    %168 = vector.load %arg5[%c1_109, %c0_110] : memref<4x256xf32, #tpu.memory_space<vmem>>, vector<1x256xf32>
    %169 = vector.shape_cast %168 : vector<1x256xf32> to vector<1x256xf32>
    %170 = vector.broadcast %169 : vector<1x256xf32> to vector<16x256xf32>
    %c264 = arith.constant 264 : index
    %c0_111 = arith.constant 0 : index
    %171 = vector.load %arg4[%c264, %c0_111] : memref<504x128xf32, #tpu.memory_space<vmem>>, vector<16x8xf32>
    %172 = vector.extract_strided_slice %167 {offsets = [0, 0], sizes = [8, 256], strides = [1, 1]} : vector<8x768xf32> to vector<8x256xf32>
    %cst_112 = arith.constant dense<0.000000e+00> : vector<16x256xf32>
    %173 = tpu.matmul %171, %172, %cst_112 {dimension_numbers = #tpu.dot_dimension_numbers<[1], [0], [0], [1], [0, 0, 1, 1], [], []>} : vector<16x8xf32>, vector<8x256xf32>, vector<16x256xf32> -> vector<16x256xf32>
    %174 = arith.addf %170, %173 : vector<16x256xf32>
    %c280 = arith.constant 280 : index
    %c0_113 = arith.constant 0 : index
    %175 = vector.load %arg4[%c280, %c0_113] : memref<504x128xf32, #tpu.memory_space<vmem>>, vector<16x8xf32>
    %176 = vector.extract_strided_slice %167 {offsets = [0, 256], sizes = [8, 256], strides = [1, 1]} : vector<8x768xf32> to vector<8x256xf32>
    %cst_114 = arith.constant dense<0.000000e+00> : vector<16x256xf32>
    %177 = tpu.matmul %175, %176, %cst_114 {dimension_numbers = #tpu.dot_dimension_numbers<[1], [0], [0], [1], [0, 0, 1, 1], [], []>} : vector<16x8xf32>, vector<8x256xf32>, vector<16x256xf32> -> vector<16x256xf32>
    %178 = arith.addf %174, %177 : vector<16x256xf32>
    %c296 = arith.constant 296 : index
    %c0_115 = arith.constant 0 : index
    %179 = vector.load %arg4[%c296, %c0_115] : memref<504x128xf32, #tpu.memory_space<vmem>>, vector<16x8xf32>
    %180 = vector.extract_strided_slice %167 {offsets = [0, 512], sizes = [8, 256], strides = [1, 1]} : vector<8x768xf32> to vector<8x256xf32>
    %cst_116 = arith.constant dense<0.000000e+00> : vector<16x256xf32>
    %181 = tpu.matmul %179, %180, %cst_116 {dimension_numbers = #tpu.dot_dimension_numbers<[1], [0], [0], [1], [0, 0, 1, 1], [], []>} : vector<16x8xf32>, vector<8x256xf32>, vector<16x256xf32> -> vector<16x256xf32>
    %182 = arith.addf %178, %181 : vector<16x256xf32>
    %cst_117 = arith.constant 0.000000e+00 : f32
    %183 = vector.broadcast %cst_117 : f32 to vector<16x256xf32>
    %184 = arith.cmpf oge, %182, %183 : vector<16x256xf32>
    %cst_118 = arith.constant 0.00999999977 : f32
    %185 = vector.broadcast %cst_118 : f32 to vector<16x256xf32>
    %186 = arith.mulf %185, %182 : vector<16x256xf32>
    %187 = arith.select %184, %182, %186 : vector<16x256xi1>, vector<16x256xf32>
    %c0_119 = arith.constant 0 : index
    %c0_120 = arith.constant 0 : index
    %188 = vector.load %arg8[%c0_119, %c0_120] : memref<256x768xf32, #tpu.memory_space<vmem>>, vector<256x768xf32>
    %cst_121 = arith.constant dense<0.000000e+00> : vector<16x768xf32>
    %189 = tpu.matmul %187, %188, %cst_121 {dimension_numbers = #tpu.dot_dimension_numbers<[1], [0], [0], [1], [0, 0, 1, 1], [], []>} : vector<16x256xf32>, vector<256x768xf32>, vector<16x768xf32> -> vector<16x768xf32>
    %c2_122 = arith.constant 2 : index
    %c0_123 = arith.constant 0 : index
    %190 = vector.load %arg5[%c2_122, %c0_123] : memref<4x256xf32, #tpu.memory_space<vmem>>, vector<1x256xf32>
    %191 = vector.shape_cast %190 : vector<1x256xf32> to vector<1x256xf32>
    %192 = vector.broadcast %191 : vector<1x256xf32> to vector<32x256xf32>
    %c312 = arith.constant 312 : index
    %c0_124 = arith.constant 0 : index
    %193 = vector.load %arg4[%c312, %c0_124] : memref<504x128xf32, #tpu.memory_space<vmem>>, vector<32x16xf32>
    %194 = vector.extract_strided_slice %189 {offsets = [0, 0], sizes = [16, 256], strides = [1, 1]} : vector<16x768xf32> to vector<16x256xf32>
    %cst_125 = arith.constant dense<0.000000e+00> : vector<32x256xf32>
    %195 = tpu.matmul %193, %194, %cst_125 {dimension_numbers = #tpu.dot_dimension_numbers<[1], [0], [0], [1], [0, 0, 1, 1], [], []>} : vector<32x16xf32>, vector<16x256xf32>, vector<32x256xf32> -> vector<32x256xf32>
    %196 = arith.addf %192, %195 : vector<32x256xf32>
    %c344 = arith.constant 344 : index
    %c0_126 = arith.constant 0 : index
    %197 = vector.load %arg4[%c344, %c0_126] : memref<504x128xf32, #tpu.memory_space<vmem>>, vector<32x16xf32>
    %198 = vector.extract_strided_slice %189 {offsets = [0, 256], sizes = [16, 256], strides = [1, 1]} : vector<16x768xf32> to vector<16x256xf32>
    %cst_127 = arith.constant dense<0.000000e+00> : vector<32x256xf32>
    %199 = tpu.matmul %197, %198, %cst_127 {dimension_numbers = #tpu.dot_dimension_numbers<[1], [0], [0], [1], [0, 0, 1, 1], [], []>} : vector<32x16xf32>, vector<16x256xf32>, vector<32x256xf32> -> vector<32x256xf32>
    %200 = arith.addf %196, %199 : vector<32x256xf32>
    %c376 = arith.constant 376 : index
    %c0_128 = arith.constant 0 : index
    %201 = vector.load %arg4[%c376, %c0_128] : memref<504x128xf32, #tpu.memory_space<vmem>>, vector<32x16xf32>
    %202 = vector.extract_strided_slice %189 {offsets = [0, 512], sizes = [16, 256], strides = [1, 1]} : vector<16x768xf32> to vector<16x256xf32>
    %cst_129 = arith.constant dense<0.000000e+00> : vector<32x256xf32>
    %203 = tpu.matmul %201, %202, %cst_129 {dimension_numbers = #tpu.dot_dimension_numbers<[1], [0], [0], [1], [0, 0, 1, 1], [], []>} : vector<32x16xf32>, vector<16x256xf32>, vector<32x256xf32> -> vector<32x256xf32>
    %204 = arith.addf %200, %203 : vector<32x256xf32>
    %cst_130 = arith.constant 0.000000e+00 : f32
    %205 = vector.broadcast %cst_130 : f32 to vector<32x256xf32>
    %206 = arith.cmpf oge, %204, %205 : vector<32x256xf32>
    %cst_131 = arith.constant 0.00999999977 : f32
    %207 = vector.broadcast %cst_131 : f32 to vector<32x256xf32>
    %208 = arith.mulf %207, %204 : vector<32x256xf32>
    %209 = arith.select %206, %204, %208 : vector<32x256xi1>, vector<32x256xf32>
    %c0_132 = arith.constant 0 : index
    %c0_133 = arith.constant 0 : index
    %210 = vector.load %arg9[%c0_132, %c0_133] : memref<256x384xf32, #tpu.memory_space<vmem>>, vector<256x384xf32>
    %cst_134 = arith.constant dense<0.000000e+00> : vector<32x384xf32>
    %211 = tpu.matmul %209, %210, %cst_134 {dimension_numbers = #tpu.dot_dimension_numbers<[1], [0], [0], [1], [0, 0, 1, 1], [], []>} : vector<32x256xf32>, vector<256x384xf32>, vector<32x384xf32> -> vector<32x384xf32>
    %c3 = arith.constant 3 : index
    %c0_135 = arith.constant 0 : index
    %212 = vector.load %arg5[%c3, %c0_135] : memref<4x256xf32, #tpu.memory_space<vmem>>, vector<1x128xf32>
    %213 = vector.shape_cast %212 : vector<1x128xf32> to vector<1x128xf32>
    %214 = vector.broadcast %213 : vector<1x128xf32> to vector<32x128xf32>
    %c408 = arith.constant 408 : index
    %c0_136 = arith.constant 0 : index
    %215 = vector.load %arg4[%c408, %c0_136] : memref<504x128xf32, #tpu.memory_space<vmem>>, vector<32x32xf32>
    %216 = vector.extract_strided_slice %211 {offsets = [0, 0], sizes = [32, 128], strides = [1, 1]} : vector<32x384xf32> to vector<32x128xf32>
    %cst_137 = arith.constant dense<0.000000e+00> : vector<32x128xf32>
    %217 = tpu.matmul %215, %216, %cst_137 {dimension_numbers = #tpu.dot_dimension_numbers<[1], [0], [0], [1], [0, 0, 1, 1], [], []>} : vector<32x32xf32>, vector<32x128xf32>, vector<32x128xf32> -> vector<32x128xf32>
    %218 = arith.addf %214, %217 : vector<32x128xf32>
    %c440 = arith.constant 440 : index
    %c0_138 = arith.constant 0 : index
    %219 = vector.load %arg4[%c440, %c0_138] : memref<504x128xf32, #tpu.memory_space<vmem>>, vector<32x32xf32>
    %220 = vector.extract_strided_slice %211 {offsets = [0, 128], sizes = [32, 128], strides = [1, 1]} : vector<32x384xf32> to vector<32x128xf32>
    %cst_139 = arith.constant dense<0.000000e+00> : vector<32x128xf32>
    %221 = tpu.matmul %219, %220, %cst_139 {dimension_numbers = #tpu.dot_dimension_numbers<[1], [0], [0], [1], [0, 0, 1, 1], [], []>} : vector<32x32xf32>, vector<32x128xf32>, vector<32x128xf32> -> vector<32x128xf32>
    %222 = arith.addf %218, %221 : vector<32x128xf32>
    %c472 = arith.constant 472 : index
    %c0_140 = arith.constant 0 : index
    %223 = vector.load %arg4[%c472, %c0_140] : memref<504x128xf32, #tpu.memory_space<vmem>>, vector<32x32xf32>
    %224 = vector.extract_strided_slice %211 {offsets = [0, 256], sizes = [32, 128], strides = [1, 1]} : vector<32x384xf32> to vector<32x128xf32>
    %cst_141 = arith.constant dense<0.000000e+00> : vector<32x128xf32>
    %225 = tpu.matmul %223, %224, %cst_141 {dimension_numbers = #tpu.dot_dimension_numbers<[1], [0], [0], [1], [0, 0, 1, 1], [], []>} : vector<32x32xf32>, vector<32x128xf32>, vector<32x128xf32> -> vector<32x128xf32>
    %226 = arith.addf %222, %225 : vector<32x128xf32>
    %227 = vector.extract_strided_slice %226 {offsets = [0, 0], sizes = [32, 64], strides = [1, 1]} : vector<32x128xf32> to vector<32x64xf32>
    %c0_142 = arith.constant 0 : index
    %c0_143 = arith.constant 0 : index
    %c0_144 = arith.constant 0 : index
    %228 = vector.load %arg10[%c0_142, %c0_143, %c0_144] : memref<1x32x128xf32, #tpu.memory_space<vmem>>, vector<1x32x64xf32>
    %229 = vector.shape_cast %228 : vector<1x32x64xf32> to vector<32x64xf32>
    %230 = vector.shape_cast %227 : vector<32x64xf32> to vector<1x32x64xf32>
    tpu.vector_store %arg10[%c0_142, %c0_143, %c0_144], %230 {strides = array<i32>} : memref<1x32x128xf32, #tpu.memory_space<vmem>>, vector<1x32x64xf32>,
    %cst_145 = arith.constant 0.000000e+00 : f32
    %231 = vector.broadcast %cst_145 : f32 to vector<32x64xf32>
    %232 = arith.subf %231, %227 : vector<32x64xf32>
    %233 = math.exp %232 : vector<32x64xf32>
    %cst_146 = arith.constant 1.000000e+00 : f32
    %234 = vector.broadcast %cst_146 : f32 to vector<32x64xf32>
    %235 = arith.addf %234, %233 : vector<32x64xf32>
    %cst_147 = arith.constant 1.000000e+00 : f32
    %236 = vector.broadcast %cst_147 : f32 to vector<32x64xf32>
    %237 = arith.divf %236, %235 : vector<32x64xf32>
    %c0_148 = arith.constant 0 : index
    %c0_149 = arith.constant 0 : index
    %c64 = arith.constant 64 : index
    %238 = vector.load %arg10[%c0_148, %c0_149, %c64] : memref<1x32x128xf32, #tpu.memory_space<vmem>>, vector<1x32x64xf32>
    %239 = vector.shape_cast %238 : vector<1x32x64xf32> to vector<32x64xf32>
    %240 = vector.shape_cast %237 : vector<32x64xf32> to vector<1x32x64xf32>
    tpu.vector_store %arg10[%c0_148, %c0_149, %c64], %240 {strides = array<i32>} : memref<1x32x128xf32, #tpu.memory_space<vmem>>, vector<1x32x64xf32>,
    return
  }
  func.func @transform_0(%arg0: i32) -> (i32, i32, i32) {
    %c0_i32 = arith.constant 0 : i32
    %c0_i32_0 = arith.constant 0 : i32
    %c0_i32_1 = arith.constant 0 : i32
    return %arg0, %c0_i32, %c0_i32_0 : i32, i32, i32
  }
  func.func @transform_1(%arg0: i32) -> (i32, i32, i32) {
    %c0_i32 = arith.constant 0 : i32
    %c0_i32_0 = arith.constant 0 : i32
    %c0_i32_1 = arith.constant 0 : i32
    return %arg0, %c0_i32, %c0_i32_0 : i32, i32, i32
  }
  func.func @transform_2(%arg0: i32) -> (i32, i32, i32, i32) {
    %c0_i32 = arith.constant 0 : i32
    %c0_i32_0 = arith.constant 0 : i32
    %c0_i32_1 = arith.constant 0 : i32
    %c0_i32_2 = arith.constant 0 : i32
    %c0_i32_3 = arith.constant 0 : i32
    return %c0_i32, %c0_i32_0, %c0_i32_1, %c0_i32_2 : i32, i32, i32, i32
  }
  func.func @transform_3(%arg0: i32) -> (i32, i32) {
    %c0_i32 = arith.constant 0 : i32
    %c0_i32_0 = arith.constant 0 : i32
    %c0_i32_1 = arith.constant 0 : i32
    return %c0_i32, %c0_i32_0 : i32, i32
  }
  func.func @transform_4(%arg0: i32) -> (i32, i32) {
    %c0_i32 = arith.constant 0 : i32
    %c0_i32_0 = arith.constant 0 : i32
    %c0_i32_1 = arith.constant 0 : i32
    return %c0_i32, %c0_i32_0 : i32, i32
  }
  func.func @transform_5(%arg0: i32) -> (i32, i32) {
    %c0_i32 = arith.constant 0 : i32
    %c0_i32_0 = arith.constant 0 : i32
    %c0_i32_1 = arith.constant 0 : i32
    return %c0_i32, %c0_i32_0 : i32, i32
  }
  func.func @transform_6(%arg0: i32) -> (i32, i32) {
    %c0_i32 = arith.constant 0 : i32
    %c0_i32_0 = arith.constant 0 : i32
    %c0_i32_1 = arith.constant 0 : i32
    return %c0_i32, %c0_i32_0 : i32, i32
  }
  func.func @transform_7(%arg0: i32) -> (i32, i32) {
    %c0_i32 = arith.constant 0 : i32
    %c0_i32_0 = arith.constant 0 : i32
    %c0_i32_1 = arith.constant 0 : i32
    return %c0_i32, %c0_i32_0 : i32, i32
  }
  func.func @transform_8(%arg0: i32) -> (i32, i32) {
    %c0_i32 = arith.constant 0 : i32
    %c0_i32_0 = arith.constant 0 : i32
    %c0_i32_1 = arith.constant 0 : i32
    return %c0_i32, %c0_i32_0 : i32, i32
  }
  func.func @transform_9(%arg0: i32) -> (i32, i32, i32) {
    %c0_i32 = arith.constant 0 : i32
    %c0_i32_0 = arith.constant 0 : i32
    %c0_i32_1 = arith.constant 0 : i32
    return %arg0, %c0_i32, %c0_i32_0 : i32, i32, i32
  }
  func.func @transform_10(%arg0: i32) -> (i32, i32, i32, i32) {
    %c0_i32 = arith.constant 0 : i32
    %c0_i32_0 = arith.constant 0 : i32
    %c0_i32_1 = arith.constant 0 : i32
    %c0_i32_2 = arith.constant 0 : i32
    %c0_i32_3 = arith.constant 0 : i32
    return %c0_i32, %c0_i32_0, %c0_i32_1, %c0_i32_2 : i32, i32, i32, i32
  }
}

</mosaic_0001>

<bundles_post_ra>
// kernel: squeeze.5
= control target key start
LH: loop header
LB: loop body
LE: loop exit
PB: predicated region body
PF: predicated region fallthrough
CT: control target
= control target key end

     0   :  { %s588_s10 = smov 112   ;;  %vm3_vm0 = vcmask 130048   ;;  %s855_s0 = inlined_call_operand.vmem [shape: f32[1,32,64], index: 0, kind: input, shape index: {}]   ;;  %s856_s1 = inlined_call_operand.vmem [shape: f32[2,1,16,16,4], index: 1, kind: output, shape index: {}]  }
   0x1   :  { %v518_v0 = vld [vmem:[%s855_s0 + $0x10] sm:$0xff]   ;;  %v55_v1 = vld [vmem:[%s855_s0] sm:$0xff]   ;;  %v519_v3 = vld [vmem:[%s855_s0 + $0x18] sm:$0xff]  }
   0x2   :  { %74 = vrot.lane.b32.xlu1 %v518_v0, %s588_s10  ;;  %56 = vrot.lane.b32.xlu0 %v55_v1, %s588_s10  ;;  %v520_v2 = vld [vmem:[%s855_s0 + $0x20] sm:$0xff]   ;;  %v517_v4 = vld [vmem:[%s855_s0 + $0x8] sm:$0xff]   ;;  %17 = vst.msk [vmem:[#allocation0 + $0x80] ss:$8 sm:$0xf] %vm3_vm0, %v518_v0  }
   0x3   :  { %92 = vrot.lane.b32.xlu2 %v520_v2, %s588_s10  ;;  %v521_v5 = vld [vmem:[%s855_s0 + $0x28] sm:$0xff]   ;;  %v523_v6 = vld [vmem:[%s855_s0 + $0x38] sm:$0xff]   ;;  %v522_v7 = vld [vmem:[%s855_s0 + $0x30] sm:$0xff]   ;;  %19 = vst.msk [vmem:[#allocation0 + $0x80] ss:$8 sm:$0xf0] %vm3_vm0, %v518_v0  }
   0x4   :  { %4 = vst.msk [vmem:[#allocation0] ss:$8 sm:$0xf] %vm3_vm0, %v55_v1  }
   0x5   :  { %5 = vst.msk [vmem:[#allocation0] ss:$8 sm:$0xf0] %vm3_vm0, %v55_v1  }
   0x6   :  { %31 = vst.msk [vmem:[#allocation0 + $0x100] ss:$8 sm:$0xf] %vm3_vm0, %v520_v2  }
   0x7   :  { %33 = vst.msk [vmem:[#allocation0 + $0x100] ss:$8 sm:$0xf0] %vm3_vm0, %v520_v2  }
   0x8   :  { %24 = vst.msk [vmem:[#allocation0 + $0xc0] ss:$8 sm:$0xf] %vm3_vm0, %v519_v3  }
   0x9   :  { %26 = vst.msk [vmem:[#allocation0 + $0xc0] ss:$8 sm:$0xf0] %vm3_vm0, %v519_v3  }
   0xa   :  { %83 = vrot.lane.b32.xlu1 %v519_v3, %s588_s10  ;;  %65 = vrot.lane.b32.xlu0 %v517_v4, %s588_s10  ;;  %10 = vst.msk [vmem:[#allocation0 + $0x40] ss:$8 sm:$0xf] %vm3_vm0, %v517_v4  }
   0xb   :  { %101 = vrot.lane.b32.xlu2 %v521_v5, %s588_s10  ;;  %12 = vst.msk [vmem:[#allocation0 + $0x40] ss:$8 sm:$0xf0] %vm3_vm0, %v517_v4  }
   0xc   :  { %38 = vst.msk [vmem:[#allocation0 + $0x140] ss:$8 sm:$0xf] %vm3_vm0, %v521_v5  }
   0xd   :  { %40 = vst.msk [vmem:[#allocation0 + $0x140] ss:$8 sm:$0xf0] %vm3_vm0, %v521_v5  }
   0xe   :  { %52 = vst.msk [vmem:[#allocation0 + $0x1c0] ss:$8 sm:$0xf] %vm3_vm0, %v523_v6  }
   0xf   :  { %54 = vst.msk [vmem:[#allocation0 + $0x1c0] ss:$8 sm:$0xf0] %vm3_vm0, %v523_v6  }
  0x10   :  { %45 = vst.msk [vmem:[#allocation0 + $0x180] ss:$8 sm:$0xf] %vm3_vm0, %v522_v7  }
  0x11   :  { %47 = vst.msk [vmem:[#allocation0 + $0x180] ss:$8 sm:$0xf0] %vm3_vm0, %v522_v7  }
  0x12   :  { %119 = vrot.lane.b32.xlu1 %v523_v6, %s588_s10  ;;  %110 = vrot.lane.b32.xlu0 %v522_v7, %s588_s10 }
  0x5d   :  { %v93_v8 = vpop.permute.xlu2 %92  }
  0x5e   :  { %96 = vst.msk [vmem:[#allocation0 + $0x101] ss:$8 sm:$0xf] %vm3_vm0, %v93_v8  }
  0x5f   :  { %98 = vst.msk [vmem:[#allocation0 + $0x101] ss:$8 sm:$0xf0] %vm3_vm0, %v93_v8  }
  0x65   :  { %v319_v9 = vld [vmem:[#allocation0 + $0x100] sm:$0x3]  ;;  %v325_v12 = vld [vmem:[#allocation0 + $0x108] sm:$0x3]  ;;  %v331_v13 = vld [vmem:[#allocation0 + $0x110] sm:$0x3]  ;;  %v102_v31 = vpop.permute.xlu2 %101  }
  0x66   :  { %555 = vst [vmem:[%s856_s1 + $0x40] sm:$0x3] %v319_v9  ;;  %v337_v14 = vld [vmem:[#allocation0 + $0x118] sm:$0x3]  ;;  %v343_v35 = vld [vmem:[#allocation0 + $0x120] sm:$0x3] }
  0x67   :  { %556 = vst [vmem:[%s856_s1 + $0x42] sm:$0x3] %v325_v12  ;;  %v349_v36 = vld [vmem:[#allocation0 + $0x128] sm:$0x3]  ;;  %v355_v37 = vld [vmem:[#allocation0 + $0x130] sm:$0x3] }
  0x68   :  { %557 = vst [vmem:[%s856_s1 + $0x44] sm:$0x3] %v331_v13  ;;  %v361_v38 = vld [vmem:[#allocation0 + $0x138] sm:$0x3] }
  0x69   :  { %558 = vst [vmem:[%s856_s1 + $0x46] sm:$0x3] %v337_v14 }
  0x6a   :  { %559 = vst [vmem:[%s856_s1 + $0x48] sm:$0x3] %v343_v35 }
  0x6b   :  { %560 = vst [vmem:[%s856_s1 + $0x4a] sm:$0x3] %v349_v36 }
  0x6c   :  { %561 = vst [vmem:[%s856_s1 + $0x4c] sm:$0x3] %v355_v37 }
  0x6d   :  { %562 = vst [vmem:[%s856_s1 + $0x4e] sm:$0x3] %v361_v38 }
  0x6e   :  { %105 = vst.msk [vmem:[#allocation0 + $0x141] ss:$8 sm:$0xf] %vm3_vm0, %v102_v31  }
  0x6f   :  { %107 = vst.msk [vmem:[#allocation0 + $0x141] ss:$8 sm:$0xf0] %vm3_vm0, %v102_v31  }
  0x74   :  { %v75_v10 = vpop.permute.xlu1 %74   ;;  %v57_v11 = vpop.permute.xlu0 %56  }
  0x75   :  { %78 = vst.msk [vmem:[#allocation0 + $0x81] ss:$8 sm:$0xf] %vm3_vm0, %v75_v10   ;;  %v367_v56 = vld [vmem:[#allocation0 + $0x140] sm:$0x3] }
  0x76   :  { %80 = vst.msk [vmem:[#allocation0 + $0x81] ss:$8 sm:$0xf0] %vm3_vm0, %v75_v10   ;;  %v373_v57 = vld [vmem:[#allocation0 + $0x148] sm:$0x3] }
  0x77   :  { %60 = vst.msk [vmem:[#allocation0 + $0x1] ss:$8 sm:$0xf] %vm3_vm0, %v57_v11   ;;  %v379_v58 = vld [vmem:[#allocation0 + $0x150] sm:$0x3] }
  0x78   :  { %62 = vst.msk [vmem:[#allocation0 + $0x1] ss:$8 sm:$0xf0] %vm3_vm0, %v57_v11   ;;  %v385_v59 = vld [vmem:[#allocation0 + $0x158] sm:$0x3] }
  0x79   :  { %563 = vst [vmem:[%s856_s1 + $0x50] sm:$0x3] %v367_v56  ;;  %v391_v60 = vld [vmem:[#allocation0 + $0x160] sm:$0x3]  ;;  %v397_v61 = vld [vmem:[#allocation0 + $0x168] sm:$0x3] }
  0x7a   :  { %564 = vst [vmem:[%s856_s1 + $0x52] sm:$0x3] %v373_v57  ;;  %v403_v62 = vld [vmem:[#allocation0 + $0x170] sm:$0x3]  ;;  %v409_v63 = vld [vmem:[#allocation0 + $0x178] sm:$0x3] }
  0x7b   :  { %565 = vst [vmem:[%s856_s1 + $0x54] sm:$0x3] %v379_v58 }
  0x7c   :  { %v223_v15 = vld [vmem:[#allocation0 + $0x80] sm:$0x3]  ;;  %v229_v16 = vld [vmem:[#allocation0 + $0x88] sm:$0x3]  ;;  %v235_v17 = vld [vmem:[#allocation0 + $0x90] sm:$0x3]  ;;  %v84_v18 = vpop.permute.xlu1 %83   ;;  %v66_v19 = vpop.permute.xlu0 %65  }
  0x7d   :  { %539 = vst [vmem:[%s856_s1 + $0x20] sm:$0x3] %v223_v15  ;;  %v241_v20 = vld [vmem:[#allocation0 + $0x98] sm:$0x3]  ;;  %v247_v21 = vld [vmem:[#allocation0 + $0xa0] sm:$0x3] }
  0x7e   :  { %540 = vst [vmem:[%s856_s1 + $0x22] sm:$0x3] %v229_v16  ;;  %v253_v22 = vld [vmem:[#allocation0 + $0xa8] sm:$0x3]  ;;  %v259_v23 = vld [vmem:[#allocation0 + $0xb0] sm:$0x3] }
  0x7f   :  { %541 = vst [vmem:[%s856_s1 + $0x24] sm:$0x3] %v235_v17  ;;  %v265_v24 = vld [vmem:[#allocation0 + $0xb8] sm:$0x3]  ;;  %v128_v25 = vld [vmem:[#allocation0] sm:$0x3] }
  0x80   :  { %542 = vst [vmem:[%s856_s1 + $0x26] sm:$0x3] %v241_v20  ;;  %v133_v26 = vld [vmem:[#allocation0 + $0x8] sm:$0x3]  ;;  %v139_v27 = vld [vmem:[#allocation0 + $0x10] sm:$0x3] }
  0x81   :  { %543 = vst [vmem:[%s856_s1 + $0x28] sm:$0x3] %v247_v21  ;;  %v145_v28 = vld [vmem:[#allocation0 + $0x18] sm:$0x3]  ;;  %v151_v29 = vld [vmem:[#allocation0 + $0x20] sm:$0x3] }
  0x82   :  { %544 = vst [vmem:[%s856_s1 + $0x2a] sm:$0x3] %v253_v22  ;;  %v157_v30 = vld [vmem:[#allocation0 + $0x28] sm:$0x3]  ;;  %v163_v33 = vld [vmem:[#allocation0 + $0x30] sm:$0x3] }
  0x83   :  { %545 = vst [vmem:[%s856_s1 + $0x2c] sm:$0x3] %v259_v23  ;;  %v169_v34 = vld [vmem:[#allocation0 + $0x38] sm:$0x3] }
  0x84   :  { %546 = vst [vmem:[%s856_s1 + $0x2e] sm:$0x3] %v265_v24  ;;  %v690_v32 = vpop.permute.xlu1 %119   ;;  %v722_v39 = vpop.permute.xlu0 %110  }
  0x85   :  { %131 = vst [vmem:[%s856_s1] sm:$0x3] %v128_v25 }
  0x86   :  { %524 = vst [vmem:[%s856_s1 + $0x2] sm:$0x3] %v133_v26 }
  0x87   :  { %525 = vst [vmem:[%s856_s1 + $0x4] sm:$0x3] %v139_v27 }
  0x88   :  { %526 = vst [vmem:[%s856_s1 + $0x6] sm:$0x3] %v145_v28 }
  0x89   :  { %527 = vst [vmem:[%s856_s1 + $0x8] sm:$0x3] %v151_v29 }
  0x8a   :  { %528 = vst [vmem:[%s856_s1 + $0xa] sm:$0x3] %v157_v30 }
  0x8b   :  { %529 = vst [vmem:[%s856_s1 + $0xc] sm:$0x3] %v163_v33 }
  0x8c   :  { %530 = vst [vmem:[%s856_s1 + $0xe] sm:$0x3] %v169_v34 }
  0x8d   :  { %87 = vst.msk [vmem:[#allocation0 + $0xc1] ss:$8 sm:$0xf] %vm3_vm0, %v84_v18  }
  0x8e   :  { %89 = vst.msk [vmem:[#allocation0 + $0xc1] ss:$8 sm:$0xf0] %vm3_vm0, %v84_v18  }
  0x8f   :  { %69 = vst.msk [vmem:[#allocation0 + $0x41] ss:$8 sm:$0xf] %vm3_vm0, %v66_v19  }
  0x90   :  { %71 = vst.msk [vmem:[#allocation0 + $0x41] ss:$8 sm:$0xf0] %vm3_vm0, %v66_v19  }
  0x91   :  { %123 = vst.msk [vmem:[#allocation0 + $0x1c1] ss:$8 sm:$0xf] %vm3_vm0, %v690_v32  }
  0x92   :  { %566 = vst [vmem:[%s856_s1 + $0x56] sm:$0x3] %v385_v59 }
  0x93   :  { %567 = vst [vmem:[%s856_s1 + $0x58] sm:$0x3] %v391_v60 }
  0x94   :  { %v271_v40 = vld [vmem:[#allocation0 + $0xc0] sm:$0x3]  ;;  %v277_v41 = vld [vmem:[#allocation0 + $0xc8] sm:$0x3]  ;;  %v283_v42 = vld [vmem:[#allocation0 + $0xd0] sm:$0x3] }
  0x95   :  { %547 = vst [vmem:[%s856_s1 + $0x30] sm:$0x3] %v271_v40  ;;  %v289_v43 = vld [vmem:[#allocation0 + $0xd8] sm:$0x3]  ;;  %v295_v44 = vld [vmem:[#allocation0 + $0xe0] sm:$0x3] }
  0x96   :  { %548 = vst [vmem:[%s856_s1 + $0x32] sm:$0x3] %v277_v41  ;;  %v301_v45 = vld [vmem:[#allocation0 + $0xe8] sm:$0x3]  ;;  %v307_v46 = vld [vmem:[#allocation0 + $0xf0] sm:$0x3] }
  0x97   :  { %549 = vst [vmem:[%s856_s1 + $0x34] sm:$0x3] %v283_v42  ;;  %v313_v47 = vld [vmem:[#allocation0 + $0xf8] sm:$0x3]  ;;  %v175_v48 = vld [vmem:[#allocation0 + $0x40] sm:$0x3] }
  0x98   :  { %550 = vst [vmem:[%s856_s1 + $0x36] sm:$0x3] %v289_v43  ;;  %v181_v49 = vld [vmem:[#allocation0 + $0x48] sm:$0x3]  ;;  %v187_v50 = vld [vmem:[#allocation0 + $0x50] sm:$0x3] }
  0x99   :  { %551 = vst [vmem:[%s856_s1 + $0x38] sm:$0x3] %v295_v44  ;;  %v193_v51 = vld [vmem:[#allocation0 + $0x58] sm:$0x3]  ;;  %v199_v52 = vld [vmem:[#allocation0 + $0x60] sm:$0x3] }
  0x9a   :  { %552 = vst [vmem:[%s856_s1 + $0x3a] sm:$0x3] %v301_v45  ;;  %v205_v53 = vld [vmem:[#allocation0 + $0x68] sm:$0x3]  ;;  %v211_v54 = vld [vmem:[#allocation0 + $0x70] sm:$0x3] }
  0x9b   :  { %553 = vst [vmem:[%s856_s1 + $0x3c] sm:$0x3] %v307_v46  ;;  %v217_v55 = vld [vmem:[#allocation0 + $0x78] sm:$0x3]  ;;  %v463_v0 = vld [vmem:[#allocation0 + $0x1c0] sm:$0x3] }
  0x9c   :  { %554 = vst [vmem:[%s856_s1 + $0x3e] sm:$0x3] %v313_v47  ;;  %v469_v1 = vld [vmem:[#allocation0 + $0x1c8] sm:$0x3]  ;;  %v475_v2 = vld [vmem:[#allocation0 + $0x1d0] sm:$0x3] }
  0x9d   :  { %531 = vst [vmem:[%s856_s1 + $0x10] sm:$0x3] %v175_v48  ;;  %v481_v3 = vld [vmem:[#allocation0 + $0x1d8] sm:$0x3] }
  0x9e   :  { %532 = vst [vmem:[%s856_s1 + $0x12] sm:$0x3] %v181_v49 }
  0x9f   :  { %533 = vst [vmem:[%s856_s1 + $0x14] sm:$0x3] %v187_v50 }
  0xa0   :  { %534 = vst [vmem:[%s856_s1 + $0x16] sm:$0x3] %v193_v51 }
  0xa1   :  { %535 = vst [vmem:[%s856_s1 + $0x18] sm:$0x3] %v199_v52 }
  0xa2   :  { %536 = vst [vmem:[%s856_s1 + $0x1a] sm:$0x3] %v205_v53 }
  0xa3   :  { %537 = vst [vmem:[%s856_s1 + $0x1c] sm:$0x3] %v211_v54 }
  0xa4   :  { %538 = vst [vmem:[%s856_s1 + $0x1e] sm:$0x3] %v217_v55 }
  0xa5   :  { %568 = vst [vmem:[%s856_s1 + $0x5a] sm:$0x3] %v397_v61 }
  0xa6   :  { %569 = vst [vmem:[%s856_s1 + $0x5c] sm:$0x3] %v403_v62 }
  0xa7   :  { %570 = vst [vmem:[%s856_s1 + $0x5e] sm:$0x3] %v409_v63 }
  0xa8   :  { %125 = vst.msk [vmem:[#allocation0 + $0x1c1] ss:$8 sm:$0xf0] %vm3_vm0, %v690_v32  }
  0xa9   :  { %579 = vst [vmem:[%s856_s1 + $0x70] sm:$0x3] %v463_v0 }
  0xaa   :  { %580 = vst [vmem:[%s856_s1 + $0x72] sm:$0x3] %v469_v1 }
  0xab   :  { %581 = vst [vmem:[%s856_s1 + $0x74] sm:$0x3] %v475_v2 }
  0xac   :  { %582 = vst [vmem:[%s856_s1 + $0x76] sm:$0x3] %v481_v3 }
  0xad   :  { %114 = vst.msk [vmem:[#allocation0 + $0x181] ss:$8 sm:$0xf] %vm3_vm0, %v722_v39  }
  0xae   :  { %116 = vst.msk [vmem:[#allocation0 + $0x181] ss:$8 sm:$0xf0] %vm3_vm0, %v722_v39  }
  0xaf   :  { %v487_v4 = vld [vmem:[#allocation0 + $0x1e0] sm:$0x3]  ;;  %v493_v5 = vld [vmem:[#allocation0 + $0x1e8] sm:$0x3]  ;;  %v499_v6 = vld [vmem:[#allocation0 + $0x1f0] sm:$0x3] }
  0xb0   :  { %583 = vst [vmem:[%s856_s1 + $0x78] sm:$0x3] %v487_v4  ;;  %v505_v7 = vld [vmem:[#allocation0 + $0x1f8] sm:$0x3] }
  0xb1   :  { %584 = vst [vmem:[%s856_s1 + $0x7a] sm:$0x3] %v493_v5 }
  0xb2   :  { %585 = vst [vmem:[%s856_s1 + $0x7c] sm:$0x3] %v499_v6 }
  0xb3   :  { %586 = vst [vmem:[%s856_s1 + $0x7e] sm:$0x3] %v505_v7 }
  0xb4   :  { %v415_v8 = vld [vmem:[#allocation0 + $0x180] sm:$0x3]  ;;  %v421_v9 = vld [vmem:[#allocation0 + $0x188] sm:$0x3]  ;;  %v427_v10 = vld [vmem:[#allocation0 + $0x190] sm:$0x3] }
  0xb5   :  { %571 = vst [vmem:[%s856_s1 + $0x60] sm:$0x3] %v415_v8  ;;  %v433_v11 = vld [vmem:[#allocation0 + $0x198] sm:$0x3]  ;;  %v439_v12 = vld [vmem:[#allocation0 + $0x1a0] sm:$0x3] }
  0xb6   :  { %572 = vst [vmem:[%s856_s1 + $0x62] sm:$0x3] %v421_v9  ;;  %v445_v13 = vld [vmem:[#allocation0 + $0x1a8] sm:$0x3]  ;;  %v451_v14 = vld [vmem:[#allocation0 + $0x1b0] sm:$0x3] }
  0xb7   :  { %573 = vst [vmem:[%s856_s1 + $0x64] sm:$0x3] %v427_v10  ;;  %v457_v15 = vld [vmem:[#allocation0 + $0x1b8] sm:$0x3] }
  0xb8   :  { %574 = vst [vmem:[%s856_s1 + $0x66] sm:$0x3] %v433_v11 }
  0xb9   :  { %575 = vst [vmem:[%s856_s1 + $0x68] sm:$0x3] %v439_v12 }
  0xba   :  { %576 = vst [vmem:[%s856_s1 + $0x6a] sm:$0x3] %v445_v13 }
  0xbb   :  { %577 = vst [vmem:[%s856_s1 + $0x6c] sm:$0x3] %v451_v14 }
  0xbc   :  { %578 = vst [vmem:[%s856_s1 + $0x6e] sm:$0x3] %v457_v15 }

// kernel: recurrent_model_forward.1
= control target key start
LH: loop header
LB: loop body
LE: loop exit
PB: predicated region body
PF: predicated region fallthrough
CT: control target
= control target key end

     0   :  { %16 = vsyncpa [#allocation5], 0  ;;  %s2924_s0 = inlined_call_operand.vmem [shape: f32[1,2,32], index: 0, kind: input, shape index: {}]   ;;  %s2925_s1 = inlined_call_operand.vmem [shape: f32[1,2,4], index: 1, kind: input, shape index: {}]   ;;  %s2926_s2 = inlined_call_operand.hbm [shape: f32[2,2,2,32], index: 2, kind: input, shape index: {}]   ;;  %s2927_s3 = inlined_call_operand.hbm [shape: f32[504,128], index: 3, kind: input, shape index: {}]   ;;  %s2928_s4 = inlined_call_operand.hbm [shape: f32[4,256], index: 4, kind: input, shape index: {}]   ;;  %s2929_s5 = inlined_call_operand.hbm [shape: f32[16,384], index: 5, kind: input, shape index: {}]   ;;  %s2930_s6 = inlined_call_operand.hbm [shape: f32[64,768], index: 6, kind: input, shape index: {}]   ;;  %s2931_s7 = inlined_call_operand.hbm [shape: f32[256,768], index: 7, kind: input, shape index: {}]   ;;  %s2932_s8 = inlined_call_operand.hbm [shape: f32[256,384], index: 8, kind: input, shape index: {}]   ;;  %s2933_s9 = inlined_call_operand.vmem [shape: f32[1,32,128], index: 9, kind: output, shape index: {0}]   ;;  %s2934_s10 = inlined_call_operand.vmem [shape: f32[2,2,2,32], index: 10, kind: output, shape index: {1}]  }
   0x1   :  { %17 = vsyncpa [#allocation7], 0 }
   0x2   :  { %18 = vsyncpa [#allocation10], 0  ;;  %s41_s15 = sshll.u32 %s2927_s3, 4  ;;  %s42_s15 = int_to_ptr.hbm [resolvable:$true] %s41_s15 }
   0x3   :  { %19 = vsyncpa [#allocation13], 0  ;;  %s2600_s16 = smov [#allocation6]   ;;  %s65_s20 = sshll.u32 %s2929_s5, 4  ;;  %s66_s20 = int_to_ptr.hbm [resolvable:$true] %s65_s20 }
   0x4   :  { %s43_s17 = sshll.u32 %s2600_s16, 4  ;;  %s2601_s21 = smov 128   ;;  %s44_s17 = int_to_ptr.vmem [resolvable:$true] %s43_s17 }
   0x5   :  { %s2602_s22 = smov 8   ;;  %s2603_s23 = smov [#allocation9]  }
   0x6   :  { %49 = dma.hbm_to_vmem [thread:$0]  %s42_s15, 8064, %s44_s17, [#allocation7], %s2601_s21, %s2601_s21, %s2602_s22  }
   0x7   :  { %s67_s24 = sshll.u32 %s2603_s23, 4  ;;  %s2604_s25 = smov 384   ;;  %s68_s24 = int_to_ptr.vmem [resolvable:$true] %s67_s24 }
   0x8   :  { %s2605_s26 = smov 24   ;;  %s91_s28 = sshll.u32 %s2931_s7, 4  ;;  %s92_s28 = int_to_ptr.hbm [resolvable:$true] %s91_s28 }
   0x9   :  { %73 = dma.hbm_to_vmem [thread:$0]  %s66_s20, 768, %s68_s24, [#allocation10], %s2604_s25, %s2604_s25, %s2605_s26  }
   0xa   :  { %s2606_s29 = smov [#allocation12]   ;;  %s28_s12 = sshll.u32 %s2926_s2, 4  ;;  %s29_s12 = int_to_ptr.hbm [resolvable:$true] %s28_s12 }
   0xb   :  { %s93_s5 = sshll.u32 %s2606_s29, 4  ;;  %s2607_s13 = smov 768   ;;  %s94_s5 = int_to_ptr.vmem [resolvable:$true] %s93_s5 }
   0xc   :  { %s2608_s14 = smov 48   ;;  %s2609_s15 = smov [#allocation4]  }
   0xd   :  { %99 = dma.hbm_to_vmem [thread:$0]  %s92_s28, 24576, %s94_s5, [#allocation13], %s2607_s13, %s2607_s13, %s2608_s14  }
   0xe   :  { %s30_s16 = sshll.u32 %s2609_s15, 4  ;;  %s2610_s17 = smov 32   ;;  %s31_s16 = int_to_ptr.vmem [resolvable:$true] %s30_s16 }
   0xf   :  { %s2611_s18 = smov 2   ;;  %s55_s20 = sshll.u32 %s2928_s4, 4  ;;  %s56_s20 = int_to_ptr.hbm [resolvable:$true] %s55_s20 }
  0x10   :  { %36 = dma.hbm_to_vmem [thread:$0]  %s29_s12, 128, %s31_s16, [#allocation5], %s2610_s17, %s2610_s17, %s2611_s18  }
  0x11   :  { %s2612_s21 = smov [#allocation8]   ;;  %s78_s24 = sshll.u32 %s2930_s6, 4  ;;  %s79_s24 = int_to_ptr.hbm [resolvable:$true] %s78_s24 }
  0x12   :  { %s57_s22 = sshll.u32 %s2612_s21, 4  ;;  %s2613_s3 = smov [#allocation11]   ;;  %s58_s22 = int_to_ptr.vmem [resolvable:$true] %s57_s22 }
  0x13   :  { %60 = dma.hbm_to_vmem [thread:$0]  %s56_s20, 128, %s58_s22, [#allocation7]  }
  0x14   :  { %s80_s27 = sshll.u32 %s2613_s3, 4  ;;  %s104_s5 = sshll.u32 %s2932_s8, 4  ;;  %s81_s27 = int_to_ptr.vmem [resolvable:$true] %s80_s27  ;;  %s105_s5 = int_to_ptr.hbm [resolvable:$true] %s104_s5 }
  0x15   :  { %86 = dma.hbm_to_vmem [thread:$0]  %s79_s24, 6144, %s81_s27, [#allocation10], %s2607_s13, %s2607_s13, %s2608_s14  }
  0x16   :  { %s2614_s4 = smov [#allocation14]  }
  0x17   :  { %s106_s30 = sshll.u32 %s2614_s4, 4  ;;  %s107_s30 = int_to_ptr.vmem [resolvable:$true] %s106_s30 }
  0x18   :  { %112 = dma.hbm_to_vmem [thread:$0]  %s105_s5, 12288, %s107_s30, [#allocation13], %s2604_s25, %s2604_s25, %s2605_s26  }
  0x19   :  { %2592 = dma.done.wait [#allocation5], 128  }
  0x1a   :  { %2593 = vsyncadd [#allocation5], 4294967168 }
  0x1b   :  { %2594 = dma.done.wait [#allocation7], 8192  }
  0x1c   :  { %2595 = vsyncadd [#allocation7], 4294959104 }
  0x1d   :  { %2596 = dma.done.wait [#allocation10], 6912  }
  0x1e   :  { %2597 = vsyncadd [#allocation10], 4294960384 }
  0x1f   :  { %2598 = dma.done.wait [#allocation13], 36864  }
  0x20   :  { %2599 = vsyncadd [#allocation13], 4294930432  ;;  %vm162_vm0 = vcmask 1043456   ;;  %vm158_vm1 = vcmask 31744   ;;  %v193_v0 = vld [vmem:[#allocation6 + $0x28] sm:$0xff]  ;;  %v192_v1 = vld [vmem:[#allocation6 + $0x20] sm:$0xff] }
  0x21   :  { %v155_v2 = vld [vmem:[#allocation6] sm:$0xf]  ;;  %212 = vmatpush.msra.mxu1 %v193_v0  ;;  %v154_v3 = vld [vmem:[%s2925_s1] sm:$0x3]  ;;  %v191_v4 = vld [vmem:[#allocation6 + $0x18] sm:$0xff]  ;;  %vm196_vm2 = vcmask 261120  }
  0x22   :  { %2296 = vmatpush.msk.msra.mxu0 %vm162_vm0, %v155_v2  ;;  %v190_v5 = vld [vmem:[#allocation6 + $0x10] sm:$0xff]  ;;  %v189_v6 = vld [vmem:[%s2924_s0] sm:$0x3]  ;;  %v145_v7 = vld [vmem:[#allocation4] sm:$0x3]  ;;  %vm149_vm3 = vcmask 254976  }
  0x23   :  { %2297 = vmatmul.msk.f32.vlgmr.msra.gmra.mxu0 %vm158_vm1, %v154_v3  ;;  %213 = vmatpush.msra.mxu1 %v192_v1  ;;  %v234_v8 = vld [vmem:[#allocation6 + $0x70] sm:$0xff]  ;;  %150 = vst.msk [vmem:[#allocation2] sm:$0x3] %vm149_vm3, %v145_v7  ;;  %v233_v10 = vld [vmem:[#allocation6 + $0x68] sm:$0xff]  ;;  %v232_v12 = vld [vmem:[#allocation6 + $0x60] sm:$0xff]  ;;  %s2615_s0 = smov 64  }
  0x24   :  { %v230_v9 = vld [vmem:[#allocation6 + $0x50] sm:$0xff]  ;;  %v229_v11 = vld [vmem:[#allocation6 + $0x48] sm:$0xff]  ;;  %v228_v13 = vld [vmem:[#allocation6 + $0x40] sm:$0xff]  ;;  %s2616_s12 = smov 96   ;;  %vm486_vm15 = vcmask 123904   ;;  %s2617_s7 = smov 112  }
  0x25   :  { %214 = vmatpush.msra.mxu1 %v191_v4  ;;  %274 = vmatpush.msrb.mxu0 %v230_v9  ;;  %v231_v14 = vld [vmem:[#allocation6 + $0x58] sm:$0xff]  ;;  %v2385_v17 = vld [vmem:[#allocation6 + $0x8] ss:$0 sm:$0xff]  ;;  %v2386_v20 = vld [vmem:[#allocation6 + $0x30] ss:$0 sm:$0xff] }
  0x26   :  { %v227_v15 = vld [vmem:[#allocation6 + $0x38] sm:$0xff]  ;;  %v335_v59 = vld [vmem:[#allocation6 + $0xb0] sm:$0xff]  ;;  %v334_v61 = vld [vmem:[#allocation6 + $0xa8] sm:$0xff] }
  0x27   :  { %215 = vmatpush.msra.mxu1 %v190_v5  ;;  %275 = vmatpush.msrb.mxu0 %v229_v11  ;;  %v147_v28 = vld [vmem:[#allocation4 + $0x4] sm:$0x3]  ;;  %v2387_v30 = vld [vmem:[#allocation6 + $0x78] ss:$0 sm:$0xff]  ;;  %v331_v60 = vld [vmem:[#allocation6 + $0x90] sm:$0xff] }
  0x28   :  { %2298 = vmatmul.msk.f32.vlgmr.msra.gmra.mxu1 %vm196_vm2, %v189_v6  ;;  %152 = vst.msk [vmem:[#allocation2 + $0x4] sm:$0x3] %vm149_vm3, %v147_v28  ;;  %v336_v57 = vld [vmem:[#allocation6 + $0xb8] sm:$0xff]  ;;  %v330_v62 = vld [vmem:[#allocation6 + $0x88] sm:$0xff]  ;;  %v333_v63 = vld [vmem:[#allocation6 + $0xa0] sm:$0xff] }
  0x29   :  { %251 = vmatpush.msrb.mxu1 %v234_v8  ;;  %276 = vmatpush.msrb.mxu0 %v228_v13  ;;  %v332_v58 = vld [vmem:[#allocation6 + $0x98] sm:$0xff]  ;;  %v329_v0 = vld [vmem:[#allocation6 + $0x80] sm:$0xff] }
  0x2a   :  { %v224_v16 = vld [vmem:[#allocation2] sm:$0x3]  ;;  %v146_v3 = vld [vmem:[#allocation4 + $0x2] sm:$0x3]  ;;  %v148_v5 = vld [vmem:[#allocation4 + $0x6] sm:$0x3] }
  0x2b   :  { %252 = vmatpush.msrb.mxu1 %v233_v10  ;;  %277 = vmatpush.msrb.mxu0 %v227_v15  ;;  %151 = vst.msk [vmem:[#allocation2 + $0x2] sm:$0x3] %vm149_vm3, %v146_v3  ;;  %v2388_v10 = vld [vmem:[#allocation6 + $0xc0] ss:$0 sm:$0xff]  ;;  %v697_v3 = vld [vmem:[#allocation11 + $0x160] sm:$0xff] }
  0x2c   :  { %153 = vst.msk [vmem:[#allocation2 + $0x6] sm:$0x3] %vm149_vm3, %v148_v5  ;;  %v695_v5 = vld [vmem:[#allocation11 + $0x150] sm:$0xff] }
  0x2d   :  { %253 = vmatpush.msrb.mxu1 %v232_v12  ;;  %353 = vmatpush.msra.mxu0 %v336_v57  ;;  %v495_v57 = vld [vmem:[#allocation9 + $0x8] sm:$0xff] }
  0x2f   :  { %254 = vmatpush.msrb.mxu1 %v231_v14  ;;  %v226_v35 = vld [vmem:[#allocation2 + $0x4] sm:$0x3]  ;;  %354 = vmatpush.msra.mxu0 %v335_v59 }
  0x30   :  { %2299 = vmatmul.msk.f32.vlgmr.msrb.gmra.mxu1 %vm196_vm2, %v224_v16 }
  0x31   :  { %378 = vmatpush.msra.mxu1 %v332_v58  ;;  %355 = vmatpush.msra.mxu0 %v334_v61  ;;  %v496_v58 = vld [vmem:[#allocation9 + $0x10] sm:$0xff]  ;;  %v699_v61 = vld [vmem:[#allocation11 + $0x170] sm:$0xff] }
  0x32   :  { %v326_v4 = vld [vmem:[#allocation2 + $0x2] sm:$0x3] }
  0x33   :  { %379 = vmatpush.msra.mxu1 %v331_v60  ;;  %356 = vmatpush.msra.mxu0 %v333_v63  ;;  %v328_v6 = vld [vmem:[#allocation2 + $0x6] sm:$0x3]  ;;  %v687_v63 = vld [vmem:[#allocation11 + $0x110] sm:$0xff] }
  0x35   :  { %380 = vmatpush.msra.mxu1 %v330_v62  ;;  %v693_v62 = vld [vmem:[#allocation11 + $0x140] sm:$0xff] }
  0x37   :  { %381 = vmatpush.msra.mxu1 %v329_v0  ;;  %v594_v0 = vld [vmem:[#allocation6 + $0xf8] sm:$0xff] }
  0xa0   :  { %v183_v18 = vpop.f32.mrf.mxu0 }
  0xa1   :  { %v184_v19 = vadd.f32 %v2385_v17, %v183_v18 }
  0xa3   :  { %v187_v22 = vmul.f32 0.01, %v184_v19  ;;  %vm186_vm4 = vcmp.ge.f32.partialorder %v184_v19, 0.0 }
  0xa5   :  { %v217_v21 = vpop.f32.mrf.mxu1  ;;  %v188_v25 = vsel %vm186_vm4, %v184_v19, %v187_v22  ;;  %vm834_vm4 = vcmask 64512  }
  0xa6   :  { %v218_v23 = vadd.f32 %v2386_v20, %v217_v21 }
  0xa8   :  { %vm220_vm5 = vcmp.ge.f32.partialorder %v218_v23, 0.0  ;;  %v221_v24 = vmul.f32 0.01, %v218_v23 }
  0xaa   :  { %v222_v26 = vsel %vm220_vm5, %v218_v23, %v221_v24 }
  0xab   :  { %v223_v27 = vadd.f32 %v222_v26, %v188_v25 }
  0xad   :  { %2300 = vmatmul.msk.f32.vlgmr.msrb.gmra.mxu0 %vm196_vm2, %v223_v27  ;;  %v256_v29 = vpop.f32.mrf.mxu1 }
  0xb5   :  { %2301 = vmatmul.msk.f32.vlgmr.msra.gmra.mxu0 %vm196_vm2, %v326_v4 }
 0x12a   :  { %v279_v31 = vpop.f32.mrf.mxu0 }
 0x12b   :  { %v280_v32 = vadd.f32 %v279_v31, %v256_v29 }
 0x12d   :  { %v283_v33 = vadd.f32 %v2387_v30, %v280_v32 }
 0x12f   :  { %2392 = vtanh.f32 %v283_v33  ;;  %v284_v36 = vsub.f32 0.0, %v283_v33 }
 0x131   :  { %v285_v37 = vmul.f32 1.442695, %v284_v36  ;;  %v458_v36 = vld [vmem:[#allocation6 + $0xe0] sm:$0xff] }
 0x132   :  { %v358_v9 = vpop.f32.mrf.mxu0  ;;  %475 = vmatpush.msra.mxu2 %v458_v36  ;;  %v686_v36 = vld [vmem:[#allocation11 + $0x108] sm:$0xff] }
 0x133   :  { %2394 = vpow2.f32 %v285_v37  ;;  %v457_v37 = vld [vmem:[#allocation6 + $0xd8] sm:$0xff] }
 0x134   :  { %476 = vmatpush.msra.mxu2 %v457_v37  ;;  %v663_v37 = vld [vmem:[#allocation11 + $0x50] sm:$0xff] }
 0x135   :  { %v2393_v34 = vpop.eup %2392 }
 0x136   :  { %310 = vrot.lane.b32.xlu0 %v2393_v34, %s2615_s0 }
 0x139   :  { %v2395_v38 = vpop.eup %2394 }
 0x13a   :  { %v287_v39 = vadd.f32 1.0, %v2395_v38  ;;  %v456_v38 = vld [vmem:[#allocation6 + $0xd0] sm:$0xff] }
 0x13b   :  { %477 = vmatpush.msra.mxu2 %v456_v38  ;;  %v688_v38 = vld [vmem:[#allocation11 + $0x118] sm:$0xff] }
 0x13c   :  { %2396 = vrcp.f32 %v287_v39  ;;  %v299_v45 = vand.u32 2147483648, %v287_v39  ;;  %vm293_vm7 = vweird.f32 %v287_v39  ;;  %v297_v46 = vand.u32 2147483647, %v287_v39 }
 0x13e   :  { %305 = vrot.lane.b32.xlu0 %v226_v35, %s2610_s17  ;;  %v300_v48 = vor.u32 1.1754944e-38, %v299_v45  ;;  %vm298_vm9 = vcmp.eq.f32.partialorder %v297_v46, 8.507059e+37 }
 0x142   :  { %v2397_v40 = vpop.eup %2396 }
 0x143   :  { %v289_v41 = vmul.f32 %v2397_v40, %v287_v39  ;;  %vm294_vm6 = vweird.f32 %v2397_v40  ;;  %v455_v39 = vld [vmem:[#allocation6 + $0xc8] sm:$0xff] }
 0x144   :  { %vm295_vm8 = vmor %vm293_vm7, %vm294_vm6  ;;  %478 = vmatpush.msra.mxu2 %v455_v39  ;;  %v655_v39 = vld [vmem:[#allocation11 + $0x10] sm:$0xff] }
 0x145   :  { %v290_v42 = vsub.f32 1.0, %v289_v41 }
 0x146   :  { %409 = vrot.lane.b32.xlu0 %v328_v6, %s2610_s17  ;;  %v691_v6 = vld [vmem:[#allocation11 + $0x130] sm:$0xff] }
 0x147   :  { %v291_v43 = vmul.f32 %v2397_v40, %v290_v42 }
 0x149   :  { %v292_v44 = vadd.f32 %v2397_v40, %v291_v43 }
 0x14b   :  { %v296_v47 = vsel %vm295_vm8, %v2397_v40, %v292_v44 }
 0x14c   :  { %v301_v50 = vsel %vm298_vm9, %v300_v48, %v296_v47  ;;  %v2389_v48 = vld [vmem:[#allocation6 + $0xe8] ss:$0 sm:$0xff] }
 0x1a8   :  { %v311_v49 = vpop.permute.xlu0 %310 }
 0x1a9   :  { %v313_v51 = vmul.f32 %v311_v49, %v301_v50 }
 0x1ab   :  { %315 = vrot.lane.b32.xlu1 %v313_v51, %s2610_s17 }
 0x1b0   :  { %v306_v52 = vpop.permute.xlu0 %305 }
 0x1b1   :  { %v308_v53 = vmul.f32 %v306_v52, %v301_v50 }
 0x1b8   :  { %v410_v31 = vpop.permute.xlu0 %409 }
 0x21d   :  { %v316_v54 = vpop.permute.xlu1 %315 }
 0x21e   :  { %v2718_v55 = vadd.f32 %v316_v54, %v308_v53  ;;  %v497_v53 = vld [vmem:[#allocation9 + $0x18] sm:$0xff]  ;;  %v498_v54 = vld [vmem:[#allocation9 + $0x20] sm:$0xff] }
 0x21f   :  { %518 = vmatpush.msra.mxu3 %v497_v53  ;;  %538 = vmatpush.msrb.mxu0 %v498_v54 }
 0x220   :  { %2398 = vtanh.f32 %v2718_v55 }
 0x221   :  { %539 = vmatpush.msrb.mxu0 %v495_v57 }
 0x226   :  { %v2399_v56 = vpop.eup %2398 }
 0x227   :  { %321 = vrot.lane.b32.xlu1 %v2399_v56, %s2615_s0  ;;  %v494_v56 = vld [vmem:[#allocation9] sm:$0xff] }
 0x228   :  { %519 = vmatpush.msra.mxu3 %v494_v56 }
 0x299   :  { %v322_v1 = vpop.permute.xlu1 %321 }
 0x29a   :  { %v324_v2 = vmul.f32 %v322_v1, %v301_v50 }
 0x29c   :  { %362 = vrot.lane.b32.xlu2 %v324_v2, %s2610_s17  ;;  %v622_v2 = vld [vmem:[#allocation6 + $0x100] sm:$0xff] }
 0x2f6   :  { %v363_v7 = vpop.permute.xlu2 %362 }
 0x2f7   :  { %431 = vst.msk [vmem:[#allocation2] sm:$0x3] %vm149_vm3, %v363_v7  ;;  %2302 = vmatmul.msk.f32.vlgmr.msra.gmra.mxu1 %vm196_vm2, %v363_v7  ;;  %v689_v7 = vld [vmem:[#allocation11 + $0x120] sm:$0xff] }
 0x2fe   :  { %v447_v8 = vld [vmem:[#allocation2] sm:$0x3] }
 0x2ff   :  { %451 = vst.msk [vmem:[%s2934_s10] sm:$0x3] %vm149_vm3, %v447_v8  ;;  %v685_v8 = vld [vmem:[#allocation11 + $0x100] sm:$0xff] }
 0x374   :  { %v383_v11 = vpop.f32.mrf.mxu1 }
 0x375   :  { %v384_v12 = vadd.f32 %v383_v11, %v358_v9  ;;  %v566_v9 = vld [vmem:[#allocation6 + $0xf0] sm:$0xff] }
 0x377   :  { %v387_v13 = vadd.f32 %v2388_v10, %v384_v12  ;;  %v683_v10 = vld [vmem:[#allocation11 + $0xf0] sm:$0xff]  ;;  %v696_v12 = vld [vmem:[#allocation11 + $0x158] sm:$0xff] }
 0x379   :  { %2400 = vtanh.f32 %v387_v13  ;;  %v388_v15 = vsub.f32 0.0, %v387_v13  ;;  %v677_v13 = vld [vmem:[#allocation11 + $0xc0] sm:$0xff] }
 0x37b   :  { %v389_v16 = vmul.f32 1.442695, %v388_v15  ;;  %v671_v15 = vld [vmem:[#allocation11 + $0x90] sm:$0xff] }
 0x37d   :  { %2402 = vpow2.f32 %v389_v16  ;;  %v684_v16 = vld [vmem:[#allocation11 + $0xf8] sm:$0xff] }
 0x37f   :  { %v2401_v14 = vpop.eup %2400 }
 0x380   :  { %414 = vrot.lane.b32.xlu2 %v2401_v14, %s2615_s0  ;;  %v690_v14 = vld [vmem:[#allocation11 + $0x128] sm:$0xff] }
 0x383   :  { %v2403_v17 = vpop.eup %2402 }
 0x384   :  { %v391_v18 = vadd.f32 1.0, %v2403_v17  ;;  %v665_v17 = vld [vmem:[#allocation11 + $0x60] sm:$0xff] }
 0x386   :  { %2404 = vrcp.f32 %v391_v18  ;;  %v403_v24 = vand.u32 2147483648, %v391_v18  ;;  %vm397_vm11 = vweird.f32 %v391_v18  ;;  %v401_v25 = vand.u32 2147483647, %v391_v18 }
 0x388   :  { %v404_v27 = vor.u32 1.1754944e-38, %v403_v24  ;;  %vm402_vm13 = vcmp.eq.f32.partialorder %v401_v25, 8.507059e+37  ;;  %v681_v24 = vld [vmem:[#allocation11 + $0xe0] sm:$0xff] }
 0x389   :  { %v653_v25 = vld [vmem:[#allocation11] sm:$0xff] }
 0x38c   :  { %v2405_v19 = vpop.eup %2404 }
 0x38d   :  { %v393_v20 = vmul.f32 %v2405_v19, %v391_v18  ;;  %vm398_vm10 = vweird.f32 %v2405_v19  ;;  %v678_v18 = vld [vmem:[#allocation11 + $0xc8] sm:$0xff] }
 0x38e   :  { %vm399_vm12 = vmor %vm397_vm11, %vm398_vm10 }
 0x38f   :  { %v394_v21 = vsub.f32 1.0, %v393_v20  ;;  %v666_v20 = vld [vmem:[#allocation11 + $0x68] sm:$0xff] }
 0x391   :  { %v395_v22 = vmul.f32 %v2405_v19, %v394_v21  ;;  %v659_v21 = vld [vmem:[#allocation11 + $0x30] sm:$0xff] }
 0x393   :  { %v396_v23 = vadd.f32 %v2405_v19, %v395_v22  ;;  %v660_v22 = vld [vmem:[#allocation11 + $0x38] sm:$0xff] }
 0x395   :  { %v400_v26 = vsel %vm399_vm12, %v2405_v19, %v396_v23  ;;  %v672_v19 = vld [vmem:[#allocation11 + $0x98] sm:$0xff]  ;;  %v679_v23 = vld [vmem:[#allocation11 + $0xd0] sm:$0xff] }
 0x396   :  { %v405_v28 = vsel %vm402_vm13, %v404_v27, %v400_v26  ;;  %v654_v26 = vld [vmem:[#allocation11 + $0x8] sm:$0xff]  ;;  %v673_v27 = vld [vmem:[#allocation11 + $0xa0] sm:$0xff] }
 0x397   :  { %v412_v32 = vmul.f32 %v410_v31, %v405_v28  ;;  %v667_v31 = vld [vmem:[#allocation11 + $0x70] sm:$0xff] }
 0x3da   :  { %v415_v29 = vpop.permute.xlu2 %414 }
 0x3db   :  { %v417_v30 = vmul.f32 %v415_v29, %v405_v28  ;;  %v675_v29 = vld [vmem:[#allocation11 + $0xb0] sm:$0xff] }
 0x3dd   :  { %419 = vrot.lane.b32.xlu1 %v417_v30, %s2610_s17  ;;  %v700_v30 = vld [vmem:[#allocation11 + $0x178] sm:$0xff] }
 0x44f   :  { %v420_v33 = vpop.permute.xlu1 %419 }
 0x450   :  { %v422_v34 = vadd.f32 %v420_v33, %v412_v32  ;;  %v692_v32 = vld [vmem:[#allocation11 + $0x138] sm:$0xff]  ;;  %v669_v33 = vld [vmem:[#allocation11 + $0x80] sm:$0xff] }
 0x452   :  { %2406 = vtanh.f32 %v422_v34 }
 0x458   :  { %v2407_v35 = vpop.eup %2406 }
 0x459   :  { %425 = vrot.lane.b32.xlu2 %v2407_v35, %s2615_s0  ;;  %v661_v35 = vld [vmem:[#allocation11 + $0x40] sm:$0xff] }
 0x461   :  { %438 = vrot.lane.b32.xlu2 %v2718_v55, %s2616_s12  ;;  %v499_v55 = vld [vmem:[#allocation9 + $0x28] sm:$0xff] }
 0x462   :  { %558 = vmatpush.msrb.mxu1 %v499_v55 }
 0x464   :  { %559 = vmatpush.msrb.mxu1 %v496_v58 }
 0x466   :  { %793 = vmatpush.msra.mxu1 %v699_v61 }
 0x468   :  { %794 = vmatpush.msra.mxu1 %v693_v62 }
 0x46a   :  { %795 = vmatpush.msra.mxu1 %v687_v63  ;;  %v1110_v63 = vld [vmem:[#allocation12 + $0x2d8] sm:$0xff] }
 0x46c   :  { %796 = vmatpush.msra.mxu1 %v681_v24  ;;  %v1181_v24 = vld [vmem:[#allocation12 + $0x510] sm:$0xff] }
 0x46e   :  { %797 = vmatpush.msra.mxu1 %v675_v29  ;;  %v1182_v29 = vld [vmem:[#allocation12 + $0x518] sm:$0xff] }
 0x470   :  { %798 = vmatpush.msra.mxu1 %v669_v33  ;;  %v1176_v33 = vld [vmem:[#allocation12 + $0x4e8] sm:$0xff] }
 0x472   :  { %799 = vmatpush.msra.mxu1 %v663_v37  ;;  %v1170_v37 = vld [vmem:[#allocation12 + $0x4b8] sm:$0xff] }
 0x4b3   :  { %v426_v40 = vpop.permute.xlu2 %425 }
 0x4b4   :  { %v428_v41 = vmul.f32 %v426_v40, %v405_v28  ;;  %v698_v28 = vld [vmem:[#allocation11 + $0x168] sm:$0xff]  ;;  %v680_v40 = vld [vmem:[#allocation11 + $0xd8] sm:$0xff] }
 0x4b6   :  { %433 = vrot.lane.b32.xlu0 %v428_v41, %s2610_s17  ;;  %v657_v41 = vld [vmem:[#allocation11 + $0x20] sm:$0xff] }
 0x4b7   :  { %800 = vmatpush.msra.mxu1 %v657_v41  ;;  %v1164_v41 = vld [vmem:[#allocation12 + $0x488] sm:$0xff] }
 0x4bb   :  { %v439_v42 = vpop.permute.xlu2 %438 }
 0x4bc   :  { %441 = vst.msk [vmem:[#allocation2 + $0x4] sm:$0x3] %vm149_vm3, %v439_v42  ;;  %v682_v42 = vld [vmem:[#allocation11 + $0xe8] sm:$0xff] }
 0x4be   :  { %443 = vrot.lane.b32.xlu0 %v422_v34, %s2616_s12  ;;  %v694_v34 = vld [vmem:[#allocation11 + $0x148] sm:$0xff] }
 0x4c3   :  { %v449_v43 = vld [vmem:[#allocation2 + $0x4] sm:$0x3] }
 0x4c4   :  { %453 = vst.msk [vmem:[%s2934_s10 + $0x4] sm:$0x3] %vm149_vm3, %v449_v43  ;;  %v674_v43 = vld [vmem:[#allocation11 + $0xa8] sm:$0xff] }
 0x528   :  { %v434_v44 = vpop.permute.xlu0 %433 }
 0x529   :  { %436 = vst.msk [vmem:[#allocation2 + $0x2] sm:$0x3] %vm149_vm3, %v434_v44  ;;  %2303 = vmatmul.msk.f32.vlgmr.msra.gmra.mxu2 %vm196_vm2, %v434_v44  ;;  %v676_v44 = vld [vmem:[#allocation11 + $0xb8] sm:$0xff] }
 0x530   :  { %v448_v45 = vld [vmem:[#allocation2 + $0x2] sm:$0x3]  ;;  %v444_v46 = vpop.permute.xlu0 %443 }
 0x531   :  { %452 = vst.msk [vmem:[%s2934_s10 + $0x2] sm:$0x3] %vm149_vm3, %v448_v45  ;;  %v668_v45 = vld [vmem:[#allocation11 + $0x78] sm:$0xff] }
 0x532   :  { %446 = vst.msk [vmem:[#allocation2 + $0x6] sm:$0x3] %vm149_vm3, %v444_v46  ;;  %v670_v46 = vld [vmem:[#allocation11 + $0x88] sm:$0xff] }
 0x539   :  { %v450_v47 = vld [vmem:[#allocation2 + $0x6] sm:$0x3] }
 0x53a   :  { %454 = vst.msk [vmem:[%s2934_s10 + $0x6] sm:$0x3] %vm149_vm3, %v450_v47  ;;  %vm500_vm3 = vcmask 130048   ;;  %v662_v47 = vld [vmem:[#allocation11 + $0x48] sm:$0xff] }
 0x5ac   :  { %v480_v49 = vpop.f32.mrf.mxu2 }
 0x5ad   :  { %v481_v50 = vadd.f32 %v2389_v48, %v480_v49  ;;  %v664_v48 = vld [vmem:[#allocation11 + $0x58] sm:$0xff] }
 0x5ae   :  { %v656_v49 = vld [vmem:[#allocation11 + $0x18] sm:$0xff] }
 0x5af   :  { %vm483_vm14 = vcmp.ge.f32.partialorder %v481_v50, 0.0  ;;  %v484_v51 = vmul.f32 0.01, %v481_v50 }
 0x5b1   :  { %v485_v52 = vsel %vm483_vm14, %v481_v50, %v484_v51  ;;  %v658_v50 = vld [vmem:[#allocation11 + $0x28] sm:$0xff] }
 0x5b2   :  { %489 = vrot.lane.b32.xlu1 %v485_v52, %s2617_s7  ;;  %487 = vst.msk [vmem:[#allocation3] sm:$0x3] %vm486_vm15, %v485_v52  ;;  %v2390_v51 = vld [vmem:[#allocation8] ss:$0 sm:$0xff] }
 0x624   :  { %v490_v59 = vpop.permute.xlu1 %489 }
 0x625   :  { %492 = vst.msk [vmem:[#allocation3 + $0x2] sm:$0x3] %vm486_vm15, %v490_v59 }
 0x62c   :  { %v493_v60 = vld [vmem:[#allocation3] sm:$0xf] }
 0x62d   :  { %2304 = vmatmul.msk.f32.vlgmr.msra.gmra.mxu3 %vm500_vm3, %v493_v60  ;;  %2305 = vmatmul.msk.f32.vlgmr.msrb.gmra.mxu0 %vm500_vm3, %v493_v60 }
 0x62e   :  { %2306 = vmatmul.msk.f32.vlgmr.msrb.gmra.mxu1 %vm500_vm3, %v493_v60  ;;  %v832_v60 = vld [vmem:[#allocation6 + $0x108] sm:$0xff] }
 0x6aa   :  { %v541_v1 = vpop.f32.mrf.mxu0 }
 0x6ab   :  { %v561_v4 = vpop.f32.mrf.mxu1  ;;  %2309 = vmatpush.msk.msrb.mxu3 %vm162_vm0, %v541_v1 }
 0x6ac   :  { %2311 = vmatpush.msk.msra.mxu0 %vm162_vm0, %v561_v4  ;;  %2310 = vmatmul.msk.f32.vlgmr.msrb.gmra.mxu3 %vm158_vm1, %v594_v0  ;;  %v1104_v0 = vld [vmem:[#allocation12 + $0x2a8] sm:$0xff]  ;;  %v833_v4 = vld [vmem:[#allocation6 + $0x110] sm:$0xff] }
 0x6ad   :  { %2312 = vmatmul.msk.f32.vlgmr.msra.gmra.mxu0 %vm158_vm1, %v622_v2  ;;  %753 = vmatpush.msra.mxu3 %v697_v3  ;;  %v891_v2 = vld [vmem:[#allocation6 + $0x118] sm:$0xff] }
 0x6ae   :  { %713 = vmatpush.msrb.mxu0 %v695_v5 }
 0x6af   :  { %754 = vmatpush.msra.mxu3 %v691_v6  ;;  %v1109_v6 = vld [vmem:[#allocation12 + $0x2d0] sm:$0xff] }
 0x6b0   :  { %v521_v11 = vpop.f32.mrf.mxu3  ;;  %714 = vmatpush.msrb.mxu0 %v689_v7  ;;  %v1205_v7 = vld [vmem:[#allocation12 + $0x5d0] sm:$0xff] }
 0x6b1   :  { %2307 = vmatpush.msk.msrb.mxu2 %vm162_vm0, %v521_v11  ;;  %755 = vmatpush.msra.mxu3 %v685_v8  ;;  %v1098_v8 = vld [vmem:[#allocation12 + $0x278] sm:$0xff]  ;;  %v1092_v11 = vld [vmem:[#allocation12 + $0x248] sm:$0xff] }
 0x6b2   :  { %2308 = vmatmul.msk.f32.vlgmr.msrb.gmra.mxu2 %vm158_vm1, %v566_v9  ;;  %715 = vmatpush.msrb.mxu0 %v683_v10  ;;  %vm701_vm1 = vcmask 523264   ;;  %v1103_v9 = vld [vmem:[#allocation12 + $0x2a0] sm:$0xff] }
 0x6b3   :  { %733 = vmatpush.msra.mxu2 %v696_v12  ;;  %756 = vmatpush.msra.mxu3 %v679_v23  ;;  %v1199_v10 = vld [vmem:[#allocation12 + $0x5a0] sm:$0xff]  ;;  %v1097_v12 = vld [vmem:[#allocation12 + $0x270] sm:$0xff] }
 0x6b4   :  { %716 = vmatpush.msrb.mxu0 %v677_v13  ;;  %v1193_v13 = vld [vmem:[#allocation12 + $0x570] sm:$0xff] }
 0x6b5   :  { %734 = vmatpush.msra.mxu2 %v690_v14  ;;  %757 = vmatpush.msra.mxu3 %v673_v27  ;;  %v1085_v23 = vld [vmem:[#allocation12 + $0x210] sm:$0xff]  ;;  %v1079_v27 = vld [vmem:[#allocation12 + $0x1e0] sm:$0xff] }
 0x6b6   :  { %717 = vmatpush.msrb.mxu0 %v671_v15  ;;  %v892_v15 = vld [vmem:[#allocation6 + $0x120] sm:$0xff] }
 0x6b7   :  { %735 = vmatpush.msra.mxu2 %v684_v16  ;;  %758 = vmatpush.msra.mxu3 %v667_v31  ;;  %v1206_v16 = vld [vmem:[#allocation12 + $0x5d8] sm:$0xff]  ;;  %v950_v31 = vld [vmem:[#allocation6 + $0x130] sm:$0xff] }
 0x6b8   :  { %718 = vmatpush.msrb.mxu0 %v665_v17  ;;  %v949_v17 = vld [vmem:[#allocation6 + $0x128] sm:$0xff] }
 0x6b9   :  { %736 = vmatpush.msra.mxu2 %v678_v18  ;;  %759 = vmatpush.msra.mxu3 %v661_v35  ;;  %v1200_v18 = vld [vmem:[#allocation12 + $0x5a8] sm:$0xff]  ;;  %v1067_v35 = vld [vmem:[#allocation12 + $0x180] sm:$0xff] }
 0x6ba   :  { %719 = vmatpush.msrb.mxu0 %v659_v21  ;;  %v1086_v21 = vld [vmem:[#allocation12 + $0x218] sm:$0xff] }
 0x6bb   :  { %737 = vmatpush.msra.mxu2 %v672_v19  ;;  %760 = vmatpush.msra.mxu3 %v655_v39  ;;  %v1091_v19 = vld [vmem:[#allocation12 + $0x240] sm:$0xff]  ;;  %v1061_v39 = vld [vmem:[#allocation12 + $0x150] sm:$0xff] }
 0x6bc   :  { %720 = vmatpush.msrb.mxu0 %v653_v25  ;;  %v1080_v25 = vld [vmem:[#allocation12 + $0x1e8] sm:$0xff] }
 0x6bd   :  { %738 = vmatpush.msra.mxu2 %v666_v20  ;;  %v1187_v20 = vld [vmem:[#allocation12 + $0x540] sm:$0xff] }
 0x6be   :  { %773 = vmatpush.msra.mxu0 %v698_v28  ;;  %v1175_v28 = vld [vmem:[#allocation12 + $0x4e0] sm:$0xff] }
 0x6bf   :  { %739 = vmatpush.msra.mxu2 %v660_v22  ;;  %v1194_v22 = vld [vmem:[#allocation12 + $0x578] sm:$0xff] }
 0x6c0   :  { %774 = vmatpush.msra.mxu0 %v692_v32  ;;  %v1169_v32 = vld [vmem:[#allocation12 + $0x4b0] sm:$0xff] }
 0x6c1   :  { %740 = vmatpush.msra.mxu2 %v654_v26  ;;  %v1188_v26 = vld [vmem:[#allocation12 + $0x548] sm:$0xff] }
 0x6c2   :  { %775 = vmatpush.msra.mxu0 %v686_v36  ;;  %v1163_v36 = vld [vmem:[#allocation12 + $0x480] sm:$0xff] }
 0x6c3   :  { %813 = vmatpush.msrb.mxu2 %v700_v30  ;;  %v1073_v30 = vld [vmem:[#allocation12 + $0x1b0] sm:$0xff] }
 0x6c4   :  { %776 = vmatpush.msra.mxu0 %v680_v40  ;;  %v1157_v40 = vld [vmem:[#allocation12 + $0x450] sm:$0xff] }
 0x6c5   :  { %814 = vmatpush.msrb.mxu2 %v694_v34  ;;  %v1074_v34 = vld [vmem:[#allocation12 + $0x1b8] sm:$0xff] }
 0x6c6   :  { %777 = vmatpush.msra.mxu0 %v674_v43  ;;  %v1055_v43 = vld [vmem:[#allocation12 + $0x120] sm:$0xff] }
 0x6c7   :  { %815 = vmatpush.msrb.mxu2 %v688_v38  ;;  %v1068_v38 = vld [vmem:[#allocation12 + $0x188] sm:$0xff] }
 0x6c8   :  { %778 = vmatpush.msra.mxu0 %v668_v45  ;;  %v1151_v45 = vld [vmem:[#allocation12 + $0x420] sm:$0xff] }
 0x6c9   :  { %816 = vmatpush.msrb.mxu2 %v682_v42  ;;  %v1062_v42 = vld [vmem:[#allocation12 + $0x158] sm:$0xff] }
 0x6ca   :  { %779 = vmatpush.msra.mxu0 %v662_v47  ;;  %v1049_v47 = vld [vmem:[#allocation12 + $0xf0] sm:$0xff] }
 0x6cb   :  { %817 = vmatpush.msrb.mxu2 %v676_v44  ;;  %v1158_v44 = vld [vmem:[#allocation12 + $0x458] sm:$0xff] }
 0x6cc   :  { %780 = vmatpush.msra.mxu0 %v656_v49  ;;  %v1145_v49 = vld [vmem:[#allocation12 + $0x3f0] sm:$0xff] }
 0x6cd   :  { %818 = vmatpush.msrb.mxu2 %v670_v46  ;;  %v1056_v46 = vld [vmem:[#allocation12 + $0x128] sm:$0xff] }
 0x6cf   :  { %819 = vmatpush.msrb.mxu2 %v664_v48  ;;  %v1152_v48 = vld [vmem:[#allocation12 + $0x428] sm:$0xff] }
 0x6d1   :  { %820 = vmatpush.msrb.mxu2 %v658_v50  ;;  %v1050_v50 = vld [vmem:[#allocation12 + $0xf8] sm:$0xff] }
 0x72a   :  { %v646_v55 = vpop.f32.mrf.mxu0 }
 0x72f   :  { %v618_v53 = vpop.f32.mrf.mxu3 }
 0x735   :  { %v590_v52 = vpop.f32.mrf.mxu2 }
 0x736   :  { %v593_v54 = vadd.f32 %v2390_v51, %v590_v52  ;;  %v1043_v51 = vld [vmem:[#allocation12 + $0xc0] sm:$0xff]  ;;  %v1146_v52 = vld [vmem:[#allocation12 + $0x3f8] sm:$0xff] }
 0x738   :  { %v621_v56 = vadd.f32 %v618_v53, %v593_v54  ;;  %v1139_v53 = vld [vmem:[#allocation12 + $0x3c0] sm:$0xff]  ;;  %v1044_v54 = vld [vmem:[#allocation12 + $0xc8] sm:$0xff] }
 0x73a   :  { %v649_v57 = vadd.f32 %v646_v55, %v621_v56  ;;  %v1037_v55 = vld [vmem:[#allocation12 + $0x90] sm:$0xff]  ;;  %v1140_v56 = vld [vmem:[#allocation12 + $0x3c8] sm:$0xff] }
 0x73c   :  { %vm650_vm0 = vcmp.ge.f32.partialorder %v649_v57, 0.0  ;;  %v651_v58 = vmul.f32 0.01, %v649_v57 }
 0x73e   :  { %v652_v59 = vsel %vm650_vm0, %v649_v57, %v651_v58  ;;  %v1133_v57 = vld [vmem:[#allocation12 + $0x390] sm:$0xff]  ;;  %v1038_v58 = vld [vmem:[#allocation12 + $0x98] sm:$0xff] }
 0x73f   :  { %2313 = vmatmul.msk.f32.vlgmr.msrb.gmra.mxu0 %vm701_vm1, %v652_v59  ;;  %2314 = vmatmul.msk.f32.vlgmr.msra.gmra.mxu2 %vm701_vm1, %v652_v59 }
 0x740   :  { %2315 = vmatmul.msk.f32.vlgmr.msra.gmra.mxu3 %vm701_vm1, %v652_v59  ;;  %2317 = vmatmul.msk.f32.vlgmr.msra.gmra.mxu1 %vm701_vm1, %v652_v59 }
 0x747   :  { %2316 = vmatmul.msk.f32.vlgmr.msra.gmra.mxu0 %vm701_vm1, %v652_v59  ;;  %2318 = vmatmul.msk.f32.vlgmr.msrb.gmra.mxu2 %vm701_vm1, %v652_v59  ;;  %v1031_v59 = vld [vmem:[#allocation12 + $0x60] sm:$0xff] }
 0x7bc   :  { %v722_v61 = vpop.f32.mrf.mxu0 }
 0x7bd   :  { %v802_v62 = vpop.f32.mrf.mxu1  ;;  %856 = vmatpush.msrb.mxu3 %v722_v61  ;;  %v1127_v61 = vld [vmem:[#allocation12 + $0x360] sm:$0xff] }
 0x7be   :  { %2319 = vmatmul.msk.f32.vlgmr.msrb.gmra.mxu3 %vm834_vm4, %v832_v60 }
 0x7bf   :  { %972 = vmatpush.msra.mxu3 %v802_v62  ;;  %v1032_v62 = vld [vmem:[#allocation12 + $0x68] sm:$0xff] }
 0x7c1   :  { %1257 = vmatpush.msrb.mxu3 %v1110_v63  ;;  %v1025_v63 = vld [vmem:[#allocation12 + $0x30] sm:$0xff] }
 0x7c2   :  { %v742_v1 = vpop.f32.mrf.mxu2 }
 0x7c3   :  { %1258 = vmatpush.msrb.mxu3 %v1104_v0  ;;  %v762_v3 = vpop.f32.mrf.mxu3  ;;  %879 = vmatpush.msrb.mxu0 %v742_v1  ;;  %v1128_v0 = vld [vmem:[#allocation12 + $0x368] sm:$0xff]  ;;  %v1121_v1 = vld [vmem:[#allocation12 + $0x330] sm:$0xff] }
 0x7c4   :  { %914 = vmatpush.msrb.mxu1 %v762_v3  ;;  %v782_v5 = vpop.f32.mrf.mxu0  ;;  %2321 = vmatmul.msk.f32.vlgmr.msrb.gmra.mxu0 %vm834_vm4, %v832_v60  ;;  %v1134_v60 = vld [vmem:[#allocation12 + $0x398] sm:$0xff]  ;;  %v1019_v3 = vld [vmem:[#allocation12] sm:$0xff] }
 0x7c5   :  { %937 = vmatpush.msra.mxu2 %v782_v5  ;;  %2323 = vmatmul.msk.f32.vlgmr.msrb.gmra.mxu1 %vm834_vm4, %v891_v2  ;;  %v1115_v5 = vld [vmem:[#allocation12 + $0x300] sm:$0xff] }
 0x7c6   :  { %2320 = vmatmul.msk.f32.gmra.mxu3 %vm834_vm4, %v833_v4  ;;  %2325 = vmatmul.msk.f32.vlgmr.msra.gmra.mxu2 %vm834_vm4, %v891_v2  ;;  %v1026_v2 = vld [vmem:[#allocation12 + $0x38] sm:$0xff] }
 0x7c7   :  { %1211 = vmatpush.msra.mxu1 %v1109_v6  ;;  %1234 = vmatpush.msrb.mxu2 %v1205_v7  ;;  %v1020_v6 = vld [vmem:[#allocation12 + $0x8] sm:$0xff]  ;;  %v1111_v7 = vld [vmem:[#allocation12 + $0x2e0] sm:$0xff] }
 0x7c8   :  { %1259 = vmatpush.msrb.mxu3 %v1098_v8  ;;  %v1116_v8 = vld [vmem:[#allocation12 + $0x308] sm:$0xff] }
 0x7c9   :  { %1212 = vmatpush.msra.mxu1 %v1103_v9  ;;  %1235 = vmatpush.msrb.mxu2 %v1199_v10  ;;  %v1207_v9 = vld [vmem:[#allocation12 + $0x5e0] sm:$0xff]  ;;  %v1112_v10 = vld [vmem:[#allocation12 + $0x2e8] sm:$0xff] }
 0x7ca   :  { %v822_v14 = vpop.f32.mrf.mxu2  ;;  %1260 = vmatpush.msrb.mxu3 %v1092_v11  ;;  %v1208_v11 = vld [vmem:[#allocation12 + $0x5e8] sm:$0xff] }
 0x7cb   :  { %995 = vmatpush.msra.mxu0 %v822_v14  ;;  %1213 = vmatpush.msra.mxu1 %v1097_v12  ;;  %v1105_v12 = vld [vmem:[#allocation12 + $0x2b0] sm:$0xff]  ;;  %v1106_v14 = vld [vmem:[#allocation12 + $0x2b8] sm:$0xff] }
 0x7cc   :  { %2322 = vmatmul.msk.f32.gmra.mxu0 %vm834_vm4, %v833_v4  ;;  %1236 = vmatpush.msrb.mxu2 %v1193_v13  ;;  %v1122_v4 = vld [vmem:[#allocation12 + $0x338] sm:$0xff]  ;;  %v1201_v13 = vld [vmem:[#allocation12 + $0x5b0] sm:$0xff] }
 0x7cd   :  { %2324 = vmatmul.msk.f32.gmra.mxu1 %vm834_vm4, %v892_v15  ;;  %1280 = vmatpush.msrb.mxu0 %v1206_v16  ;;  %v1099_v16 = vld [vmem:[#allocation12 + $0x280] sm:$0xff] }
 0x7ce   :  { %2326 = vmatmul.msk.f32.gmra.mxu2 %vm834_vm4, %v892_v15  ;;  %2327 = vmatmul.msk.f32.vlgmr.msra.gmra.mxu3 %vm834_vm4, %v949_v17  ;;  %v1202_v15 = vld [vmem:[#allocation12 + $0x5b8] sm:$0xff] }
 0x7cf   :  { %1281 = vmatpush.msrb.mxu0 %v1200_v18  ;;  %1214 = vmatpush.msra.mxu1 %v1091_v19  ;;  %v1100_v18 = vld [vmem:[#allocation12 + $0x288] sm:$0xff] }
 0x7d0   :  { %1237 = vmatpush.msrb.mxu2 %v1187_v20  ;;  %1261 = vmatpush.msrb.mxu3 %v1086_v21  ;;  %v1196_v19 = vld [vmem:[#allocation12 + $0x588] sm:$0xff]  ;;  %v1093_v20 = vld [vmem:[#allocation12 + $0x250] sm:$0xff] }
 0x7d1   :  { %1282 = vmatpush.msrb.mxu0 %v1194_v22  ;;  %1215 = vmatpush.msra.mxu1 %v1085_v23  ;;  %v1189_v21 = vld [vmem:[#allocation12 + $0x550] sm:$0xff]  ;;  %v1094_v22 = vld [vmem:[#allocation12 + $0x258] sm:$0xff] }
 0x7d2   :  { %1238 = vmatpush.msrb.mxu2 %v1181_v24  ;;  %1262 = vmatpush.msrb.mxu3 %v1080_v25  ;;  %v1190_v23 = vld [vmem:[#allocation12 + $0x558] sm:$0xff]  ;;  %v1087_v24 = vld [vmem:[#allocation12 + $0x220] sm:$0xff] }
 0x7d3   :  { %1283 = vmatpush.msrb.mxu0 %v1188_v26  ;;  %1216 = vmatpush.msra.mxu1 %v1079_v27  ;;  %v1183_v25 = vld [vmem:[#allocation12 + $0x520] sm:$0xff]  ;;  %v1088_v26 = vld [vmem:[#allocation12 + $0x228] sm:$0xff] }
 0x7d4   :  { %2329 = vmatmul.msk.f32.vlgmr.msra.gmra.mxu0 %vm834_vm4, %v949_v17  ;;  %1239 = vmatpush.msrb.mxu2 %v1175_v28  ;;  %v1195_v17 = vld [vmem:[#allocation12 + $0x580] sm:$0xff]  ;;  %v1184_v27 = vld [vmem:[#allocation12 + $0x528] sm:$0xff]  ;;  %v1081_v28 = vld [vmem:[#allocation12 + $0x1f0] sm:$0xff] }
 0x7d5   :  { %1284 = vmatpush.msrb.mxu0 %v1182_v29  ;;  %1217 = vmatpush.msra.mxu1 %v1073_v30  ;;  %v1177_v29 = vld [vmem:[#allocation12 + $0x4f0] sm:$0xff]  ;;  %v1082_v30 = vld [vmem:[#allocation12 + $0x1f8] sm:$0xff] }
 0x7d6   :  { %2328 = vmatmul.msk.f32.gmra.mxu3 %vm834_vm4, %v950_v31  ;;  %1240 = vmatpush.msrb.mxu2 %v1169_v32  ;;  %v1075_v32 = vld [vmem:[#allocation12 + $0x1c0] sm:$0xff] }
 0x7d7   :  { %1285 = vmatpush.msrb.mxu0 %v1176_v33  ;;  %1263 = vmatpush.msrb.mxu3 %v1074_v34  ;;  %v1171_v33 = vld [vmem:[#allocation12 + $0x4c0] sm:$0xff]  ;;  %v1076_v34 = vld [vmem:[#allocation12 + $0x1c8] sm:$0xff] }
 0x7d8   :  { %1218 = vmatpush.msra.mxu1 %v1067_v35  ;;  %1241 = vmatpush.msrb.mxu2 %v1163_v36  ;;  %v1172_v35 = vld [vmem:[#allocation12 + $0x4c8] sm:$0xff]  ;;  %v1069_v36 = vld [vmem:[#allocation12 + $0x190] sm:$0xff] }
 0x7d9   :  { %1286 = vmatpush.msrb.mxu0 %v1170_v37  ;;  %1264 = vmatpush.msrb.mxu3 %v1068_v38  ;;  %v1165_v37 = vld [vmem:[#allocation12 + $0x490] sm:$0xff]  ;;  %v1070_v38 = vld [vmem:[#allocation12 + $0x198] sm:$0xff] }
 0x7da   :  { %1219 = vmatpush.msra.mxu1 %v1061_v39  ;;  %1242 = vmatpush.msrb.mxu2 %v1157_v40  ;;  %v1166_v39 = vld [vmem:[#allocation12 + $0x498] sm:$0xff]  ;;  %v1063_v40 = vld [vmem:[#allocation12 + $0x160] sm:$0xff] }
 0x7db   :  { %1287 = vmatpush.msrb.mxu0 %v1164_v41  ;;  %1265 = vmatpush.msrb.mxu3 %v1062_v42  ;;  %v1159_v41 = vld [vmem:[#allocation12 + $0x460] sm:$0xff]  ;;  %v1064_v42 = vld [vmem:[#allocation12 + $0x168] sm:$0xff] }
 0x7dc   :  { %2330 = vmatmul.msk.f32.gmra.mxu0 %vm834_vm4, %v950_v31  ;;  %1220 = vmatpush.msra.mxu1 %v1055_v43  ;;  %v1178_v31 = vld [vmem:[#allocation12 + $0x4f8] sm:$0xff]  ;;  %v1160_v43 = vld [vmem:[#allocation12 + $0x468] sm:$0xff] }
 0x7dd   :  { %1288 = vmatpush.msrb.mxu0 %v1158_v44  ;;  %1243 = vmatpush.msrb.mxu2 %v1151_v45  ;;  %v1057_v44 = vld [vmem:[#allocation12 + $0x130] sm:$0xff] }
 0x7de   :  { %1266 = vmatpush.msrb.mxu3 %v1056_v46  ;;  %1221 = vmatpush.msra.mxu1 %v1049_v47  ;;  %v1153_v45 = vld [vmem:[#allocation12 + $0x430] sm:$0xff]  ;;  %v1058_v46 = vld [vmem:[#allocation12 + $0x138] sm:$0xff] }
 0x7df   :  { %1289 = vmatpush.msrb.mxu0 %v1152_v48  ;;  %1244 = vmatpush.msrb.mxu2 %v1145_v49  ;;  %v1154_v47 = vld [vmem:[#allocation12 + $0x438] sm:$0xff]  ;;  %v1051_v48 = vld [vmem:[#allocation12 + $0x100] sm:$0xff] }
 0x7e0   :  { %1267 = vmatpush.msrb.mxu3 %v1050_v50  ;;  %1222 = vmatpush.msra.mxu1 %v1043_v51  ;;  %v1147_v49 = vld [vmem:[#allocation12 + $0x400] sm:$0xff]  ;;  %v1052_v50 = vld [vmem:[#allocation12 + $0x108] sm:$0xff] }
 0x7e1   :  { %1290 = vmatpush.msrb.mxu0 %v1146_v52  ;;  %1245 = vmatpush.msrb.mxu2 %v1139_v53  ;;  %v1148_v51 = vld [vmem:[#allocation12 + $0x408] sm:$0xff]  ;;  %v1045_v52 = vld [vmem:[#allocation12 + $0xd0] sm:$0xff] }
 0x7e2   :  { %1268 = vmatpush.msrb.mxu3 %v1044_v54  ;;  %1223 = vmatpush.msra.mxu1 %v1037_v55  ;;  %v1141_v53 = vld [vmem:[#allocation12 + $0x3d0] sm:$0xff]  ;;  %v1046_v54 = vld [vmem:[#allocation12 + $0xd8] sm:$0xff] }
 0x7e3   :  { %1291 = vmatpush.msrb.mxu0 %v1140_v56  ;;  %1246 = vmatpush.msrb.mxu2 %v1133_v57  ;;  %v1142_v55 = vld [vmem:[#allocation12 + $0x3d8] sm:$0xff]  ;;  %v1039_v56 = vld [vmem:[#allocation12 + $0xa0] sm:$0xff] }
 0x7e4   :  { %1269 = vmatpush.msrb.mxu3 %v1038_v58  ;;  %1224 = vmatpush.msra.mxu1 %v1031_v59  ;;  %v1135_v57 = vld [vmem:[#allocation12 + $0x3a0] sm:$0xff]  ;;  %v1040_v58 = vld [vmem:[#allocation12 + $0xa8] sm:$0xff] }
 0x7e5   :  { %1292 = vmatpush.msrb.mxu0 %v1134_v60  ;;  %1247 = vmatpush.msrb.mxu2 %v1127_v61  ;;  %v1136_v59 = vld [vmem:[#allocation12 + $0x3a8] sm:$0xff]  ;;  %v1033_v60 = vld [vmem:[#allocation12 + $0x70] sm:$0xff] }
 0x7e6   :  { %1270 = vmatpush.msrb.mxu3 %v1032_v62  ;;  %1225 = vmatpush.msra.mxu1 %v1025_v63  ;;  %v1129_v61 = vld [vmem:[#allocation12 + $0x370] sm:$0xff]  ;;  %v1034_v62 = vld [vmem:[#allocation12 + $0x78] sm:$0xff] }
 0x7e7   :  { %1293 = vmatpush.msrb.mxu0 %v1128_v0  ;;  %1248 = vmatpush.msrb.mxu2 %v1121_v1  ;;  %v1130_v63 = vld [vmem:[#allocation12 + $0x378] sm:$0xff]  ;;  %v1027_v0 = vld [vmem:[#allocation12 + $0x40] sm:$0xff] }
 0x7e8   :  { %1271 = vmatpush.msrb.mxu3 %v1026_v2  ;;  %1226 = vmatpush.msra.mxu1 %v1019_v3  ;;  %v1123_v1 = vld [vmem:[#allocation12 + $0x340] sm:$0xff]  ;;  %v1028_v2 = vld [vmem:[#allocation12 + $0x48] sm:$0xff] }
 0x7e9   :  { %1294 = vmatpush.msrb.mxu0 %v1122_v4  ;;  %1249 = vmatpush.msrb.mxu2 %v1115_v5  ;;  %v1124_v3 = vld [vmem:[#allocation12 + $0x348] sm:$0xff]  ;;  %v1021_v4 = vld [vmem:[#allocation12 + $0x10] sm:$0xff] }
 0x7ea   :  { %1272 = vmatpush.msrb.mxu3 %v1020_v6  ;;  %1303 = vmatpush.msrb.mxu1 %v1111_v7  ;;  %v1117_v5 = vld [vmem:[#allocation12 + $0x310] sm:$0xff]  ;;  %v1022_v6 = vld [vmem:[#allocation12 + $0x18] sm:$0xff] }
 0x7eb   :  { %1295 = vmatpush.msrb.mxu0 %v1116_v8  ;;  %1326 = vmatpush.msra.mxu2 %v1207_v9  ;;  %v1118_v7 = vld [vmem:[#allocation12 + $0x318] sm:$0xff] }
 0x7ec   :  { %1349 = vmatpush.msra.mxu3 %v1112_v10  ;;  %1304 = vmatpush.msrb.mxu1 %v1105_v12  ;;  %v826_v10 = vld [vmem:[#allocation8 + $0x1] ss:$4 sm:$0x3] }
 0x7ed   :  { %1372 = vmatpush.msra.mxu0 %v1208_v11  ;;  %1327 = vmatpush.msra.mxu2 %v1201_v13  ;;  %v828_v11 = vperm.slane %v826_v10, 0 }
 0x7ee   :  { %1350 = vmatpush.msra.mxu3 %v1106_v14  ;;  %1305 = vmatpush.msrb.mxu1 %v1099_v16  ;;  %v829_v14 = vperm.slane %v826_v10, 1  ;;  %v1168_v10 = vld [vmem:[#allocation12 + $0x4a8] sm:$0xff] }
 0x7ef   :  { %1373 = vmatpush.msra.mxu0 %v1202_v15  ;;  %1328 = vmatpush.msra.mxu2 %v1195_v17 }
 0x7f0   :  { %1351 = vmatpush.msra.mxu3 %v1100_v18  ;;  %1306 = vmatpush.msrb.mxu1 %v1093_v20 }
 0x7f1   :  { %1374 = vmatpush.msra.mxu0 %v1196_v19  ;;  %1329 = vmatpush.msra.mxu2 %v1189_v21 }
 0x7f2   :  { %1352 = vmatpush.msra.mxu3 %v1094_v22  ;;  %1307 = vmatpush.msrb.mxu1 %v1087_v24 }
 0x7f3   :  { %1375 = vmatpush.msra.mxu0 %v1190_v23  ;;  %1330 = vmatpush.msra.mxu2 %v1183_v25 }
 0x7f4   :  { %1353 = vmatpush.msra.mxu3 %v1088_v26  ;;  %1308 = vmatpush.msrb.mxu1 %v1081_v28 }
 0x7f5   :  { %1376 = vmatpush.msra.mxu0 %v1184_v27  ;;  %1331 = vmatpush.msra.mxu2 %v1177_v29 }
 0x7f6   :  { %1354 = vmatpush.msra.mxu3 %v1082_v30  ;;  %1309 = vmatpush.msrb.mxu1 %v1075_v32 }
 0x7f7   :  { %1377 = vmatpush.msra.mxu0 %v1178_v31  ;;  %1332 = vmatpush.msra.mxu2 %v1171_v33  ;;  %v1113_v33 = vld [vmem:[#allocation12 + $0x2f0] sm:$0xff] }
 0x7f8   :  { %1355 = vmatpush.msra.mxu3 %v1076_v34  ;;  %1310 = vmatpush.msrb.mxu1 %v1069_v36  ;;  %v1209_v34 = vld [vmem:[#allocation12 + $0x5f0] sm:$0xff]  ;;  %v1210_v36 = vld [vmem:[#allocation12 + $0x5f8] sm:$0xff] }
 0x7f9   :  { %1378 = vmatpush.msra.mxu0 %v1172_v35  ;;  %1333 = vmatpush.msra.mxu2 %v1165_v37  ;;  %v1114_v35 = vld [vmem:[#allocation12 + $0x2f8] sm:$0xff] }
 0x7fa   :  { %1356 = vmatpush.msra.mxu3 %v1070_v38  ;;  %1311 = vmatpush.msrb.mxu1 %v1063_v40  ;;  %v1203_v40 = vld [vmem:[#allocation12 + $0x5c0] sm:$0xff] }
 0x7fb   :  { %1379 = vmatpush.msra.mxu0 %v1166_v39  ;;  %1334 = vmatpush.msra.mxu2 %v1159_v41  ;;  %v1107_v39 = vld [vmem:[#allocation12 + $0x2c0] sm:$0xff] }
 0x7fc   :  { %1357 = vmatpush.msra.mxu3 %v1064_v42  ;;  %1312 = vmatpush.msrb.mxu1 %v1057_v44  ;;  %v1204_v44 = vld [vmem:[#allocation12 + $0x5c8] sm:$0xff] }
 0x7fd   :  { %1380 = vmatpush.msra.mxu0 %v1160_v43  ;;  %1335 = vmatpush.msra.mxu2 %v1153_v45  ;;  %v1108_v43 = vld [vmem:[#allocation12 + $0x2c8] sm:$0xff] }
 0x7fe   :  { %1358 = vmatpush.msra.mxu3 %v1058_v46  ;;  %1313 = vmatpush.msrb.mxu1 %v1051_v48  ;;  %v1197_v48 = vld [vmem:[#allocation12 + $0x590] sm:$0xff] }
 0x7ff   :  { %1381 = vmatpush.msra.mxu0 %v1154_v47  ;;  %1336 = vmatpush.msra.mxu2 %v1147_v49  ;;  %v1101_v47 = vld [vmem:[#allocation12 + $0x290] sm:$0xff]  ;;  %v1102_v49 = vld [vmem:[#allocation12 + $0x298] sm:$0xff] }
 0x800   :  { %1359 = vmatpush.msra.mxu3 %v1052_v50  ;;  %1314 = vmatpush.msrb.mxu1 %v1045_v52  ;;  %v1198_v50 = vld [vmem:[#allocation12 + $0x598] sm:$0xff]  ;;  %v1191_v52 = vld [vmem:[#allocation12 + $0x560] sm:$0xff] }
 0x801   :  { %1382 = vmatpush.msra.mxu0 %v1148_v51  ;;  %1337 = vmatpush.msra.mxu2 %v1141_v53  ;;  %v1095_v51 = vld [vmem:[#allocation12 + $0x260] sm:$0xff] }
 0x802   :  { %1360 = vmatpush.msra.mxu3 %v1046_v54  ;;  %1315 = vmatpush.msrb.mxu1 %v1039_v56  ;;  %v1192_v56 = vld [vmem:[#allocation12 + $0x568] sm:$0xff] }
 0x803   :  { %1383 = vmatpush.msra.mxu0 %v1142_v55  ;;  %1338 = vmatpush.msra.mxu2 %v1135_v57  ;;  %v1096_v55 = vld [vmem:[#allocation12 + $0x268] sm:$0xff] }
 0x804   :  { %1361 = vmatpush.msra.mxu3 %v1040_v58  ;;  %1316 = vmatpush.msrb.mxu1 %v1033_v60  ;;  %v1185_v60 = vld [vmem:[#allocation12 + $0x530] sm:$0xff] }
 0x805   :  { %1384 = vmatpush.msra.mxu0 %v1136_v59  ;;  %1339 = vmatpush.msra.mxu2 %v1129_v61  ;;  %v1089_v59 = vld [vmem:[#allocation12 + $0x230] sm:$0xff]  ;;  %v1090_v61 = vld [vmem:[#allocation12 + $0x238] sm:$0xff] }
 0x806   :  { %1362 = vmatpush.msra.mxu3 %v1034_v62  ;;  %1317 = vmatpush.msrb.mxu1 %v1027_v0  ;;  %v1186_v62 = vld [vmem:[#allocation12 + $0x538] sm:$0xff]  ;;  %v1179_v0 = vld [vmem:[#allocation12 + $0x500] sm:$0xff] }
 0x807   :  { %1385 = vmatpush.msra.mxu0 %v1130_v63  ;;  %1340 = vmatpush.msra.mxu2 %v1123_v1  ;;  %v1083_v63 = vld [vmem:[#allocation12 + $0x200] sm:$0xff]  ;;  %v1084_v1 = vld [vmem:[#allocation12 + $0x208] sm:$0xff] }
 0x808   :  { %1363 = vmatpush.msra.mxu3 %v1028_v2  ;;  %1318 = vmatpush.msrb.mxu1 %v1021_v4  ;;  %v1180_v2 = vld [vmem:[#allocation12 + $0x508] sm:$0xff]  ;;  %v1173_v4 = vld [vmem:[#allocation12 + $0x4d0] sm:$0xff] }
 0x809   :  { %1386 = vmatpush.msra.mxu0 %v1124_v3  ;;  %1341 = vmatpush.msra.mxu2 %v1117_v5  ;;  %v1077_v3 = vld [vmem:[#allocation12 + $0x1d0] sm:$0xff]  ;;  %v1078_v5 = vld [vmem:[#allocation12 + $0x1d8] sm:$0xff] }
 0x80a   :  { %1364 = vmatpush.msra.mxu3 %v1022_v6  ;;  %v1174_v6 = vld [vmem:[#allocation12 + $0x4d8] sm:$0xff] }
 0x80b   :  { %1387 = vmatpush.msra.mxu0 %v1118_v7  ;;  %v1071_v7 = vld [vmem:[#allocation12 + $0x1a0] sm:$0xff] }
 0x841   :  { %v858_v8 = vpop.f32.mrf.mxu3  ;;  %v881_v9 = vpop.f32.mrf.mxu0 }
 0x842   :  { %v916_v15 = vpop.f32.mrf.mxu1  ;;  %v887_v17 = vadd.f32 %v858_v8, %v828_v11  ;;  %v888_v18 = vadd.f32 %v881_v9, %v829_v14  ;;  %v1167_v8 = vld [vmem:[#allocation12 + $0x4a0] sm:$0xff]  ;;  %v1072_v9 = vld [vmem:[#allocation12 + $0x1a8] sm:$0xff] }
 0x844   :  { %v945_v19 = vadd.f32 %v916_v15, %v887_v17  ;;  %v1059_v15 = vld [vmem:[#allocation12 + $0x140] sm:$0xff]  ;;  %v1060_v17 = vld [vmem:[#allocation12 + $0x148] sm:$0xff] }
 0x849   :  { %v861_v12 = vpop.f32.mrf.mxu3  ;;  %v884_v13 = vpop.f32.mrf.mxu0 }
 0x84a   :  { %v939_v16 = vpop.f32.mrf.mxu2  ;;  %v889_v25 = vadd.f32 %v861_v12, %v828_v11  ;;  %v919_v28 = vpop.f32.mrf.mxu1  ;;  %v890_v30 = vadd.f32 %v884_v13, %v829_v14  ;;  %v1065_v11 = vld [vmem:[#allocation12 + $0x170] sm:$0xff]  ;;  %v1066_v13 = vld [vmem:[#allocation12 + $0x178] sm:$0xff] }
 0x84b   :  { %v946_v20 = vadd.f32 %v939_v16, %v888_v18  ;;  %v1161_v12 = vld [vmem:[#allocation12 + $0x470] sm:$0xff]  ;;  %v1162_v14 = vld [vmem:[#allocation12 + $0x478] sm:$0xff]  ;;  %v1155_v16 = vld [vmem:[#allocation12 + $0x440] sm:$0xff] }
 0x84c   :  { %v947_v37 = vadd.f32 %v919_v28, %v889_v25  ;;  %v1156_v18 = vld [vmem:[#allocation12 + $0x448] sm:$0xff]  ;;  %v1137_v28 = vld [vmem:[#allocation12 + $0x3b0] sm:$0xff] }
 0x84d   :  { %v1048_v25 = vld [vmem:[#allocation12 + $0xe8] sm:$0xff] }
 0x851   :  { %v974_v21 = vpop.f32.mrf.mxu3  ;;  %v997_v22 = vpop.f32.mrf.mxu0 }
 0x852   :  { %v1003_v23 = vadd.f32 %v974_v21, %v945_v19  ;;  %v1004_v24 = vadd.f32 %v997_v22, %v946_v20  ;;  %v942_v29 = vpop.f32.mrf.mxu2  ;;  %v1053_v19 = vld [vmem:[#allocation12 + $0x110] sm:$0xff]  ;;  %v1054_v21 = vld [vmem:[#allocation12 + $0x118] sm:$0xff] }
 0x853   :  { %v948_v38 = vadd.f32 %v942_v29, %v890_v30  ;;  %v1149_v20 = vld [vmem:[#allocation12 + $0x410] sm:$0xff]  ;;  %v1150_v22 = vld [vmem:[#allocation12 + $0x418] sm:$0xff] }
 0x854   :  { %vm1007_vm5 = vcmp.ge.f32.partialorder %v1003_v23, 0.0  ;;  %v1011_v26 = vmul.f32 0.01, %v1003_v23  ;;  %vm1008_vm6 = vcmp.ge.f32.partialorder %v1004_v24, 0.0  ;;  %v1012_v27 = vmul.f32 0.01, %v1004_v24 }
 0x855   :  { %v1042_v29 = vld [vmem:[#allocation12 + $0xb8] sm:$0xff] }
 0x856   :  { %v2783_v31 = vsel %vm1007_vm5, %v1003_v23, %v1011_v26  ;;  %v2785_v32 = vsel %vm1008_vm6, %v1004_v24, %v1012_v27  ;;  %v1047_v23 = vld [vmem:[#allocation12 + $0xe0] sm:$0xff]  ;;  %v1144_v26 = vld [vmem:[#allocation12 + $0x3e8] sm:$0xff]  ;;  %v1041_v27 = vld [vmem:[#allocation12 + $0xb0] sm:$0xff] }
 0x857   :  { %1227 = vmatmul.f32.vlgmr.msra.gmra.mxu1 %v2783_v31  ;;  %1250 = vmatmul.f32.vlgmr.msrb.gmra.mxu2 %v2785_v32  ;;  %v1143_v24 = vld [vmem:[#allocation12 + $0x3e0] sm:$0xff]  ;;  %v1138_v30 = vld [vmem:[#allocation12 + $0x3b8] sm:$0xff] }
 0x858   :  { %1273 = vmatmul.f32.vlgmr.msrb.gmra.mxu3 %v2783_v31  ;;  %1296 = vmatmul.f32.vlgmr.msrb.gmra.mxu0 %v2785_v32 }
 0x859   :  { %1395 = vmatpush.msra.mxu1 %v1113_v33  ;;  %1418 = vmatpush.msrb.mxu2 %v1209_v34  ;;  %v977_v41 = vpop.f32.mrf.mxu3  ;;  %v1000_v42 = vpop.f32.mrf.mxu0  ;;  %v1035_v33 = vld [vmem:[#allocation12 + $0x80] sm:$0xff] }
 0x85a   :  { %1441 = vmatpush.msrb.mxu3 %v1114_v35  ;;  %1464 = vmatpush.msrb.mxu0 %v1210_v36  ;;  %v1005_v45 = vadd.f32 %v977_v41, %v947_v37  ;;  %v1006_v46 = vadd.f32 %v1000_v42, %v948_v38  ;;  %v1131_v34 = vld [vmem:[#allocation12 + $0x380] sm:$0xff]  ;;  %v1036_v35 = vld [vmem:[#allocation12 + $0x88] sm:$0xff]  ;;  %v1029_v37 = vld [vmem:[#allocation12 + $0x50] sm:$0xff] }
 0x85b   :  { %1396 = vmatpush.msra.mxu1 %v1107_v39  ;;  %1419 = vmatpush.msrb.mxu2 %v1203_v40  ;;  %v1132_v36 = vld [vmem:[#allocation12 + $0x388] sm:$0xff]  ;;  %v1125_v38 = vld [vmem:[#allocation12 + $0x350] sm:$0xff]  ;;  %v1030_v39 = vld [vmem:[#allocation12 + $0x58] sm:$0xff] }
 0x85c   :  { %vm1009_vm7 = vcmp.ge.f32.partialorder %v1005_v45, 0.0  ;;  %v1013_v53 = vmul.f32 0.01, %v1005_v45  ;;  %vm1010_vm8 = vcmp.ge.f32.partialorder %v1006_v46, 0.0  ;;  %v1014_v54 = vmul.f32 0.01, %v1006_v46  ;;  %1442 = vmatpush.msrb.mxu3 %v1108_v43  ;;  %1465 = vmatpush.msrb.mxu0 %v1204_v44 }
 0x85d   :  { %1397 = vmatpush.msra.mxu1 %v1101_v47  ;;  %1420 = vmatpush.msrb.mxu2 %v1197_v48  ;;  %v1126_v40 = vld [vmem:[#allocation12 + $0x358] sm:$0xff]  ;;  %v1023_v41 = vld [vmem:[#allocation12 + $0x20] sm:$0xff]  ;;  %v1024_v43 = vld [vmem:[#allocation12 + $0x28] sm:$0xff] }
 0x85e   :  { %v2791_v57 = vsel %vm1009_vm7, %v1005_v45, %v1013_v53  ;;  %v2793_v58 = vsel %vm1010_vm8, %v1006_v46, %v1014_v54  ;;  %1443 = vmatpush.msrb.mxu3 %v1102_v49  ;;  %1466 = vmatpush.msrb.mxu0 %v1198_v50  ;;  %v1119_v42 = vld [vmem:[#allocation12 + $0x320] sm:$0xff]  ;;  %v1120_v44 = vld [vmem:[#allocation12 + $0x328] sm:$0xff] }
 0x85f   :  { %1398 = vmatpush.msra.mxu1 %v1095_v51  ;;  %1421 = vmatpush.msrb.mxu2 %v1191_v52 }
 0x860   :  { %1444 = vmatpush.msrb.mxu3 %v1096_v55  ;;  %1467 = vmatpush.msrb.mxu0 %v1192_v56 }
 0x861   :  { %1230 = vmatmul.f32.gmra.mxu1 %v2791_v57  ;;  %1253 = vmatmul.f32.gmra.mxu2 %v2793_v58 }
 0x862   :  { %1276 = vmatmul.f32.gmra.mxu3 %v2791_v57  ;;  %1299 = vmatmul.f32.gmra.mxu0 %v2793_v58 }
 0x863   :  { %1399 = vmatpush.msra.mxu1 %v1089_v59  ;;  %1422 = vmatpush.msrb.mxu2 %v1185_v60  ;;  %v1495_v60 = vld [vmem:[#allocation6 + $0x140] sm:$0xff] }
 0x864   :  { %1445 = vmatpush.msrb.mxu3 %v1090_v61  ;;  %1468 = vmatpush.msrb.mxu0 %v1186_v62 }
 0x865   :  { %1400 = vmatpush.msra.mxu1 %v1083_v63  ;;  %1423 = vmatpush.msrb.mxu2 %v1179_v0  ;;  %v1496_v63 = vld [vmem:[#allocation6 + $0x148] sm:$0xff] }
 0x866   :  { %1446 = vmatpush.msrb.mxu3 %v1084_v1  ;;  %1469 = vmatpush.msrb.mxu0 %v1180_v2 }
 0x867   :  { %1401 = vmatpush.msra.mxu1 %v1077_v3  ;;  %1424 = vmatpush.msrb.mxu2 %v1173_v4 }
 0x868   :  { %1447 = vmatpush.msrb.mxu3 %v1078_v5  ;;  %1470 = vmatpush.msrb.mxu0 %v1174_v6  ;;  %v1576_v5 = vld [vmem:[#allocation6 + $0x158] sm:$0xff] }
 0x869   :  { %1402 = vmatpush.msra.mxu1 %v1071_v7  ;;  %1425 = vmatpush.msrb.mxu2 %v1167_v8  ;;  %v1497_v7 = vld [vmem:[#allocation6 + $0x150] sm:$0xff] }
 0x86a   :  { %1448 = vmatpush.msrb.mxu3 %v1072_v9  ;;  %1471 = vmatpush.msrb.mxu0 %v1168_v10 }
 0x86b   :  { %1319 = vmatmul.f32.vlgmr.msrb.gmra.mxu1 %v2783_v31  ;;  %1342 = vmatmul.f32.vlgmr.msra.gmra.mxu2 %v2785_v32 }
 0x86c   :  { %1365 = vmatmul.f32.vlgmr.msra.gmra.mxu3 %v2783_v31  ;;  %1388 = vmatmul.f32.vlgmr.msra.gmra.mxu0 %v2785_v32 }
 0x86d   :  { %1403 = vmatpush.msra.mxu1 %v1065_v11  ;;  %1426 = vmatpush.msrb.mxu2 %v1161_v12  ;;  %v1577_v12 = vld [vmem:[#allocation6 + $0x160] sm:$0xff] }
 0x86e   :  { %1449 = vmatpush.msrb.mxu3 %v1066_v13  ;;  %1472 = vmatpush.msrb.mxu0 %v1162_v14 }
 0x86f   :  { %1404 = vmatpush.msra.mxu1 %v1059_v15  ;;  %1427 = vmatpush.msrb.mxu2 %v1155_v16 }
 0x870   :  { %1450 = vmatpush.msrb.mxu3 %v1060_v17  ;;  %1473 = vmatpush.msrb.mxu0 %v1156_v18  ;;  %v1578_v18 = vld [vmem:[#allocation6 + $0x168] sm:$0xff] }
 0x871   :  { %1405 = vmatpush.msra.mxu1 %v1053_v19  ;;  %1428 = vmatpush.msrb.mxu2 %v1149_v20 }
 0x872   :  { %1451 = vmatpush.msrb.mxu3 %v1054_v21  ;;  %1474 = vmatpush.msrb.mxu0 %v1150_v22  ;;  %v1658_v21 = vld [vmem:[#allocation6 + $0x178] sm:$0xff] }
 0x873   :  { %1406 = vmatpush.msra.mxu1 %v1047_v23  ;;  %1429 = vmatpush.msrb.mxu2 %v1143_v24  ;;  %v1579_v23 = vld [vmem:[#allocation6 + $0x170] sm:$0xff]  ;;  %v1659_v24 = vld [vmem:[#allocation6 + $0x180] sm:$0xff] }
 0x874   :  { %1452 = vmatpush.msrb.mxu3 %v1048_v25  ;;  %1475 = vmatpush.msrb.mxu0 %v1144_v26  ;;  %v1660_v25 = vld [vmem:[#allocation6 + $0x188] sm:$0xff]  ;;  %v1661_v26 = vld [vmem:[#allocation6 + $0x190] sm:$0xff] }
 0x875   :  { %1322 = vmatmul.f32.gmra.mxu1 %v2791_v57  ;;  %1345 = vmatmul.f32.gmra.mxu2 %v2793_v58 }
 0x876   :  { %1368 = vmatmul.f32.gmra.mxu3 %v2791_v57  ;;  %1391 = vmatmul.f32.gmra.mxu0 %v2793_v58 }
 0x877   :  { %1407 = vmatpush.msra.mxu1 %v1041_v27  ;;  %1430 = vmatpush.msrb.mxu2 %v1137_v28  ;;  %v1809_v27 = vld [vmem:[#allocation14 + $0x168] sm:$0xff]  ;;  %v1810_v28 = vld [vmem:[#allocation14 + $0x170] sm:$0xff] }
 0x878   :  { %1453 = vmatpush.msrb.mxu3 %v1042_v29  ;;  %1476 = vmatpush.msrb.mxu0 %v1138_v30  ;;  %v1806_v29 = vld [vmem:[#allocation14 + $0x150] sm:$0xff]  ;;  %v1807_v30 = vld [vmem:[#allocation14 + $0x158] sm:$0xff] }
 0x879   :  { %1408 = vmatpush.msra.mxu1 %v1035_v33  ;;  %1431 = vmatpush.msrb.mxu2 %v1131_v34  ;;  %v1803_v33 = vld [vmem:[#allocation14 + $0x138] sm:$0xff]  ;;  %v1804_v34 = vld [vmem:[#allocation14 + $0x140] sm:$0xff] }
 0x87a   :  { %1454 = vmatpush.msrb.mxu3 %v1036_v35  ;;  %1477 = vmatpush.msrb.mxu0 %v1132_v36  ;;  %v1857_v35 = vld [vmem:[#allocation14 + $0x2e8] sm:$0xff]  ;;  %v1858_v36 = vld [vmem:[#allocation14 + $0x2f0] sm:$0xff] }
 0x87b   :  { %1409 = vmatpush.msra.mxu1 %v1029_v37  ;;  %1432 = vmatpush.msrb.mxu2 %v1125_v38  ;;  %v1800_v37 = vld [vmem:[#allocation14 + $0x120] sm:$0xff]  ;;  %v1801_v38 = vld [vmem:[#allocation14 + $0x128] sm:$0xff] }
 0x87c   :  { %1455 = vmatpush.msrb.mxu3 %v1030_v39  ;;  %1478 = vmatpush.msrb.mxu0 %v1126_v40  ;;  %v1797_v39 = vld [vmem:[#allocation14 + $0x108] sm:$0xff]  ;;  %v1854_v40 = vld [vmem:[#allocation14 + $0x2d0] sm:$0xff] }
 0x87d   :  { %1410 = vmatpush.msra.mxu1 %v1023_v41  ;;  %1433 = vmatpush.msrb.mxu2 %v1119_v42  ;;  %v1798_v41 = vld [vmem:[#allocation14 + $0x110] sm:$0xff]  ;;  %v1855_v42 = vld [vmem:[#allocation14 + $0x2d8] sm:$0xff] }
 0x87e   :  { %1456 = vmatpush.msrb.mxu3 %v1024_v43  ;;  %1479 = vmatpush.msrb.mxu0 %v1120_v44  ;;  %v1794_v43 = vld [vmem:[#allocation14 + $0xf0] sm:$0xff]  ;;  %v1851_v44 = vld [vmem:[#allocation14 + $0x2b8] sm:$0xff] }
 0x87f   :  { %1411 = vmatmul.f32.vlgmr.msra.gmra.mxu1 %v2783_v31  ;;  %1434 = vmatmul.f32.vlgmr.msrb.gmra.mxu2 %v2785_v32 }
 0x880   :  { %1457 = vmatmul.f32.vlgmr.msrb.gmra.mxu3 %v2783_v31  ;;  %1480 = vmatmul.f32.vlgmr.msrb.gmra.mxu0 %v2785_v32  ;;  %v1494_v32 = vld [vmem:[#allocation6 + $0x138] sm:$0xff] }
 0x887   :  { %1414 = vmatmul.f32.gmra.mxu1 %v2791_v57  ;;  %1437 = vmatmul.f32.gmra.mxu2 %v2793_v58 }
 0x888   :  { %1460 = vmatmul.f32.gmra.mxu3 %v2791_v57  ;;  %1483 = vmatmul.f32.gmra.mxu0 %v2793_v58 }
 0x8d4   :  { %v1228_v45 = vpop.f32.mrf.mxu1 }
 0x8d5   :  { %v1297_v46 = vpop.f32.mrf.mxu0 }
 0x8da   :  { %v1251_v47 = vpop.f32.mrf.mxu2 }
 0x8db   :  { %v1274_v48 = vpop.f32.mrf.mxu3  ;;  %v1252_v54 = vadd.f32 %v1251_v47, %v1228_v45  ;;  %v1795_v45 = vld [vmem:[#allocation14 + $0xf8] sm:$0xff] }
 0x8dc   :  { %v1298_v55 = vadd.f32 %v1297_v46, %v1274_v48  ;;  %v1852_v46 = vld [vmem:[#allocation14 + $0x2c0] sm:$0xff]  ;;  %v1791_v47 = vld [vmem:[#allocation14 + $0xd8] sm:$0xff] }
 0x8dd   :  { %v1848_v48 = vld [vmem:[#allocation14 + $0x2a0] sm:$0xff] }
 0x8de   :  { %v1231_v49 = vpop.f32.mrf.mxu1 }
 0x8df   :  { %v1300_v50 = vpop.f32.mrf.mxu0 }
 0x8e4   :  { %v1254_v51 = vpop.f32.mrf.mxu2 }
 0x8e5   :  { %v1255_v52 = vadd.f32 %v1254_v51, %v1231_v49  ;;  %v1277_v53 = vpop.f32.mrf.mxu3  ;;  %v1792_v49 = vld [vmem:[#allocation14 + $0xe0] sm:$0xff] }
 0x8e6   :  { %v1301_v31 = vadd.f32 %v1300_v50, %v1277_v53  ;;  %v1849_v50 = vld [vmem:[#allocation14 + $0x2a8] sm:$0xff]  ;;  %v1788_v51 = vld [vmem:[#allocation14 + $0xc0] sm:$0xff] }
 0x8e7   :  { %1524 = vmatpush.msrb.mxu1 %v1255_v52  ;;  %v1845_v52 = vld [vmem:[#allocation14 + $0x288] sm:$0xff] }
 0x8e8   :  { %1553 = vmatpush.msra.mxu2 %v1301_v31  ;;  %v1320_v56 = vpop.f32.mrf.mxu1  ;;  %v1789_v53 = vld [vmem:[#allocation14 + $0xc8] sm:$0xff]  ;;  %v1846_v31 = vld [vmem:[#allocation14 + $0x290] sm:$0xff] }
 0x8e9   :  { %1525 = vmatpush.msrb.mxu1 %v1252_v54  ;;  %v1389_v57 = vpop.f32.mrf.mxu0  ;;  %v1785_v54 = vld [vmem:[#allocation14 + $0xa8] sm:$0xff] }
 0x8ea   :  { %1554 = vmatpush.msra.mxu2 %v1298_v55  ;;  %2331 = vmatmul.msk.f32.vlgmr.msrb.gmra.mxu1 %vm500_vm3, %v1494_v32  ;;  %v1786_v55 = vld [vmem:[#allocation14 + $0xb0] sm:$0xff] }
 0x8eb   :  { %2335 = vmatmul.msk.f32.vlgmr.msra.gmra.mxu2 %vm500_vm3, %v1494_v32  ;;  %v1842_v32 = vld [vmem:[#allocation14 + $0x270] sm:$0xff] }
 0x8ee   :  { %v1343_v58 = vpop.f32.mrf.mxu2 }
 0x8ef   :  { %v1366_v59 = vpop.f32.mrf.mxu3  ;;  %v1344_v4 = vadd.f32 %v1343_v58, %v1320_v56  ;;  %v1843_v56 = vld [vmem:[#allocation14 + $0x278] sm:$0xff] }
 0x8f0   :  { %v1390_v6 = vadd.f32 %v1389_v57, %v1366_v59  ;;  %v1782_v57 = vld [vmem:[#allocation14 + $0x90] sm:$0xff]  ;;  %v1839_v58 = vld [vmem:[#allocation14 + $0x258] sm:$0xff] }
 0x8f1   :  { %v1783_v59 = vld [vmem:[#allocation14 + $0x98] sm:$0xff] }
 0x8f2   :  { %2332 = vmatmul.msk.f32.gmra.mxu1 %vm500_vm3, %v1495_v60  ;;  %v1323_v61 = vpop.f32.mrf.mxu1 }
 0x8f3   :  { %2336 = vmatmul.msk.f32.gmra.mxu2 %vm500_vm3, %v1495_v60  ;;  %v1392_v62 = vpop.f32.mrf.mxu0  ;;  %v1840_v60 = vld [vmem:[#allocation14 + $0x260] sm:$0xff] }
 0x8f8   :  { %v1346_v0 = vpop.f32.mrf.mxu2 }
 0x8f9   :  { %v1347_v1 = vadd.f32 %v1346_v0, %v1323_v61  ;;  %v1369_v2 = vpop.f32.mrf.mxu3  ;;  %v1779_v61 = vld [vmem:[#allocation14 + $0x78] sm:$0xff]  ;;  %v1780_v0 = vld [vmem:[#allocation14 + $0x80] sm:$0xff] }
 0x8fa   :  { %v1393_v3 = vadd.f32 %v1392_v62, %v1369_v2  ;;  %2333 = vmatmul.msk.f32.gmra.mxu1 %vm500_vm3, %v1496_v63  ;;  %v1836_v62 = vld [vmem:[#allocation14 + $0x240] sm:$0xff] }
 0x8fb   :  { %1606 = vmatpush.msra.mxu3 %v1347_v1  ;;  %2337 = vmatmul.msk.f32.gmra.mxu2 %vm500_vm3, %v1496_v63  ;;  %v1837_v1 = vld [vmem:[#allocation14 + $0x248] sm:$0xff]  ;;  %v1776_v2 = vld [vmem:[#allocation14 + $0x60] sm:$0xff] }
 0x8fc   :  { %1635 = vmatpush.msra.mxu0 %v1393_v3  ;;  %v1412_v8 = vpop.f32.mrf.mxu1  ;;  %v1833_v3 = vld [vmem:[#allocation14 + $0x228] sm:$0xff] }
 0x8fd   :  { %1607 = vmatpush.msra.mxu3 %v1344_v4  ;;  %v1481_v9 = vpop.f32.mrf.mxu0  ;;  %v1777_v4 = vld [vmem:[#allocation14 + $0x68] sm:$0xff] }
 0x8fe   :  { %1636 = vmatpush.msra.mxu0 %v1390_v6  ;;  %2339 = vmatmul.msk.f32.vlgmr.msra.gmra.mxu3 %vm500_vm3, %v1576_v5  ;;  %v1773_v6 = vld [vmem:[#allocation14 + $0x48] sm:$0xff] }
 0x8ff   :  { %2343 = vmatmul.msk.f32.vlgmr.msra.gmra.mxu0 %vm500_vm3, %v1576_v5  ;;  %1860 = vmatpush.msrb.mxu3 %v1809_v27  ;;  %v1834_v5 = vld [vmem:[#allocation14 + $0x230] sm:$0xff] }
 0x900   :  { %1889 = vmatpush.msrb.mxu0 %v1857_v35  ;;  %v1805_v35 = vld [vmem:[#allocation14 + $0x148] sm:$0xff] }
 0x901   :  { %1861 = vmatpush.msrb.mxu3 %v1806_v29  ;;  %v1816_v29 = vld [vmem:[#allocation14 + $0x1a0] sm:$0xff] }
 0x902   :  { %v1435_v10 = vpop.f32.mrf.mxu2  ;;  %2334 = vmatmul.msk.f32.gmra.mxu1 %vm500_vm3, %v1497_v7  ;;  %1890 = vmatpush.msrb.mxu0 %v1854_v40  ;;  %v1856_v40 = vld [vmem:[#allocation14 + $0x2e0] sm:$0xff] }
 0x903   :  { %v1458_v11 = vpop.f32.mrf.mxu3  ;;  %2338 = vmatmul.msk.f32.gmra.mxu2 %vm500_vm3, %v1497_v7  ;;  %v1436_v20 = vadd.f32 %v1435_v10, %v1412_v8  ;;  %1862 = vmatpush.msrb.mxu3 %v1803_v33  ;;  %v1830_v7 = vld [vmem:[#allocation14 + $0x210] sm:$0xff]  ;;  %v1812_v33 = vld [vmem:[#allocation14 + $0x180] sm:$0xff] }
 0x904   :  { %v1415_v13 = vpop.f32.mrf.mxu1  ;;  %v1482_v22 = vadd.f32 %v1481_v9, %v1458_v11  ;;  %1891 = vmatpush.msrb.mxu0 %v1851_v44  ;;  %v1774_v8 = vld [vmem:[#allocation14 + $0x50] sm:$0xff]  ;;  %v1831_v9 = vld [vmem:[#allocation14 + $0x218] sm:$0xff]  ;;  %v1793_v44 = vld [vmem:[#allocation14 + $0xe8] sm:$0xff] }
 0x905   :  { %v1484_v15 = vpop.f32.mrf.mxu0  ;;  %1863 = vmatpush.msrb.mxu3 %v1800_v37  ;;  %v1770_v11 = vld [vmem:[#allocation14 + $0x30] sm:$0xff] }
 0x906   :  { %2340 = vmatmul.msk.f32.gmra.mxu3 %vm500_vm3, %v1577_v12  ;;  %1892 = vmatpush.msrb.mxu0 %v1848_v48  ;;  %v1802_v37 = vld [vmem:[#allocation14 + $0x130] sm:$0xff]  ;;  %v1488_v48 = vld [vmem:[#allocation8 + $0x2] ss:$4 sm:$0x3] }
 0x907   :  { %2344 = vmatmul.msk.f32.gmra.mxu0 %vm500_vm3, %v1577_v12  ;;  %1864 = vmatpush.msrb.mxu3 %v1797_v39  ;;  %v1827_v12 = vld [vmem:[#allocation14 + $0x1f8] sm:$0xff] }
 0x908   :  { %1893 = vmatpush.msrb.mxu0 %v1845_v52  ;;  %v1799_v39 = vld [vmem:[#allocation14 + $0x118] sm:$0xff]  ;;  %v1844_v52 = vld [vmem:[#allocation14 + $0x280] sm:$0xff] }
 0x909   :  { %1865 = vmatpush.msrb.mxu3 %v1794_v43 }
 0x90a   :  { %v1438_v14 = vpop.f32.mrf.mxu2  ;;  %1894 = vmatpush.msrb.mxu0 %v1842_v32  ;;  %v1781_v32 = vld [vmem:[#allocation14 + $0x88] sm:$0xff] }
 0x90b   :  { %v1439_v16 = vadd.f32 %v1438_v14, %v1415_v13  ;;  %v1461_v17 = vpop.f32.mrf.mxu3  ;;  %1866 = vmatpush.msrb.mxu3 %v1791_v47  ;;  %v1771_v13 = vld [vmem:[#allocation14 + $0x38] sm:$0xff] }
 0x90c   :  { %v1485_v19 = vadd.f32 %v1484_v15, %v1461_v17  ;;  %1895 = vmatpush.msrb.mxu0 %v1839_v58  ;;  %v1828_v15 = vld [vmem:[#allocation14 + $0x200] sm:$0xff]  ;;  %v1847_v47 = vld [vmem:[#allocation14 + $0x298] sm:$0xff] }
 0x90d   :  { %1688 = vmatpush.msra.mxu1 %v1439_v16  ;;  %1867 = vmatpush.msrb.mxu3 %v1788_v51  ;;  %v1767_v16 = vld [vmem:[#allocation14 + $0x18] sm:$0xff]  ;;  %v1824_v17 = vld [vmem:[#allocation14 + $0x1e0] sm:$0xff] }
 0x90e   :  { %1717 = vmatpush.msrb.mxu2 %v1485_v19  ;;  %2341 = vmatmul.msk.f32.gmra.mxu3 %vm500_vm3, %v1578_v18  ;;  %v1825_v19 = vld [vmem:[#allocation14 + $0x1e8] sm:$0xff]  ;;  %v1787_v51 = vld [vmem:[#allocation14 + $0xb8] sm:$0xff] }
 0x90f   :  { %1689 = vmatpush.msra.mxu1 %v1436_v20  ;;  %2345 = vmatmul.msk.f32.gmra.mxu0 %vm500_vm3, %v1578_v18  ;;  %v1768_v18 = vld [vmem:[#allocation14 + $0x20] sm:$0xff] }
 0x910   :  { %1718 = vmatpush.msrb.mxu2 %v1482_v22  ;;  %2347 = vmatmul.msk.f32.vlgmr.msra.gmra.mxu1 %vm500_vm3, %v1658_v21  ;;  %v1764_v20 = vld [vmem:[#allocation14] sm:$0xff]  ;;  %v1765_v22 = vld [vmem:[#allocation14 + $0x8] sm:$0xff] }
 0x911   :  { %2351 = vmatmul.msk.f32.vlgmr.msrb.gmra.mxu2 %vm500_vm3, %v1658_v21  ;;  %1918 = vmatpush.msrb.mxu1 %v1810_v28  ;;  %v1821_v21 = vld [vmem:[#allocation14 + $0x1c8] sm:$0xff]  ;;  %v1815_v28 = vld [vmem:[#allocation14 + $0x198] sm:$0xff] }
 0x912   :  { %1947 = vmatpush.msra.mxu2 %v1858_v36  ;;  %1868 = vmatpush.msrb.mxu3 %v1785_v54  ;;  %v1841_v54 = vld [vmem:[#allocation14 + $0x268] sm:$0xff] }
 0x913   :  { %1919 = vmatpush.msrb.mxu1 %v1807_v30  ;;  %1896 = vmatpush.msrb.mxu0 %v1836_v62  ;;  %v1808_v30 = vld [vmem:[#allocation14 + $0x160] sm:$0xff]  ;;  %v1775_v62 = vld [vmem:[#allocation14 + $0x58] sm:$0xff] }
 0x914   :  { %1948 = vmatpush.msra.mxu2 %v1855_v42  ;;  %1869 = vmatpush.msrb.mxu3 %v1782_v57  ;;  %v1853_v42 = vld [vmem:[#allocation14 + $0x2c8] sm:$0xff] }
 0x915   :  { %1920 = vmatpush.msrb.mxu1 %v1804_v34  ;;  %1897 = vmatpush.msrb.mxu0 %v1833_v3  ;;  %v1813_v34 = vld [vmem:[#allocation14 + $0x188] sm:$0xff] }
 0x916   :  { %2342 = vmatmul.msk.f32.gmra.mxu3 %vm500_vm3, %v1579_v23  ;;  %1949 = vmatpush.msra.mxu2 %v1852_v46  ;;  %v1790_v46 = vld [vmem:[#allocation14 + $0xd0] sm:$0xff] }
 0x917   :  { %2346 = vmatmul.msk.f32.gmra.mxu0 %vm500_vm3, %v1579_v23  ;;  %1921 = vmatpush.msrb.mxu1 %v1801_v38  ;;  %v1822_v23 = vld [vmem:[#allocation14 + $0x1d0] sm:$0xff]  ;;  %v1859_v38 = vld [vmem:[#allocation14 + $0x2f8] sm:$0xff] }
 0x918   :  { %2348 = vmatmul.msk.f32.gmra.mxu1 %vm500_vm3, %v1659_v24  ;;  %1950 = vmatpush.msra.mxu2 %v1849_v50 }
 0x919   :  { %2352 = vmatmul.msk.f32.gmra.mxu2 %vm500_vm3, %v1659_v24  ;;  %1922 = vmatpush.msrb.mxu1 %v1798_v41  ;;  %v1818_v24 = vld [vmem:[#allocation14 + $0x1b0] sm:$0xff]  ;;  %v1796_v41 = vld [vmem:[#allocation14 + $0x100] sm:$0xff] }
 0x91a   :  { %1951 = vmatpush.msra.mxu2 %v1846_v31  ;;  %1870 = vmatpush.msrb.mxu3 %v1779_v61  ;;  %v1784_v31 = vld [vmem:[#allocation14 + $0xa0] sm:$0xff] }
 0x91b   :  { %1923 = vmatpush.msrb.mxu1 %v1795_v45  ;;  %1898 = vmatpush.msrb.mxu0 %v1830_v7  ;;  %v1850_v45 = vld [vmem:[#allocation14 + $0x2b0] sm:$0xff] }
 0x91c   :  { %1952 = vmatpush.msra.mxu2 %v1843_v56  ;;  %1871 = vmatpush.msrb.mxu3 %v1776_v2  ;;  %v1826_v7 = vld [vmem:[#allocation14 + $0x1f0] sm:$0xff] }
 0x91d   :  { %1924 = vmatpush.msrb.mxu1 %v1792_v49  ;;  %1899 = vmatpush.msrb.mxu0 %v1827_v12 }
 0x91e   :  { %1953 = vmatpush.msra.mxu2 %v1840_v60  ;;  %1872 = vmatpush.msrb.mxu3 %v1773_v6  ;;  %v1835_v60 = vld [vmem:[#allocation14 + $0x238] sm:$0xff]  ;;  %v1829_v6 = vld [vmem:[#allocation14 + $0x208] sm:$0xff] }
 0x91f   :  { %1925 = vmatpush.msrb.mxu1 %v1789_v53  ;;  %1900 = vmatpush.msrb.mxu0 %v1824_v17  ;;  %v2853_v53 = vperm.slane %v1488_v48, 0  ;;  %v1820_v17 = vld [vmem:[#allocation14 + $0x1c0] sm:$0xff] }
 0x920   :  { %2349 = vmatmul.msk.f32.gmra.mxu1 %vm500_vm3, %v1660_v25  ;;  %1954 = vmatpush.msra.mxu2 %v1837_v1  ;;  %v2859_v1 = vperm.slane %v1488_v48, 1 }
 0x921   :  { %2353 = vmatmul.msk.f32.gmra.mxu2 %vm500_vm3, %v1660_v25  ;;  %1926 = vmatpush.msrb.mxu1 %v1786_v55  ;;  %v1819_v25 = vld [vmem:[#allocation14 + $0x1b8] sm:$0xff]  ;;  %v1838_v55 = vld [vmem:[#allocation14 + $0x250] sm:$0xff] }
 0x922   :  { %1955 = vmatpush.msra.mxu2 %v1834_v5  ;;  %1873 = vmatpush.msrb.mxu3 %v1770_v11  ;;  %v1772_v5 = vld [vmem:[#allocation14 + $0x40] sm:$0xff] }
 0x923   :  { %1927 = vmatpush.msrb.mxu1 %v1783_v59  ;;  %1901 = vmatpush.msrb.mxu0 %v1821_v21  ;;  %v1778_v59 = vld [vmem:[#allocation14 + $0x70] sm:$0xff] }
 0x924   :  { %1956 = vmatpush.msra.mxu2 %v1831_v9  ;;  %1874 = vmatpush.msrb.mxu3 %v1767_v16 }
 0x925   :  { %1928 = vmatpush.msrb.mxu1 %v1780_v0  ;;  %1902 = vmatpush.msrb.mxu0 %v1818_v24  ;;  %v1832_v0 = vld [vmem:[#allocation14 + $0x220] sm:$0xff] }
 0x926   :  { %1957 = vmatpush.msra.mxu2 %v1828_v15  ;;  %1875 = vmatpush.msrb.mxu3 %v1764_v20  ;;  %v1823_v15 = vld [vmem:[#allocation14 + $0x1d8] sm:$0xff] }
 0x927   :  { %1929 = vmatpush.msrb.mxu1 %v1777_v4  ;;  %1903 = vmatpush.msrb.mxu0 %v1815_v28 }
 0x928   :  { %2350 = vmatmul.msk.f32.gmra.mxu1 %vm500_vm3, %v1661_v26  ;;  %1958 = vmatpush.msra.mxu2 %v1825_v19 }
 0x929   :  { %2354 = vmatmul.msk.f32.gmra.mxu2 %vm500_vm3, %v1661_v26  ;;  %1930 = vmatpush.msrb.mxu1 %v1774_v8  ;;  %v1811_v26 = vld [vmem:[#allocation14 + $0x178] sm:$0xff] }
 0x92a   :  { %1959 = vmatpush.msra.mxu2 %v1822_v23  ;;  %1976 = vmatpush.msra.mxu3 %v1811_v26 }
 0x92b   :  { %1931 = vmatpush.msrb.mxu1 %v1771_v13  ;;  %1904 = vmatpush.msrb.mxu0 %v1812_v33  ;;  %v1766_v13 = vld [vmem:[#allocation14 + $0x10] sm:$0xff] }
 0x92c   :  { %1960 = vmatpush.msra.mxu2 %v1819_v25  ;;  %1977 = vmatpush.msra.mxu3 %v1808_v30 }
 0x92d   :  { %1932 = vmatpush.msrb.mxu1 %v1768_v18  ;;  %2005 = vmatpush.msra.mxu0 %v1859_v38 }
 0x92e   :  { %1961 = vmatpush.msra.mxu2 %v1816_v29  ;;  %1978 = vmatpush.msra.mxu3 %v1805_v35  ;;  %v1814_v29 = vld [vmem:[#allocation14 + $0x190] sm:$0xff] }
 0x92f   :  { %1933 = vmatpush.msrb.mxu1 %v1765_v22  ;;  %2006 = vmatpush.msra.mxu0 %v1856_v40  ;;  %v1817_v22 = vld [vmem:[#allocation14 + $0x1a8] sm:$0xff] }
 0x930   :  { %1962 = vmatpush.msra.mxu2 %v1813_v34  ;;  %1979 = vmatpush.msra.mxu3 %v1802_v37 }
 0x931   :  { %2007 = vmatpush.msra.mxu0 %v1853_v42 }
 0x932   :  { %1980 = vmatpush.msra.mxu3 %v1799_v39 }
 0x933   :  { %2008 = vmatpush.msra.mxu0 %v1850_v45 }
 0x934   :  { %1981 = vmatpush.msra.mxu3 %v1796_v41 }
 0x935   :  { %2009 = vmatpush.msra.mxu0 %v1847_v47 }
 0x936   :  { %1982 = vmatpush.msra.mxu3 %v1793_v44 }
 0x937   :  { %2010 = vmatpush.msra.mxu0 %v1844_v52 }
 0x938   :  { %1983 = vmatpush.msra.mxu3 %v1790_v46 }
 0x939   :  { %2011 = vmatpush.msra.mxu0 %v1841_v54 }
 0x93a   :  { %1984 = vmatpush.msra.mxu3 %v1787_v51 }
 0x93b   :  { %2012 = vmatpush.msra.mxu0 %v1838_v55 }
 0x93c   :  { %1985 = vmatpush.msra.mxu3 %v1784_v31 }
 0x93d   :  { %2013 = vmatpush.msra.mxu0 %v1835_v60 }
 0x93e   :  { %1986 = vmatpush.msra.mxu3 %v1781_v32 }
 0x93f   :  { %2014 = vmatpush.msra.mxu0 %v1832_v0 }
 0x940   :  { %1987 = vmatpush.msra.mxu3 %v1778_v59 }
 0x941   :  { %2015 = vmatpush.msra.mxu0 %v1829_v6 }
 0x942   :  { %1988 = vmatpush.msra.mxu3 %v1775_v62 }
 0x943   :  { %2016 = vmatpush.msra.mxu0 %v1826_v7 }
 0x944   :  { %1989 = vmatpush.msra.mxu3 %v1772_v5 }
 0x945   :  { %2017 = vmatpush.msra.mxu0 %v1823_v15 }
 0x947   :  { %2018 = vmatpush.msra.mxu0 %v1820_v17 }
 0x949   :  { %2019 = vmatpush.msra.mxu0 %v1817_v22 }
 0x94b   :  { %2020 = vmatpush.msra.mxu0 %v1814_v29  ;;  %v2037_v29 = vld [vmem:[#allocation6 + $0x1a0] sm:$0xff] }
 0x967   :  { %v2839_v63 = vpop.f32.mrf.mxu1 }
 0x968   :  { %v1568_v56 = vadd.f32 %v2839_v63, %v2853_v53  ;;  %v1769_v63 = vld [vmem:[#allocation14 + $0x28] sm:$0xff] }
 0x969   :  { %1990 = vmatpush.msra.mxu3 %v1769_v63 }
 0x96b   :  { %1991 = vmatpush.msra.mxu3 %v1766_v13 }
 0x96e   :  { %v2841_v10 = vpop.f32.mrf.mxu2 }
 0x96f   :  { %v2843_v14 = vpop.f32.mrf.mxu1  ;;  %v1569_v9 = vadd.f32 %v2841_v10, %v2859_v1 }
 0x970   :  { %v1570_v11 = vadd.f32 %v2843_v14, %v2853_v53 }
 0x976   :  { %v2845_v27 = vpop.f32.mrf.mxu2 }
 0x977   :  { %v2847_v36 = vpop.f32.mrf.mxu1  ;;  %v1571_v26 = vadd.f32 %v2845_v27, %v2859_v1 }
 0x978   :  { %v1572_v30 = vadd.f32 %v2847_v36, %v2853_v53 }
 0x97c   :  { %v1638_v57 = vpop.f32.mrf.mxu0 }
 0x97d   :  { %v1651_v16 = vadd.f32 %v1638_v57, %v1569_v9 }
 0x97e   :  { %v2849_v43 = vpop.f32.mrf.mxu2 }
 0x97f   :  { %v2851_v50 = vpop.f32.mrf.mxu1  ;;  %v1573_v36 = vadd.f32 %v2849_v43, %v2859_v1 }
 0x980   :  { %v1574_v46 = vadd.f32 %v2851_v50, %v2853_v53 }
 0x981   :  { %v1609_v49 = vpop.f32.mrf.mxu3 }
 0x982   :  { %v1650_v61 = vadd.f32 %v1609_v49, %v1568_v56 }
 0x984   :  { %v1641_v18 = vpop.f32.mrf.mxu0 }
 0x985   :  { %v1653_v34 = vadd.f32 %v1641_v18, %v1571_v26 }
 0x986   :  { %v2857_v58 = vpop.f32.mrf.mxu2 }
 0x987   :  { %v1575_v56 = vadd.f32 %v2857_v58, %v2859_v1 }
 0x989   :  { %v1612_v2 = vpop.f32.mrf.mxu3 }
 0x98a   :  { %v1652_v19 = vadd.f32 %v1612_v2, %v1570_v11 }
 0x98c   :  { %v1644_v40 = vpop.f32.mrf.mxu0 }
 0x98d   :  { %v1691_v3 = vpop.f32.mrf.mxu1  ;;  %v1655_v48 = vadd.f32 %v1644_v40, %v1573_v36  ;;  %v2088_v36 = vld [vmem:[#allocation6 + $0x1d0] sm:$0xff] }
 0x98e   :  { %v1732_v4 = vadd.f32 %v1691_v3, %v1650_v61 }
 0x990   :  { %vm1740_vm9 = vcmp.ge.f32.partialorder %v1732_v4, 0.0  ;;  %v1748_v8 = vmul.f32 0.01, %v1732_v4 }
 0x991   :  { %v1615_v14 = vpop.f32.mrf.mxu3 }
 0x992   :  { %v2865_v12 = vsel %vm1740_vm9, %v1732_v4, %v1748_v8  ;;  %v1654_v35 = vadd.f32 %v1615_v14, %v1572_v30  ;;  %v2086_v30 = vld [vmem:[#allocation6 + $0x1c0] sm:$0xff] }
 0x993   :  { %1876 = vmatmul.f32.vlgmr.msrb.gmra.mxu3 %v2865_v12  ;;  %1934 = vmatmul.f32.vlgmr.msrb.gmra.mxu1 %v2865_v12 }
 0x994   :  { %v1720_v20 = vpop.f32.mrf.mxu2  ;;  %v1647_v55 = vpop.f32.mrf.mxu0 }
 0x995   :  { %v1733_v10 = vadd.f32 %v1720_v20, %v1651_v16  ;;  %v1694_v21 = vpop.f32.mrf.mxu1  ;;  %v1657_v57 = vadd.f32 %v1647_v55, %v1575_v56 }
 0x996   :  { %v1734_v23 = vadd.f32 %v1694_v21, %v1652_v19 }
 0x997   :  { %vm1741_vm10 = vcmp.ge.f32.partialorder %v1733_v10, 0.0  ;;  %v1749_v24 = vmul.f32 0.01, %v1733_v10 }
 0x998   :  { %v1750_v25 = vmul.f32 0.01, %v1734_v23  ;;  %vm1742_vm11 = vcmp.ge.f32.partialorder %v1734_v23, 0.0 }
 0x999   :  { %v1757_v28 = vsel %vm1741_vm10, %v1733_v10, %v1749_v24  ;;  %v1618_v44 = vpop.f32.mrf.mxu3 }
 0x99a   :  { %1905 = vmatmul.f32.vlgmr.msrb.gmra.mxu0 %v1757_v28  ;;  %1963 = vmatmul.f32.vlgmr.msra.gmra.mxu2 %v1757_v28  ;;  %v1758_v33 = vsel %vm1742_vm11, %v1734_v23, %v1750_v25  ;;  %v1656_v49 = vadd.f32 %v1618_v44, %v1574_v46  ;;  %v2036_v23 = vld [vmem:[#allocation6 + $0x198] sm:$0xff]  ;;  %v2135_v46 = vld [vmem:[#allocation6 + $0x1e0] sm:$0xff] }
 0x99b   :  { %1879 = vmatmul.f32.gmra.mxu3 %v1758_v33  ;;  %1937 = vmatmul.f32.gmra.mxu1 %v1758_v33  ;;  %v2085_v25 = vld [vmem:[#allocation6 + $0x1b8] sm:$0xff] }
 0x99c   :  { %v1723_v37 = vpop.f32.mrf.mxu2 }
 0x99d   :  { %v1735_v38 = vadd.f32 %v1723_v37, %v1653_v34  ;;  %v1697_v39 = vpop.f32.mrf.mxu1  ;;  %v2087_v37 = vld [vmem:[#allocation6 + $0x1c8] sm:$0xff] }
 0x99e   :  { %v1736_v41 = vadd.f32 %v1697_v39, %v1654_v35  ;;  %v2038_v35 = vld [vmem:[#allocation6 + $0x1a8] sm:$0xff] }
 0x99f   :  { %v1751_v42 = vmul.f32 0.01, %v1735_v38  ;;  %vm1743_vm12 = vcmp.ge.f32.partialorder %v1735_v38, 0.0 }
 0x9a0   :  { %v1752_v27 = vmul.f32 0.01, %v1736_v41  ;;  %vm1744_vm13 = vcmp.ge.f32.partialorder %v1736_v41, 0.0 }
 0x9a1   :  { %v1759_v45 = vsel %vm1743_vm12, %v1735_v38, %v1751_v42 }
 0x9a2   :  { %1908 = vmatmul.f32.gmra.mxu0 %v1759_v45  ;;  %1966 = vmatmul.f32.gmra.mxu2 %v1759_v45  ;;  %v1760_v47 = vsel %vm1744_vm13, %v1736_v41, %v1752_v27  ;;  %v2039_v41 = vld [vmem:[#allocation6 + $0x1b0] sm:$0xff] }
 0x9a3   :  { %1882 = vmatmul.f32.gmra.mxu3 %v1760_v47  ;;  %1940 = vmatmul.f32.gmra.mxu1 %v1760_v47 }
 0x9a4   :  { %v1726_v51 = vpop.f32.mrf.mxu2 }
 0x9a5   :  { %v1737_v52 = vadd.f32 %v1726_v51, %v1655_v48  ;;  %v1700_v31 = vpop.f32.mrf.mxu1  ;;  %v2137_v48 = vld [vmem:[#allocation6 + $0x1f0] sm:$0xff] }
 0x9a6   :  { %v1738_v54 = vadd.f32 %v1700_v31, %v1656_v49 }
 0x9a7   :  { %v1753_v32 = vmul.f32 0.01, %v1737_v52  ;;  %vm1745_vm14 = vcmp.ge.f32.partialorder %v1737_v52, 0.0 }
 0x9a8   :  { %v1754_v43 = vmul.f32 0.01, %v1738_v54  ;;  %vm1746_vm15 = vcmp.ge.f32.partialorder %v1738_v54, 0.0 }
 0x9a9   :  { %v1761_v50 = vsel %vm1745_vm14, %v1737_v52, %v1753_v32  ;;  %v2391_v52 = vld [vmem:[#allocation8 + $0x3] ss:$0 sm:$0xff] }
 0x9aa   :  { %1911 = vmatmul.f32.gmra.mxu0 %v1761_v50  ;;  %1969 = vmatmul.f32.gmra.mxu2 %v1761_v50  ;;  %v1762_v53 = vsel %vm1746_vm15, %v1738_v54, %v1754_v43 }
 0x9ab   :  { %1885 = vmatmul.f32.gmra.mxu3 %v1762_v53  ;;  %1943 = vmatmul.f32.gmra.mxu1 %v1762_v53 }
 0x9ac   :  { %v1729_v59 = vpop.f32.mrf.mxu2 }
 0x9ad   :  { %v1739_v60 = vadd.f32 %v1729_v59, %v1657_v57 }
 0x9af   :  { %v1755_v61 = vmul.f32 0.01, %v1739_v60  ;;  %vm1747_vm3 = vcmp.ge.f32.partialorder %v1739_v60, 0.0 }
 0x9b1   :  { %v1763_v62 = vsel %vm1747_vm3, %v1739_v60, %v1755_v61 }
 0x9b2   :  { %1914 = vmatmul.f32.gmra.mxu0 %v1763_v62  ;;  %1972 = vmatmul.f32.gmra.mxu2 %v1763_v62 }
 0x9b3   :  { %1992 = vmatmul.f32.vlgmr.msra.gmra.mxu3 %v2865_v12 }
 0x9ba   :  { %2021 = vmatmul.f32.vlgmr.msra.gmra.mxu0 %v1757_v28 }
 0x9bb   :  { %1995 = vmatmul.f32.gmra.mxu3 %v1758_v33 }
 0x9c2   :  { %2024 = vmatmul.f32.gmra.mxu0 %v1759_v45  ;;  %v2134_v45 = vld [vmem:[#allocation6 + $0x1d8] sm:$0xff] }
 0x9c3   :  { %1998 = vmatmul.f32.gmra.mxu3 %v1760_v47  ;;  %v2136_v47 = vld [vmem:[#allocation6 + $0x1e8] sm:$0xff] }
 0x9ca   :  { %2027 = vmatmul.f32.gmra.mxu0 %v1761_v50 }
 0x9cb   :  { %2001 = vmatmul.f32.gmra.mxu3 %v1762_v53 }
 0x9d2   :  { %2030 = vmatmul.f32.gmra.mxu0 %v1763_v62 }
 0xa10   :  { %v1935_v0 = vpop.f32.mrf.mxu1 }
 0xa16   :  { %v1877_v58 = vpop.f32.mrf.mxu3 }
 0xa17   :  { %v1906_v1 = vpop.f32.mrf.mxu0 }
 0xa18   :  { %v1938_v5 = vpop.f32.mrf.mxu1  ;;  %v1907_v19 = vadd.f32 %v1906_v1, %v1877_v58 }
 0xa1d   :  { %v1964_v2 = vpop.f32.mrf.mxu2 }
 0xa1e   :  { %v1880_v3 = vpop.f32.mrf.mxu3  ;;  %v1965_v24 = vadd.f32 %v1964_v2, %v1935_v0 }
 0xa1f   :  { %v1909_v4 = vpop.f32.mrf.mxu0 }
 0xa20   :  { %v1941_v8 = vpop.f32.mrf.mxu1  ;;  %v1910_v16 = vadd.f32 %v1909_v4, %v1880_v3 }
 0xa25   :  { %v1967_v6 = vpop.f32.mrf.mxu2 }
 0xa26   :  { %v1883_v63 = vpop.f32.mrf.mxu3  ;;  %v1968_v14 = vadd.f32 %v1967_v6, %v1938_v5 }
 0xa27   :  { %v1912_v7 = vpop.f32.mrf.mxu0 }
 0xa28   :  { %v1913_v15 = vadd.f32 %v1912_v7, %v1883_v63  ;;  %v1944_v17 = vpop.f32.mrf.mxu1 }
 0xa2d   :  { %v1970_v9 = vpop.f32.mrf.mxu2 }
 0xa2e   :  { %v1886_v11 = vpop.f32.mrf.mxu3  ;;  %v1971_v22 = vadd.f32 %v1970_v9, %v1941_v8 }
 0xa2f   :  { %v1915_v12 = vpop.f32.mrf.mxu0 }
 0xa30   :  { %v1916_v13 = vadd.f32 %v1915_v12, %v1886_v11 }
 0xa32   :  { %2064 = vmatpush.msra.mxu1 %v1916_v13 }
 0xa34   :  { %2065 = vmatpush.msra.mxu1 %v1913_v15 }
 0xa35   :  { %v1973_v18 = vpop.f32.mrf.mxu2 }
 0xa36   :  { %v1974_v20 = vadd.f32 %v1973_v18, %v1944_v17  ;;  %2066 = vmatpush.msra.mxu1 %v1910_v16  ;;  %v1993_v10 = vpop.f32.mrf.mxu3 }
 0xa37   :  { %v2022_v21 = vpop.f32.mrf.mxu0 }
 0xa38   :  { %2067 = vmatpush.msra.mxu1 %v1907_v19  ;;  %2113 = vmatpush.msrb.mxu2 %v1974_v20  ;;  %v2023_v44 = vadd.f32 %v2022_v21, %v1993_v10 }
 0xa39   :  { %2355 = vmatmul.msk.f32.vlgmr.msra.gmra.mxu1 %vm196_vm2, %v2036_v23 }
 0xa3a   :  { %2114 = vmatpush.msrb.mxu2 %v1971_v22 }
 0xa3c   :  { %2115 = vmatpush.msrb.mxu2 %v1968_v14 }
 0xa3e   :  { %2116 = vmatpush.msrb.mxu2 %v1965_v24  ;;  %v1996_v26 = vpop.f32.mrf.mxu3 }
 0xa3f   :  { %v2025_v28 = vpop.f32.mrf.mxu0  ;;  %2359 = vmatmul.msk.f32.vlgmr.msrb.gmra.mxu2 %vm196_vm2, %v2085_v25 }
 0xa40   :  { %v2026_v27 = vadd.f32 %v2025_v28, %v1996_v26 }
 0xa41   :  { %2356 = vmatmul.msk.f32.gmra.mxu1 %vm196_vm2, %v2037_v29 }
 0xa46   :  { %v1999_v33 = vpop.f32.mrf.mxu3 }
 0xa47   :  { %v2028_v34 = vpop.f32.mrf.mxu0  ;;  %2360 = vmatmul.msk.f32.gmra.mxu2 %vm196_vm2, %v2086_v30 }
 0xa48   :  { %v2029_v42 = vadd.f32 %v2028_v34, %v1999_v33 }
 0xa49   :  { %2357 = vmatmul.msk.f32.gmra.mxu1 %vm196_vm2, %v2038_v35 }
 0xa4e   :  { %v2002_v38 = vpop.f32.mrf.mxu3 }
 0xa4f   :  { %v2031_v39 = vpop.f32.mrf.mxu0  ;;  %2361 = vmatmul.msk.f32.gmra.mxu2 %vm196_vm2, %v2087_v37 }
 0xa50   :  { %v2032_v40 = vadd.f32 %v2031_v39, %v2002_v38 }
 0xa51   :  { %2358 = vmatmul.msk.f32.gmra.mxu1 %vm196_vm2, %v2039_v41 }
 0xa52   :  { %2162 = vmatpush.msrb.mxu3 %v2032_v40 }
 0xa54   :  { %2163 = vmatpush.msrb.mxu3 %v2029_v42 }
 0xa56   :  { %2164 = vmatpush.msrb.mxu3 %v2026_v27 }
 0xa57   :  { %2362 = vmatmul.msk.f32.gmra.mxu2 %vm196_vm2, %v2088_v36 }
 0xa58   :  { %2165 = vmatpush.msrb.mxu3 %v2023_v44 }
 0xa59   :  { %2363 = vmatmul.msk.f32.vlgmr.msrb.gmra.mxu3 %vm196_vm2, %v2134_v45 }
 0xa61   :  { %2364 = vmatmul.msk.f32.gmra.mxu3 %vm196_vm2, %v2135_v46 }
 0xa69   :  { %2365 = vmatmul.msk.f32.gmra.mxu3 %vm196_vm2, %v2136_v47 }
 0xa71   :  { %2366 = vmatmul.msk.f32.gmra.mxu3 %vm196_vm2, %v2137_v48 }
 0xab6   :  { %v2069_v49 = vpop.f32.mrf.mxu1 }
 0xab7   :  { %v2081_v31 = vadd.f32 %v2391_v52, %v2069_v49 }
 0xabe   :  { %v2072_v54 = vpop.f32.mrf.mxu1 }
 0xabf   :  { %v2082_v50 = vadd.f32 %v2391_v52, %v2072_v54 }
 0xac2   :  { %v2118_v51 = vpop.f32.mrf.mxu2 }
 0xac3   :  { %v2130_v32 = vadd.f32 %v2118_v51, %v2081_v31 }
 0xac6   :  { %v2075_v57 = vpop.f32.mrf.mxu1 }
 0xac7   :  { %v2083_v0 = vadd.f32 %v2391_v52, %v2075_v57 }
 0xaca   :  { %v2121_v55 = vpop.f32.mrf.mxu2 }
 0xacb   :  { %v2131_v60 = vadd.f32 %v2121_v55, %v2082_v50 }
 0xace   :  { %v2078_v6 = vpop.f32.mrf.mxu1 }
 0xacf   :  { %v2084_v8 = vadd.f32 %v2391_v52, %v2078_v6 }
 0xad2   :  { %v2124_v62 = vpop.f32.mrf.mxu2 }
 0xad3   :  { %v2132_v4 = vadd.f32 %v2124_v62, %v2083_v0 }
 0xada   :  { %v2127_v9 = vpop.f32.mrf.mxu2 }
 0xadb   :  { %v2133_v15 = vadd.f32 %v2127_v9, %v2084_v8 }
 0xadc   :  { %v2167_v43 = vpop.f32.mrf.mxu3 }
 0xadd   :  { %v2179_v56 = vadd.f32 %v2167_v43, %v2130_v32 }
 0xadf   :  { %2183 = vst.msk [vmem:[%s2933_s9] sm:$0xff] %vm701_vm1, %v2179_v56  ;;  %v2187_v53 = vsub.f32 0.0, %v2179_v56 }
 0xae1   :  { %v2191_v59 = vmul.f32 1.442695, %v2187_v53 }
 0xae3   :  { %2408 = vpow2.f32 %v2191_v59 }
 0xae4   :  { %v2170_v61 = vpop.f32.mrf.mxu3 }
 0xae5   :  { %v2180_v58 = vadd.f32 %v2170_v61, %v2131_v60 }
 0xae7   :  { %2184 = vst.msk [vmem:[%s2933_s9 + $0x8] sm:$0xff] %vm701_vm1, %v2180_v58  ;;  %v2188_v1 = vsub.f32 0.0, %v2180_v58 }
 0xae9   :  { %v2409_v2 = vpop.eup %2408  ;;  %v2193_v3 = vmul.f32 1.442695, %v2188_v1 }
 0xaea   :  { %v2199_v5 = vadd.f32 1.0, %v2409_v2 }
 0xaeb   :  { %2410 = vpow2.f32 %v2193_v3 }
 0xaec   :  { %2412 = vrcp.f32 %v2199_v5  ;;  %v2173_v63 = vpop.f32.mrf.mxu3  ;;  %v2214_v21 = vand.u32 2147483648, %v2199_v5  ;;  %v2212_v14 = vand.u32 2147483647, %v2199_v5  ;;  %vm2208_vm0 = vweird.f32 %v2199_v5 }
 0xaed   :  { %v2181_v7 = vadd.f32 %v2173_v63, %v2132_v4 }
 0xaee   :  { %v2215_v30 = vor.u32 1.1754944e-38, %v2214_v21  ;;  %vm2213_vm5 = vcmp.eq.f32.partialorder %v2212_v14, 8.507059e+37 }
 0xaef   :  { %2185 = vst.msk [vmem:[%s2933_s9 + $0x10] sm:$0xff] %vm701_vm1, %v2181_v7  ;;  %v2189_v11 = vsub.f32 0.0, %v2181_v7 }
 0xaf1   :  { %v2411_v12 = vpop.eup %2410  ;;  %v2195_v13 = vmul.f32 1.442695, %v2189_v11 }
 0xaf2   :  { %v2413_v16 = vpop.eup %2412  ;;  %v2200_v17 = vadd.f32 1.0, %v2411_v12 }
 0xaf3   :  { %2414 = vpow2.f32 %v2195_v13  ;;  %v2204_v18 = vmul.f32 %v2413_v16, %v2199_v5  ;;  %vm2209_vm2 = vweird.f32 %v2413_v16 }
 0xaf4   :  { %2416 = vrcp.f32 %v2200_v17  ;;  %v2176_v19 = vpop.f32.mrf.mxu3  ;;  %vm2210_vm4 = vmor %vm2208_vm0, %vm2209_vm2  ;;  %v2229_v38 = vand.u32 2147483648, %v2200_v17  ;;  %v2227_v40 = vand.u32 2147483647, %v2200_v17  ;;  %vm2223_vm6 = vweird.f32 %v2200_v17 }
 0xaf5   :  { %v2182_v20 = vadd.f32 %v2176_v19, %v2133_v15  ;;  %v2205_v10 = vsub.f32 1.0, %v2204_v18  ;;  %vm2279_vm2 = vcmask 1048064  }
 0xaf6   :  { %v2230_v44 = vor.u32 1.1754944e-38, %v2229_v38  ;;  %vm2228_vm8 = vcmp.eq.f32.partialorder %v2227_v40, 8.507059e+37 }
 0xaf7   :  { %2186 = vst.msk [vmem:[%s2933_s9 + $0x18] sm:$0xff] %vm701_vm1, %v2182_v20  ;;  %v2190_v22 = vsub.f32 0.0, %v2182_v20  ;;  %v2206_v23 = vmul.f32 %v2413_v16, %v2205_v10 }
 0xaf9   :  { %v2415_v24 = vpop.eup %2414  ;;  %v2197_v25 = vmul.f32 1.442695, %v2190_v22  ;;  %v2207_v26 = vadd.f32 %v2413_v16, %v2206_v23 }
 0xafa   :  { %v2417_v28 = vpop.eup %2416  ;;  %v2201_v29 = vadd.f32 1.0, %v2415_v24 }
 0xafb   :  { %2418 = vpow2.f32 %v2197_v25  ;;  %v2211_v33 = vsel %vm2210_vm4, %v2413_v16, %v2207_v26  ;;  %v2219_v34 = vmul.f32 %v2417_v28, %v2200_v17  ;;  %vm2224_vm1 = vweird.f32 %v2417_v28 }
 0xafc   :  { %2420 = vrcp.f32 %v2201_v29  ;;  %v2216_v35 = vsel %vm2213_vm5, %v2215_v30, %v2211_v33  ;;  %vm2225_vm7 = vmor %vm2223_vm6, %vm2224_vm1  ;;  %v2244_v49 = vand.u32 2147483648, %v2201_v29  ;;  %v2242_v52 = vand.u32 2147483647, %v2201_v29 }
 0xafd   :  { %2267 = vrot.lane.b32.xlu1 %v2216_v35, %s2615_s0  ;;  %v2220_v37 = vsub.f32 1.0, %v2219_v34  ;;  %vm2238_vm10 = vweird.f32 %v2201_v29 }
 0xafe   :  { %v2245_v32 = vor.u32 1.1754944e-38, %v2244_v49  ;;  %vm2243_vm12 = vcmp.eq.f32.partialorder %v2242_v52, 8.507059e+37 }
 0xaff   :  { %v2221_v39 = vmul.f32 %v2417_v28, %v2220_v37 }
 0xb01   :  { %v2419_v41 = vpop.eup %2418  ;;  %v2222_v42 = vadd.f32 %v2417_v28, %v2221_v39 }
 0xb02   :  { %v2421_v27 = vpop.eup %2420  ;;  %v2202_v36 = vadd.f32 1.0, %v2419_v41 }
 0xb03   :  { %v2226_v45 = vsel %vm2225_vm7, %v2417_v28, %v2222_v42  ;;  %v2234_v46 = vmul.f32 %v2421_v27, %v2201_v29  ;;  %vm2239_vm9 = vweird.f32 %v2421_v27 }
 0xb04   :  { %2422 = vrcp.f32 %v2202_v36  ;;  %v2231_v47 = vsel %vm2228_vm8, %v2230_v44, %v2226_v45  ;;  %vm2240_vm11 = vmor %vm2238_vm10, %vm2239_vm9  ;;  %v2259_v53 = vand.u32 2147483648, %v2202_v36  ;;  %v2257_v59 = vand.u32 2147483647, %v2202_v36 }
 0xb05   :  { %2269 = vrot.lane.b32.xlu2 %v2231_v47, %s2615_s0  ;;  %v2235_v48 = vsub.f32 1.0, %v2234_v46  ;;  %vm2253_vm14 = vweird.f32 %v2202_v36 }
 0xb06   :  { %v2260_v61 = vor.u32 1.1754944e-38, %v2259_v53  ;;  %vm2258_vm3 = vcmp.eq.f32.partialorder %v2257_v59, 8.507059e+37 }
 0xb07   :  { %v2236_v51 = vmul.f32 %v2421_v27, %v2235_v48 }
 0xb09   :  { %v2237_v31 = vadd.f32 %v2421_v27, %v2236_v51 }
 0xb0a   :  { %v2423_v54 = vpop.eup %2422 }
 0xb0b   :  { %v2241_v55 = vsel %vm2240_vm11, %v2421_v27, %v2237_v31  ;;  %v2249_v43 = vmul.f32 %v2423_v54, %v2202_v36  ;;  %vm2254_vm13 = vweird.f32 %v2423_v54 }
 0xb0c   :  { %v2246_v56 = vsel %vm2243_vm12, %v2245_v32, %v2241_v55  ;;  %vm2255_vm15 = vmor %vm2253_vm14, %vm2254_vm13 }
 0xb0d   :  { %2271 = vrot.lane.b32.xlu0 %v2246_v56, %s2615_s0  ;;  %v2250_v50 = vsub.f32 1.0, %v2249_v43 }
 0xb0f   :  { %v2251_v57 = vmul.f32 %v2423_v54, %v2250_v50 }
 0xb11   :  { %v2252_v60 = vadd.f32 %v2423_v54, %v2251_v57 }
 0xb13   :  { %v2256_v62 = vsel %vm2255_vm15, %v2423_v54, %v2252_v60 }
 0xb14   :  { %v2261_v58 = vsel %vm2258_vm3, %v2260_v61, %v2256_v62 }
 0xb15   :  { %2273 = vrot.lane.b32.xlu1 %v2261_v58, %s2615_s0 }
 0xb5f   :  { %v2270_v0 = vpop.permute.xlu2 %2269 }
 0xb60   :  { %2281 = vst.msk [vmem:[%s2933_s9 + $0x8] sm:$0xff] %vm2279_vm2, %v2270_v0 }
 0xb6f   :  { %v2268_v1 = vpop.permute.xlu1 %2267 }
 0xb70   :  { %2280 = vst.msk [vmem:[%s2933_s9] sm:$0xff] %vm2279_vm2, %v2268_v1 }
 0xb7f   :  { %v2272_v2 = vpop.permute.xlu0 %2271 }
 0xb80   :  { %2282 = vst.msk [vmem:[%s2933_s9 + $0x10] sm:$0xff] %vm2279_vm2, %v2272_v2 }
 0xb87   :  { %v2274_v3 = vpop.permute.xlu1 %2273 }
 0xb88   :  { %2283 = vst.msk [vmem:[%s2933_s9 + $0x18] sm:$0xff] %vm2279_vm2, %v2274_v3 }
 0xb89   :  { %2292 = vsyncpa [#allocation5], 1 }
 0xb8a   :  { %2293 = vsyncpa [#allocation7], 1 }
 0xb8b   :  { %2294 = vsyncpa [#allocation10], 1 }
 0xb8c   :  { %2295 = vsyncpa [#allocation13], 1 }

</bundles_post_ra>
